<compile_context>
chip_gen: v7x
topology: tpu7x:2x2x1
jax: 0.10.0
libtpu: 0.0.40
codegen_flags: <defaults>
</compile_context>

<pallas_src>
import jax
import jax.numpy as jnp
from jax import lax
from jax.experimental import pallas as pl
from jax.experimental.pallas import tpu as pltpu


def make_cnn_gru_kernel(L, B_tile, H, num_layers, O, P):
    L2, T = L // 2, L // 4
    BL, BL2, BT = B_tile * L, B_tile * L2, B_tile * T
    f32 = jnp.float32

    def dot(a, b):
        return jnp.dot(a, b, preferred_element_type=f32)

    def kernel(*refs):
        in_refs = refs[:-7]
        (o_ref, y1buf, y2buf, p2buf, gi_buf, hseq_buf, hdec_buf) = refs[-7:]

        it = iter(in_refs)
        x = next(it)[...]                                    # (BL, C_in), batch-major rows
        w1 = next(it)[...]                                   # (3*C_in, 32)  packed conv1 taps
        b1 = next(it)[...]                                   # (1, 32)
        w2 = next(it)[...]                                   # (3*32, 64)    packed conv2 taps
        b2 = next(it)[...]                                   # (1, 64)
        w_ih = [next(it)[...] for _ in range(num_layers)]    # (in_l, 3H), gate order (r,z,n)
        w_hh_ref = next(it)                                  # (num_layers, H, 3H)
        b_gru_ref = next(it)                                 # (2*num_layers, 3H): [b_ih; b_hh]*L
        fc_w = next(it)[...]                                 # (H, H)
        fc_b = next(it)[...]                                 # (1, H)
        out_w = next(it)[...]                                # (H, O)
        out_b = next(it)[...]                                # (1, O)

        # ---- segment-boundary masks (hoisted; shared by the +1 / -1 shifts) ----
        posL = lax.broadcasted_iota(jnp.int32, (BL, 1), 0) % L
        mL_first, mL_last = posL == 0, posL == (L - 1)
        posL2 = lax.broadcasted_iota(jnp.int32, (BL2, 1), 0) % L2
        mL2_first, mL2_last = posL2 == 0, posL2 == (L2 - 1)

        def shifted(v, shift, mask):
            # out[r] = v[r - shift] within each batch segment, zeros at the padded boundary.
            rolled = pltpu.roll(v, shift=shift % v.shape[0], axis=0)   # XLU sublane rotation
            return jnp.where(mask, 0.0, rolled)

        # ---- conv1 (k=3, pad=1) + ReLU: shifted copies -> one fused matmul ----
        x_cat = jnp.concatenate([shifted(x, 1, mL_first), x, shifted(x, -1, mL_last)], axis=1)
        y1 = jnp.maximum(dot(x_cat, w1) + b1, 0.0)            # (BL, 32)

        # ---- maxpool1 (k=2, s=2): fold pairwise max BEFORE the VMEM round trip ----
        y1buf[...] = jnp.maximum(y1, pltpu.roll(y1, shift=BL - 1, axis=0))
        p1 = y1buf[pl.ds(0, BL2, stride=2), :]                # (BL2, 32), batch-major

        # ---- conv2 + ReLU ----
        p1_cat = jnp.concatenate(
            [shifted(p1, 1, mL2_first), p1, shifted(p1, -1, mL2_last)], axis=1)
        y2 = jnp.maximum(dot(p1_cat, w2) + b2, 0.0)           # (BL2, 64)

        # ---- maxpool2: folded max, single strided gather per step into time-major rows ----
        y2buf[...] = jnp.maximum(y2, pltpu.roll(y2, shift=BL2 - 1, axis=0))
        for t in range(T):
            p2buf[pl.ds(t * B_tile, B_tile), :] = y2buf[pl.ds(2 * t, B_tile, stride=L2), :]

        # ---- GRU (batch_first, h0 = 0), PyTorch gate order (r, z, n), fused 3H gates ----
        for layer in range(num_layers):
            w_hh = w_hh_ref[layer]                            # (H, 3H)
            b_ih = b_gru_ref[pl.ds(2 * layer, 1), :]          # (1, 3H)
            b_hh = b_gru_ref[pl.ds(2 * layer + 1, 1), :]      # (1, 3H)
            src = p2buf if layer == 0 else hseq_buf           # (BT, in_l), time-major
            gi_buf[...] = dot(src[...], w_ih[layer]) + b_ih   # (BT, 3H): all gates, all steps
            last_layer = layer == num_layers - 1
            h = jnp.zeros((B_tile, H), f32)
            for t in range(T):
                gi_t = gi_buf[pl.ds(t * B_tile, B_tile), :]   # (B_tile, 3H)
                gh = dot(h, w_hh) + b_hh                      # (B_tile, 3H)
                r = jax.nn.sigmoid(gi_t[:, 0:H] + gh[:, 0:H])
                z = jax.nn.sigmoid(gi_t[:, H:2 * H] + gh[:, H:2 * H])
                n = jnp.tanh(gi_t[:, 2 * H:3 * H] + r * gh[:, 2 * H:3 * H])
                h = (1.0 - z) * n + z * h
                if not last_layer:
                    hseq_buf[pl.ds(t * B_tile, B_tile), :] = h

        # ---- autoregressive decoder: serial relu(fc(.)) chain, one output matmul ----
        cur = h                                               # gru_out[:, -1, :]  (B_tile, H)
        for p in range(P):
            cur = jnp.maximum(dot(cur, fc_w) + fc_b, 0.0)     # relu(fc(cur))
            hdec_buf[pl.ds(p * B_tile, B_tile), :] = cur
        # (P*B_tile, O), p-major; wrapper reshapes -- no in-kernel lane concat of P pieces.
        o_ref[...] = (dot(hdec_buf[...], out_w) + out_b).astype(o_ref.dtype)

    return kernel


def init_cnn_gru_params(key, input_channels, hidden_dim, num_layers, output_dim):
    H = hidden_dim
    keys = iter(jax.random.split(key, 64))

    def nrm(shape):
        return (jax.random.normal(next(keys), shape) * 0.1).astype(jnp.float32)

    params = {
        "conv1_w": nrm((32, input_channels, 3)), "conv1_b": nrm((32,)),
        "conv2_w": nrm((64, 32, 3)),             "conv2_b": nrm((64,)),
        "gru": [],
        "fc_w": nrm((H, H)), "fc_b": nrm((H,)),
        "out_w": nrm((output_dim, H)), "out_b": nrm((output_dim,)),
    }
    in_sizes = [64] + [H] * (num_layers - 1)
    for in_l in in_sizes:
        params["gru"].append({
            "w_ih": nrm((3 * H, in_l)), "w_hh": nrm((3 * H, H)),
            "b_ih": nrm((3 * H,)),      "b_hh": nrm((3 * H,)),
        })
    return params


def cnn_gru_forward(x, params, hidden_dim, num_layers, output_dim, prediction_length):
    x = jnp.asarray(x, jnp.float32)
    B, C_in, L = x.shape
    assert L % 4 == 0, "sequence_length must be divisible by 4"
    H, O, P = hidden_dim, output_dim, prediction_length
    f32 = jnp.float32
    L2, T = L // 2, L // 4

    # ---- batch tiling: big tiles ride the MXU M dimension; keep >=2 tiles on v7x ----
    try:
        two_core = "v7" in jax.devices()[0].device_kind.lower()
    except Exception:  # pragma: no cover - defensive
        two_core = False
    nb_min = -(-B // 128)                       # <=128 rows per tile
    if two_core and B >= 16:
        nb_min = max(nb_min, 2)                 # fill both TensorCores when B is large enough
    B_tile = -(-B // nb_min)
    if B_tile >= 8:
        B_tile = -(-B_tile // 8) * 8            # sublane-align per-timestep scratch slices
    nb = -(-B // B_tile)
    B_pad = nb * B_tile

    # layout: (B, C_in, L) -> flattened (B*L, C_in), time on sublanes within each batch segment.
    # (lane-sparse for tiny C_in -- negligible here; repack channels into lanes if C_in grows)
    x_flat = jnp.transpose(x, (0, 2, 1)).reshape(B * L, C_in)
    if B_pad != B:
        x_flat = jnp.pad(x_flat, ((0, (B_pad - B) * L), (0, 0)))

    def conv_cat(w):  # (C_out, C_in, 3) -> (3*C_in, C_out), row blocks = taps [l-1, l, l+1]
        return jnp.concatenate([jnp.transpose(w[:, :, k]) for k in range(3)], axis=0)

    w1 = conv_cat(params["conv1_w"]); b1 = params["conv1_b"].reshape(1, -1)
    w2 = conv_cat(params["conv2_w"]); b2 = params["conv2_b"].reshape(1, -1)

    # GRU: pack the 3 gates (r, z, n) into single (in, 3H) / (H, 3H) matrices, stack biases.
    w_ih_list, w_hh_list, b_rows = [], [], []
    for lp in params["gru"]:
        w_ih_list.append(jnp.transpose(lp["w_ih"]).astype(f32))   # (in_l, 3H)
        w_hh_list.append(jnp.transpose(lp["w_hh"]).astype(f32))   # (H, 3H)
        b_rows.append(lp["b_ih"].reshape(1, 3 * H))
        b_rows.append(lp["b_hh"].reshape(1, 3 * H))
    w_hh_all = jnp.stack(w_hh_list, axis=0)                       # (num_layers, H, 3H)
    b_gru = jnp.concatenate(b_rows, axis=0)                       # (2*num_layers, 3H)

    fc_w = jnp.transpose(params["fc_w"]); fc_b = params["fc_b"].reshape(1, H)
    out_w = jnp.transpose(params["out_w"]); out_b = params["out_b"].reshape(1, O)

    args = [x_flat, w1, b1, w2, b2] + w_ih_list + [w_hh_all, b_gru, fc_w, fc_b, out_w, out_b]

    kernel = make_cnn_gru_kernel(L, B_tile, H, num_layers, O, P)

    in_specs = [pl.BlockSpec((B_tile * L, C_in), lambda i: (i, 0))]
    for a in args[1:]:
        nd = a.ndim
        in_specs.append(pl.BlockSpec(a.shape, lambda i, _nd=nd: (0,) * _nd))

    out_spec = pl.BlockSpec((P * B_tile, O), lambda i: (i, 0))

    fn = pl.pallas_call(
        kernel,
        out_shape=jax.ShapeDtypeStruct((nb * P * B_tile, O), f32),
        grid_spec=pltpu.PrefetchScalarGridSpec(
            num_scalar_prefetch=0,
            grid=(nb,),
            in_specs=in_specs,
            out_specs=out_spec,
            scratch_shapes=[
                pltpu.VMEM((B_tile * L, 32), f32),      # y1buf: conv1 out (folded pool max)
                pltpu.VMEM((B_tile * L2, 64), f32),     # y2buf: conv2 out (folded pool max)
                pltpu.VMEM((B_tile * T, 64), f32),      # p2buf: pooled features, time-major
                pltpu.VMEM((B_tile * T, 3 * H), f32),   # gi_buf: per-layer input gates
                pltpu.VMEM((B_tile * T, H), f32),       # hseq_buf: inter-layer hidden sequence
                pltpu.VMEM((P * B_tile, H), f32),       # hdec_buf: decoder hidden chain
            ],
        ),
        compiler_params=pltpu.CompilerParams(
            dimension_semantics=("parallel",)),
    )
    out = fn(*args)                                             # (nb*P*B_tile, O), p-major
    out = out.reshape(nb, P, B_tile, O).transpose(0, 2, 1, 3).reshape(B_pad, P, O)
    return out[:B]


if __name__ == "__main__":
    # Small shapes consistent with the module's forward pass.
    B, C_in, L = 2, 4, 16            # batch, input_channels, sequence_length
    H, num_layers = 32, 3            # hidden_dim, GRU layers
    O, P = 1, 24                     # output_dim, prediction_length

    key = jax.random.PRNGKey(0)
    k_x, k_p = jax.random.split(key)
    x = jax.random.normal(k_x, (B, C_in, L), dtype=jnp.float32)
    params = init_cnn_gru_params(k_p, C_in, H, num_layers, O)

    out = cnn_gru_forward(x, params, H, num_layers, O, P)
    out = jax.block_until_ready(out)

    assert out.shape == (B, P, O), out.shape
    assert bool(jnp.all(jnp.isfinite(out)))
    print("KERNEL_OK")
</pallas_src>

<mosaic_0001>
module attributes {stable_mosaic.version = 11 : i64} {
  func.func @kernel(%arg0: i32, %arg1: memref<32x4xf32, #tpu.memory_space<vmem>>, %arg2: memref<12x32xf32, #tpu.memory_space<vmem>>, %arg3: memref<1x32xf32, #tpu.memory_space<vmem>>, %arg4: memref<96x64xf32, #tpu.memory_space<vmem>>, %arg5: memref<1x64xf32, #tpu.memory_space<vmem>>, %arg6: memref<64x96xf32, #tpu.memory_space<vmem>>, %arg7: memref<32x96xf32, #tpu.memory_space<vmem>>, %arg8: memref<32x96xf32, #tpu.memory_space<vmem>>, %arg9: memref<3x32x96xf32, #tpu.memory_space<vmem>>, %arg10: memref<6x96xf32, #tpu.memory_space<vmem>>, %arg11: memref<32x32xf32, #tpu.memory_space<vmem>>, %arg12: memref<1x32xf32, #tpu.memory_space<vmem>>, %arg13: memref<32x1xf32, #tpu.memory_space<vmem>>, %arg14: memref<1x1xf32, #tpu.memory_space<vmem>>, %arg15: memref<48x1xf32, #tpu.memory_space<vmem>>, %arg16: memref<32x32xf32, #tpu.memory_space<vmem>>, %arg17: memref<16x64xf32, #tpu.memory_space<vmem>>, %arg18: memref<8x64xf32, #tpu.memory_space<vmem>>, %arg19: memref<8x96xf32, #tpu.memory_space<vmem>>, %arg20: memref<8x32xf32, #tpu.memory_space<vmem>>, %arg21: memref<48x32xf32, #tpu.memory_space<vmem>>) attributes {dimension_semantics = [#tpu.dimension_semantics<parallel>], iteration_bounds = array<i64: 1>, scalar_prefetch = 0 : i64, scratch_operands = 6 : i64, tpu.core_type = #tpu.core_type<tc>, window_params = [{transform_indices = @transform_0, window_bounds = array<i64: 32, 4>}, {pipeline_mode = #tpu.pipeline_mode<synchronous>, transform_indices = @transform_1, window_bounds = array<i64: 12, 32>}, {pipeline_mode = #tpu.pipeline_mode<synchronous>, transform_indices = @transform_2, window_bounds = array<i64: 1, 32>}, {pipeline_mode = #tpu.pipeline_mode<synchronous>, transform_indices = @transform_3, window_bounds = array<i64: 96, 64>}, {pipeline_mode = #tpu.pipeline_mode<synchronous>, transform_indices = @transform_4, window_bounds = array<i64: 1, 64>}, {pipeline_mode = #tpu.pipeline_mode<synchronous>, transform_indices = @transform_5, window_bounds = array<i64: 64, 96>}, {pipeline_mode = #tpu.pipeline_mode<synchronous>, transform_indices = @transform_6, window_bounds = array<i64: 32, 96>}, {pipeline_mode = #tpu.pipeline_mode<synchronous>, transform_indices = @transform_7, window_bounds = array<i64: 32, 96>}, {pipeline_mode = #tpu.pipeline_mode<synchronous>, transform_indices = @transform_8, window_bounds = array<i64: 3, 32, 96>}, {pipeline_mode = #tpu.pipeline_mode<synchronous>, transform_indices = @transform_9, window_bounds = array<i64: 6, 96>}, {pipeline_mode = #tpu.pipeline_mode<synchronous>, transform_indices = @transform_10, window_bounds = array<i64: 32, 32>}, {pipeline_mode = #tpu.pipeline_mode<synchronous>, transform_indices = @transform_11, window_bounds = array<i64: 1, 32>}, {pipeline_mode = #tpu.pipeline_mode<synchronous>, transform_indices = @transform_12, window_bounds = array<i64: 32, 1>}, {pipeline_mode = #tpu.pipeline_mode<synchronous>, transform_indices = @transform_13, window_bounds = array<i64: 1, 1>}, {transform_indices = @transform_14, window_bounds = array<i64: 48, 1>}]} {
    %c0 = arith.constant 0 : index
    %c0_0 = arith.constant 0 : index
    %0 = vector.load %arg1[%c0, %c0_0] : memref<32x4xf32, #tpu.memory_space<vmem>>, vector<32x4xf32>
    %c0_1 = arith.constant 0 : index
    %c0_2 = arith.constant 0 : index
    %1 = vector.load %arg2[%c0_1, %c0_2] : memref<12x32xf32, #tpu.memory_space<vmem>>, vector<12x32xf32>
    %c0_3 = arith.constant 0 : index
    %c0_4 = arith.constant 0 : index
    %2 = vector.load %arg3[%c0_3, %c0_4] : memref<1x32xf32, #tpu.memory_space<vmem>>, vector<1x32xf32>
    %c0_5 = arith.constant 0 : index
    %c0_6 = arith.constant 0 : index
    %3 = vector.load %arg4[%c0_5, %c0_6] : memref<96x64xf32, #tpu.memory_space<vmem>>, vector<96x64xf32>
    %c0_7 = arith.constant 0 : index
    %c0_8 = arith.constant 0 : index
    %4 = vector.load %arg5[%c0_7, %c0_8] : memref<1x64xf32, #tpu.memory_space<vmem>>, vector<1x64xf32>
    %c0_9 = arith.constant 0 : index
    %c0_10 = arith.constant 0 : index
    %5 = vector.load %arg6[%c0_9, %c0_10] : memref<64x96xf32, #tpu.memory_space<vmem>>, vector<64x96xf32>
    %c0_11 = arith.constant 0 : index
    %c0_12 = arith.constant 0 : index
    %6 = vector.load %arg7[%c0_11, %c0_12] : memref<32x96xf32, #tpu.memory_space<vmem>>, vector<32x96xf32>
    %c0_13 = arith.constant 0 : index
    %c0_14 = arith.constant 0 : index
    %7 = vector.load %arg8[%c0_13, %c0_14] : memref<32x96xf32, #tpu.memory_space<vmem>>, vector<32x96xf32>
    %c0_15 = arith.constant 0 : index
    %c0_16 = arith.constant 0 : index
    %8 = vector.load %arg11[%c0_15, %c0_16] : memref<32x32xf32, #tpu.memory_space<vmem>>, vector<32x32xf32>
    %c0_17 = arith.constant 0 : index
    %c0_18 = arith.constant 0 : index
    %9 = vector.load %arg12[%c0_17, %c0_18] : memref<1x32xf32, #tpu.memory_space<vmem>>, vector<1x32xf32>
    %c0_19 = arith.constant 0 : index
    %c0_20 = arith.constant 0 : index
    %10 = vector.load %arg13[%c0_19, %c0_20] : memref<32x1xf32, #tpu.memory_space<vmem>>, vector<32x1xf32>
    %c0_21 = arith.constant 0 : index
    %c0_22 = arith.constant 0 : index
    %11 = vector.load %arg14[%c0_21, %c0_22] : memref<1x1xf32, #tpu.memory_space<vmem>>, vector<1x1xf32>
    %12 = tpu.iota {dimensions = array<i32: 0>} : vector<32x1xi32>
    %c16_i32 = arith.constant 16 : i32
    %c0_i32 = arith.constant 0 : i32
    %13 = arith.cmpi eq, %c16_i32, %c0_i32 : i32
    %c1_i32 = arith.constant 1 : i32
    %14 = arith.select %13, %c1_i32, %c16_i32 : i32
    %15 = vector.broadcast %14 : i32 to vector<32x1xi32>
    %16 = arith.remsi %12, %15 : vector<32x1xi32>
    %c0_i32_23 = arith.constant 0 : i32
    %17 = vector.broadcast %c0_i32_23 : i32 to vector<32x1xi32>
    %18 = arith.cmpi ne, %16, %17 : vector<32x1xi32>
    %c0_i32_24 = arith.constant 0 : i32
    %19 = vector.broadcast %c0_i32_24 : i32 to vector<32x1xi32>
    %20 = arith.cmpi slt, %16, %19 : vector<32x1xi32>
    %c0_i32_25 = arith.constant 0 : i32
    %21 = arith.cmpi slt, %14, %c0_i32_25 : i32
    %22 = vector.broadcast %21 : i1 to vector<32x1xi1>
    %23 = vector.broadcast %22 : vector<32x1xi1> to vector<32x1xi1>
    %24 = arith.xori %20, %23 : vector<32x1xi1>
    %25 = arith.andi %24, %18 : vector<32x1xi1>
    %26 = vector.broadcast %14 : i32 to vector<32x1xi32>
    %27 = arith.addi %16, %26 : vector<32x1xi32>
    %28 = arith.select %25, %27, %16 : vector<32x1xi1>, vector<32x1xi32>
    %c0_i32_26 = arith.constant 0 : i32
    %29 = vector.broadcast %c0_i32_26 : i32 to vector<32x1xi32>
    %30 = arith.cmpi eq, %28, %29 : vector<32x1xi32>
    %c15_i32 = arith.constant 15 : i32
    %31 = vector.broadcast %c15_i32 : i32 to vector<32x1xi32>
    %32 = arith.cmpi eq, %28, %31 : vector<32x1xi32>
    %33 = tpu.iota {dimensions = array<i32: 0>} : vector<16x1xi32>
    %c8_i32 = arith.constant 8 : i32
    %c0_i32_27 = arith.constant 0 : i32
    %34 = arith.cmpi eq, %c8_i32, %c0_i32_27 : i32
    %c1_i32_28 = arith.constant 1 : i32
    %35 = arith.select %34, %c1_i32_28, %c8_i32 : i32
    %36 = vector.broadcast %35 : i32 to vector<16x1xi32>
    %37 = arith.remsi %33, %36 : vector<16x1xi32>
    %c0_i32_29 = arith.constant 0 : i32
    %38 = vector.broadcast %c0_i32_29 : i32 to vector<16x1xi32>
    %39 = arith.cmpi ne, %37, %38 : vector<16x1xi32>
    %c0_i32_30 = arith.constant 0 : i32
    %40 = vector.broadcast %c0_i32_30 : i32 to vector<16x1xi32>
    %41 = arith.cmpi slt, %37, %40 : vector<16x1xi32>
    %c0_i32_31 = arith.constant 0 : i32
    %42 = arith.cmpi slt, %35, %c0_i32_31 : i32
    %43 = vector.broadcast %42 : i1 to vector<16x1xi1>
    %44 = vector.broadcast %43 : vector<16x1xi1> to vector<16x1xi1>
    %45 = arith.xori %41, %44 : vector<16x1xi1>
    %46 = arith.andi %45, %39 : vector<16x1xi1>
    %47 = vector.broadcast %35 : i32 to vector<16x1xi32>
    %48 = arith.addi %37, %47 : vector<16x1xi32>
    %49 = arith.select %46, %48, %37 : vector<16x1xi1>, vector<16x1xi32>
    %c0_i32_32 = arith.constant 0 : i32
    %50 = vector.broadcast %c0_i32_32 : i32 to vector<16x1xi32>
    %51 = arith.cmpi eq, %49, %50 : vector<16x1xi32>
    %c7_i32 = arith.constant 7 : i32
    %52 = vector.broadcast %c7_i32 : i32 to vector<16x1xi32>
    %53 = arith.cmpi eq, %49, %52 : vector<16x1xi32>
    %c1_i32_33 = arith.constant 1 : i32
    %54 = tpu.dynamic_rotate %0 by %c1_i32_33 dim 0 : vector<32x4xf32>, i32 -> vector<32x4xf32>
    %cst = arith.constant 0.000000e+00 : f32
    %55 = vector.shape_cast %30 : vector<32x1xi1> to vector<32x1xi1>
    %56 = vector.broadcast %55 : vector<32x1xi1> to vector<32x4xi1>
    %57 = vector.broadcast %cst : f32 to vector<32x4xf32>
    %58 = arith.select %56, %57, %54 : vector<32x4xi1>, vector<32x4xf32>
    %c31_i32 = arith.constant 31 : i32
    %59 = tpu.dynamic_rotate %0 by %c31_i32 dim 0 : vector<32x4xf32>, i32 -> vector<32x4xf32>
    %cst_34 = arith.constant 0.000000e+00 : f32
    %60 = vector.shape_cast %32 : vector<32x1xi1> to vector<32x1xi1>
    %61 = vector.broadcast %60 : vector<32x1xi1> to vector<32x4xi1>
    %62 = vector.broadcast %cst_34 : f32 to vector<32x4xf32>
    %63 = arith.select %61, %62, %59 : vector<32x4xi1>, vector<32x4xf32>
    %64 = tpu.concatenate %58, %0, %63 in 1 : vector<32x4xf32>, vector<32x4xf32>, vector<32x4xf32> -> vector<32x12xf32>
    %cst_35 = arith.constant dense<0.000000e+00> : vector<32x32xf32>
    %65 = tpu.matmul %64, %1, %cst_35 {dimension_numbers = #tpu.dot_dimension_numbers<[1], [0], [0], [1], [0, 0, 1, 1], [], []>} : vector<32x12xf32>, vector<12x32xf32>, vector<32x32xf32> -> vector<32x32xf32>
    %66 = vector.broadcast %2 : vector<1x32xf32> to vector<32x32xf32>
    %67 = arith.addf %65, %66 : vector<32x32xf32>
    %cst_36 = arith.constant 0.000000e+00 : f32
    %68 = vector.broadcast %cst_36 : f32 to vector<32x32xf32>
    %69 = arith.maximumf %67, %68 : vector<32x32xf32>
    %c31_i32_37 = arith.constant 31 : i32
    %70 = tpu.dynamic_rotate %69 by %c31_i32_37 dim 0 : vector<32x32xf32>, i32 -> vector<32x32xf32>
    %71 = arith.maximumf %69, %70 : vector<32x32xf32>
    %c0_38 = arith.constant 0 : index
    %c0_39 = arith.constant 0 : index
    %72 = vector.load %arg16[%c0_38, %c0_39] : memref<32x32xf32, #tpu.memory_space<vmem>>, vector<32x32xf32>
    tpu.vector_store %arg16[%c0_38, %c0_39], %71 {strides = array<i32>} : memref<32x32xf32, #tpu.memory_space<vmem>>, vector<32x32xf32>,
    %c0_40 = arith.constant 0 : index
    %c0_41 = arith.constant 0 : index
    %73 = tpu.strided_load %arg16[%c0_40, %c0_41] {strides = array<i32: 2, 1>} : memref<32x32xf32, #tpu.memory_space<vmem>>, vector<16x32xf32>
    %c1_i32_42 = arith.constant 1 : i32
    %74 = tpu.dynamic_rotate %73 by %c1_i32_42 dim 0 : vector<16x32xf32>, i32 -> vector<16x32xf32>
    %cst_43 = arith.constant 0.000000e+00 : f32
    %75 = vector.shape_cast %51 : vector<16x1xi1> to vector<16x1xi1>
    %76 = vector.broadcast %75 : vector<16x1xi1> to vector<16x32xi1>
    %77 = vector.broadcast %cst_43 : f32 to vector<16x32xf32>
    %78 = arith.select %76, %77, %74 : vector<16x32xi1>, vector<16x32xf32>
    %c15_i32_44 = arith.constant 15 : i32
    %79 = tpu.dynamic_rotate %73 by %c15_i32_44 dim 0 : vector<16x32xf32>, i32 -> vector<16x32xf32>
    %cst_45 = arith.constant 0.000000e+00 : f32
    %80 = vector.shape_cast %53 : vector<16x1xi1> to vector<16x1xi1>
    %81 = vector.broadcast %80 : vector<16x1xi1> to vector<16x32xi1>
    %82 = vector.broadcast %cst_45 : f32 to vector<16x32xf32>
    %83 = arith.select %81, %82, %79 : vector<16x32xi1>, vector<16x32xf32>
    %84 = tpu.concatenate %78, %73, %83 in 1 : vector<16x32xf32>, vector<16x32xf32>, vector<16x32xf32> -> vector<16x96xf32>
    %cst_46 = arith.constant dense<0.000000e+00> : vector<16x64xf32>
    %85 = tpu.matmul %84, %3, %cst_46 {dimension_numbers = #tpu.dot_dimension_numbers<[1], [0], [0], [1], [0, 0, 1, 1], [], []>} : vector<16x96xf32>, vector<96x64xf32>, vector<16x64xf32> -> vector<16x64xf32>
    %86 = vector.broadcast %4 : vector<1x64xf32> to vector<16x64xf32>
    %87 = arith.addf %85, %86 : vector<16x64xf32>
    %cst_47 = arith.constant 0.000000e+00 : f32
    %88 = vector.broadcast %cst_47 : f32 to vector<16x64xf32>
    %89 = arith.maximumf %87, %88 : vector<16x64xf32>
    %c15_i32_48 = arith.constant 15 : i32
    %90 = tpu.dynamic_rotate %89 by %c15_i32_48 dim 0 : vector<16x64xf32>, i32 -> vector<16x64xf32>
    %91 = arith.maximumf %89, %90 : vector<16x64xf32>
    %c0_49 = arith.constant 0 : index
    %c0_50 = arith.constant 0 : index
    %92 = vector.load %arg17[%c0_49, %c0_50] : memref<16x64xf32, #tpu.memory_space<vmem>>, vector<16x64xf32>
    tpu.vector_store %arg17[%c0_49, %c0_50], %91 {strides = array<i32>} : memref<16x64xf32, #tpu.memory_space<vmem>>, vector<16x64xf32>,
    %c0_51 = arith.constant 0 : index
    %c0_52 = arith.constant 0 : index
    %93 = tpu.strided_load %arg17[%c0_51, %c0_52] {strides = array<i32: 8, 1>} : memref<16x64xf32, #tpu.memory_space<vmem>>, vector<2x64xf32>
    %c0_53 = arith.constant 0 : index
    %c0_54 = arith.constant 0 : index
    %94 = vector.load %arg18[%c0_53, %c0_54] : memref<8x64xf32, #tpu.memory_space<vmem>>, vector<2x64xf32>
    tpu.vector_store %arg18[%c0_53, %c0_54], %93 {strides = array<i32>} : memref<8x64xf32, #tpu.memory_space<vmem>>, vector<2x64xf32>,
    %c2 = arith.constant 2 : index
    %c0_55 = arith.constant 0 : index
    %95 = tpu.strided_load %arg17[%c2, %c0_55] {strides = array<i32: 8, 1>} : memref<16x64xf32, #tpu.memory_space<vmem>>, vector<2x64xf32>
    %c2_56 = arith.constant 2 : index
    %c0_57 = arith.constant 0 : index
    %96 = vector.load %arg18[%c2_56, %c0_57] : memref<8x64xf32, #tpu.memory_space<vmem>>, vector<2x64xf32>
    tpu.vector_store %arg18[%c2_56, %c0_57], %95 {strides = array<i32>} : memref<8x64xf32, #tpu.memory_space<vmem>>, vector<2x64xf32>,
    %c4 = arith.constant 4 : index
    %c0_58 = arith.constant 0 : index
    %97 = tpu.strided_load %arg17[%c4, %c0_58] {strides = array<i32: 8, 1>} : memref<16x64xf32, #tpu.memory_space<vmem>>, vector<2x64xf32>
    %c4_59 = arith.constant 4 : index
    %c0_60 = arith.constant 0 : index
    %98 = vector.load %arg18[%c4_59, %c0_60] : memref<8x64xf32, #tpu.memory_space<vmem>>, vector<2x64xf32>
    tpu.vector_store %arg18[%c4_59, %c0_60], %97 {strides = array<i32>} : memref<8x64xf32, #tpu.memory_space<vmem>>, vector<2x64xf32>,
    %c6 = arith.constant 6 : index
    %c0_61 = arith.constant 0 : index
    %99 = tpu.strided_load %arg17[%c6, %c0_61] {strides = array<i32: 8, 1>} : memref<16x64xf32, #tpu.memory_space<vmem>>, vector<2x64xf32>
    %c6_62 = arith.constant 6 : index
    %c0_63 = arith.constant 0 : index
    %100 = vector.load %arg18[%c6_62, %c0_63] : memref<8x64xf32, #tpu.memory_space<vmem>>, vector<2x64xf32>
    tpu.vector_store %arg18[%c6_62, %c0_63], %99 {strides = array<i32>} : memref<8x64xf32, #tpu.memory_space<vmem>>, vector<2x64xf32>,
    %c0_64 = arith.constant 0 : index
    %c0_65 = arith.constant 0 : index
    %c0_66 = arith.constant 0 : index
    %101 = vector.load %arg9[%c0_64, %c0_65, %c0_66] : memref<3x32x96xf32, #tpu.memory_space<vmem>>, vector<1x32x96xf32>
    %102 = vector.shape_cast %101 : vector<1x32x96xf32> to vector<32x96xf32>
    %c0_67 = arith.constant 0 : index
    %c0_68 = arith.constant 0 : index
    %103 = vector.load %arg10[%c0_67, %c0_68] : memref<6x96xf32, #tpu.memory_space<vmem>>, vector<1x96xf32>
    %c1 = arith.constant 1 : index
    %c0_69 = arith.constant 0 : index
    %104 = vector.load %arg10[%c1, %c0_69] : memref<6x96xf32, #tpu.memory_space<vmem>>, vector<1x96xf32>
    %c0_70 = arith.constant 0 : index
    %c0_71 = arith.constant 0 : index
    %105 = vector.load %arg18[%c0_70, %c0_71] : memref<8x64xf32, #tpu.memory_space<vmem>>, vector<8x64xf32>
    %cst_72 = arith.constant dense<0.000000e+00> : vector<8x96xf32>
    %106 = tpu.matmul %105, %5, %cst_72 {dimension_numbers = #tpu.dot_dimension_numbers<[1], [0], [0], [1], [0, 0, 1, 1], [], []>} : vector<8x64xf32>, vector<64x96xf32>, vector<8x96xf32> -> vector<8x96xf32>
    %107 = vector.broadcast %103 : vector<1x96xf32> to vector<8x96xf32>
    %108 = arith.addf %106, %107 : vector<8x96xf32>
    %c0_73 = arith.constant 0 : index
    %c0_74 = arith.constant 0 : index
    %109 = vector.load %arg19[%c0_73, %c0_74] : memref<8x96xf32, #tpu.memory_space<vmem>>, vector<8x96xf32>
    tpu.vector_store %arg19[%c0_73, %c0_74], %108 {strides = array<i32>} : memref<8x96xf32, #tpu.memory_space<vmem>>, vector<8x96xf32>,
    %cst_75 = arith.constant 0.000000e+00 : f32
    %110 = vector.broadcast %cst_75 : f32 to vector<2x32xf32>
    %c0_76 = arith.constant 0 : index
    %c0_77 = arith.constant 0 : index
    %111 = vector.load %arg19[%c0_76, %c0_77] : memref<8x96xf32, #tpu.memory_space<vmem>>, vector<2x96xf32>
    %cst_78 = arith.constant dense<0.000000e+00> : vector<2x96xf32>
    %112 = tpu.matmul %110, %102, %cst_78 {dimension_numbers = #tpu.dot_dimension_numbers<[1], [0], [0], [1], [0, 0, 1, 1], [], []>} : vector<2x32xf32>, vector<32x96xf32>, vector<2x96xf32> -> vector<2x96xf32>
    %113 = vector.broadcast %104 : vector<1x96xf32> to vector<2x96xf32>
    %114 = arith.addf %112, %113 : vector<2x96xf32>
    %115 = vector.extract_strided_slice %111 {offsets = [0, 0], sizes = [2, 32], strides = [1, 1]} : vector<2x96xf32> to vector<2x32xf32>
    %116 = vector.extract_strided_slice %114 {offsets = [0, 0], sizes = [2, 32], strides = [1, 1]} : vector<2x96xf32> to vector<2x32xf32>
    %117 = arith.addf %115, %116 : vector<2x32xf32>
    %118 = arith.negf %117 : vector<2x32xf32>
    %119 = math.exp %118 : vector<2x32xf32>
    %cst_79 = arith.constant 1.000000e+00 : f32
    %120 = vector.broadcast %cst_79 : f32 to vector<2x32xf32>
    %121 = arith.addf %120, %119 : vector<2x32xf32>
    %122 = arith.divf %120, %121 : vector<2x32xf32>
    %123 = vector.extract_strided_slice %111 {offsets = [0, 32], sizes = [2, 32], strides = [1, 1]} : vector<2x96xf32> to vector<2x32xf32>
    %124 = vector.extract_strided_slice %114 {offsets = [0, 32], sizes = [2, 32], strides = [1, 1]} : vector<2x96xf32> to vector<2x32xf32>
    %125 = arith.addf %123, %124 : vector<2x32xf32>
    %126 = arith.negf %125 : vector<2x32xf32>
    %127 = math.exp %126 : vector<2x32xf32>
    %cst_80 = arith.constant 1.000000e+00 : f32
    %128 = vector.broadcast %cst_80 : f32 to vector<2x32xf32>
    %129 = arith.addf %128, %127 : vector<2x32xf32>
    %130 = arith.divf %128, %129 : vector<2x32xf32>
    %131 = vector.extract_strided_slice %111 {offsets = [0, 64], sizes = [2, 32], strides = [1, 1]} : vector<2x96xf32> to vector<2x32xf32>
    %132 = vector.extract_strided_slice %114 {offsets = [0, 64], sizes = [2, 32], strides = [1, 1]} : vector<2x96xf32> to vector<2x32xf32>
    %133 = arith.mulf %122, %132 : vector<2x32xf32>
    %134 = arith.addf %131, %133 : vector<2x32xf32>
    %135 = math.tanh %134 : vector<2x32xf32>
    %cst_81 = arith.constant 1.000000e+00 : f32
    %136 = vector.broadcast %cst_81 : f32 to vector<2x32xf32>
    %137 = arith.subf %136, %130 : vector<2x32xf32>
    %138 = arith.mulf %137, %135 : vector<2x32xf32>
    %139 = arith.mulf %130, %110 : vector<2x32xf32>
    %140 = arith.addf %138, %139 : vector<2x32xf32>
    %c0_82 = arith.constant 0 : index
    %c0_83 = arith.constant 0 : index
    %141 = vector.load %arg20[%c0_82, %c0_83] : memref<8x32xf32, #tpu.memory_space<vmem>>, vector<2x32xf32>
    tpu.vector_store %arg20[%c0_82, %c0_83], %140 {strides = array<i32>} : memref<8x32xf32, #tpu.memory_space<vmem>>, vector<2x32xf32>,
    %c2_84 = arith.constant 2 : index
    %c0_85 = arith.constant 0 : index
    %142 = vector.load %arg19[%c2_84, %c0_85] : memref<8x96xf32, #tpu.memory_space<vmem>>, vector<2x96xf32>
    %cst_86 = arith.constant dense<0.000000e+00> : vector<2x96xf32>
    %143 = tpu.matmul %140, %102, %cst_86 {dimension_numbers = #tpu.dot_dimension_numbers<[1], [0], [0], [1], [0, 0, 1, 1], [], []>} : vector<2x32xf32>, vector<32x96xf32>, vector<2x96xf32> -> vector<2x96xf32>
    %144 = vector.broadcast %104 : vector<1x96xf32> to vector<2x96xf32>
    %145 = arith.addf %143, %144 : vector<2x96xf32>
    %146 = vector.extract_strided_slice %142 {offsets = [0, 0], sizes = [2, 32], strides = [1, 1]} : vector<2x96xf32> to vector<2x32xf32>
    %147 = vector.extract_strided_slice %145 {offsets = [0, 0], sizes = [2, 32], strides = [1, 1]} : vector<2x96xf32> to vector<2x32xf32>
    %148 = arith.addf %146, %147 : vector<2x32xf32>
    %149 = arith.negf %148 : vector<2x32xf32>
    %150 = math.exp %149 : vector<2x32xf32>
    %cst_87 = arith.constant 1.000000e+00 : f32
    %151 = vector.broadcast %cst_87 : f32 to vector<2x32xf32>
    %152 = arith.addf %151, %150 : vector<2x32xf32>
    %153 = arith.divf %151, %152 : vector<2x32xf32>
    %154 = vector.extract_strided_slice %142 {offsets = [0, 32], sizes = [2, 32], strides = [1, 1]} : vector<2x96xf32> to vector<2x32xf32>
    %155 = vector.extract_strided_slice %145 {offsets = [0, 32], sizes = [2, 32], strides = [1, 1]} : vector<2x96xf32> to vector<2x32xf32>
    %156 = arith.addf %154, %155 : vector<2x32xf32>
    %157 = arith.negf %156 : vector<2x32xf32>
    %158 = math.exp %157 : vector<2x32xf32>
    %cst_88 = arith.constant 1.000000e+00 : f32
    %159 = vector.broadcast %cst_88 : f32 to vector<2x32xf32>
    %160 = arith.addf %159, %158 : vector<2x32xf32>
    %161 = arith.divf %159, %160 : vector<2x32xf32>
    %162 = vector.extract_strided_slice %142 {offsets = [0, 64], sizes = [2, 32], strides = [1, 1]} : vector<2x96xf32> to vector<2x32xf32>
    %163 = vector.extract_strided_slice %145 {offsets = [0, 64], sizes = [2, 32], strides = [1, 1]} : vector<2x96xf32> to vector<2x32xf32>
    %164 = arith.mulf %153, %163 : vector<2x32xf32>
    %165 = arith.addf %162, %164 : vector<2x32xf32>
    %166 = math.tanh %165 : vector<2x32xf32>
    %cst_89 = arith.constant 1.000000e+00 : f32
    %167 = vector.broadcast %cst_89 : f32 to vector<2x32xf32>
    %168 = arith.subf %167, %161 : vector<2x32xf32>
    %169 = arith.mulf %168, %166 : vector<2x32xf32>
    %170 = arith.mulf %161, %140 : vector<2x32xf32>
    %171 = arith.addf %169, %170 : vector<2x32xf32>
    %c2_90 = arith.constant 2 : index
    %c0_91 = arith.constant 0 : index
    %172 = vector.load %arg20[%c2_90, %c0_91] : memref<8x32xf32, #tpu.memory_space<vmem>>, vector<2x32xf32>
    tpu.vector_store %arg20[%c2_90, %c0_91], %171 {strides = array<i32>} : memref<8x32xf32, #tpu.memory_space<vmem>>, vector<2x32xf32>,
    %c4_92 = arith.constant 4 : index
    %c0_93 = arith.constant 0 : index
    %173 = vector.load %arg19[%c4_92, %c0_93] : memref<8x96xf32, #tpu.memory_space<vmem>>, vector<2x96xf32>
    %cst_94 = arith.constant dense<0.000000e+00> : vector<2x96xf32>
    %174 = tpu.matmul %171, %102, %cst_94 {dimension_numbers = #tpu.dot_dimension_numbers<[1], [0], [0], [1], [0, 0, 1, 1], [], []>} : vector<2x32xf32>, vector<32x96xf32>, vector<2x96xf32> -> vector<2x96xf32>
    %175 = vector.broadcast %104 : vector<1x96xf32> to vector<2x96xf32>
    %176 = arith.addf %174, %175 : vector<2x96xf32>
    %177 = vector.extract_strided_slice %173 {offsets = [0, 0], sizes = [2, 32], strides = [1, 1]} : vector<2x96xf32> to vector<2x32xf32>
    %178 = vector.extract_strided_slice %176 {offsets = [0, 0], sizes = [2, 32], strides = [1, 1]} : vector<2x96xf32> to vector<2x32xf32>
    %179 = arith.addf %177, %178 : vector<2x32xf32>
    %180 = arith.negf %179 : vector<2x32xf32>
    %181 = math.exp %180 : vector<2x32xf32>
    %cst_95 = arith.constant 1.000000e+00 : f32
    %182 = vector.broadcast %cst_95 : f32 to vector<2x32xf32>
    %183 = arith.addf %182, %181 : vector<2x32xf32>
    %184 = arith.divf %182, %183 : vector<2x32xf32>
    %185 = vector.extract_strided_slice %173 {offsets = [0, 32], sizes = [2, 32], strides = [1, 1]} : vector<2x96xf32> to vector<2x32xf32>
    %186 = vector.extract_strided_slice %176 {offsets = [0, 32], sizes = [2, 32], strides = [1, 1]} : vector<2x96xf32> to vector<2x32xf32>
    %187 = arith.addf %185, %186 : vector<2x32xf32>
    %188 = arith.negf %187 : vector<2x32xf32>
    %189 = math.exp %188 : vector<2x32xf32>
    %cst_96 = arith.constant 1.000000e+00 : f32
    %190 = vector.broadcast %cst_96 : f32 to vector<2x32xf32>
    %191 = arith.addf %190, %189 : vector<2x32xf32>
    %192 = arith.divf %190, %191 : vector<2x32xf32>
    %193 = vector.extract_strided_slice %173 {offsets = [0, 64], sizes = [2, 32], strides = [1, 1]} : vector<2x96xf32> to vector<2x32xf32>
    %194 = vector.extract_strided_slice %176 {offsets = [0, 64], sizes = [2, 32], strides = [1, 1]} : vector<2x96xf32> to vector<2x32xf32>
    %195 = arith.mulf %184, %194 : vector<2x32xf32>
    %196 = arith.addf %193, %195 : vector<2x32xf32>
    %197 = math.tanh %196 : vector<2x32xf32>
    %cst_97 = arith.constant 1.000000e+00 : f32
    %198 = vector.broadcast %cst_97 : f32 to vector<2x32xf32>
    %199 = arith.subf %198, %192 : vector<2x32xf32>
    %200 = arith.mulf %199, %197 : vector<2x32xf32>
    %201 = arith.mulf %192, %171 : vector<2x32xf32>
    %202 = arith.addf %200, %201 : vector<2x32xf32>
    %c4_98 = arith.constant 4 : index
    %c0_99 = arith.constant 0 : index
    %203 = vector.load %arg20[%c4_98, %c0_99] : memref<8x32xf32, #tpu.memory_space<vmem>>, vector<2x32xf32>
    tpu.vector_store %arg20[%c4_98, %c0_99], %202 {strides = array<i32>} : memref<8x32xf32, #tpu.memory_space<vmem>>, vector<2x32xf32>,
    %c6_100 = arith.constant 6 : index
    %c0_101 = arith.constant 0 : index
    %204 = vector.load %arg19[%c6_100, %c0_101] : memref<8x96xf32, #tpu.memory_space<vmem>>, vector<2x96xf32>
    %cst_102 = arith.constant dense<0.000000e+00> : vector<2x96xf32>
    %205 = tpu.matmul %202, %102, %cst_102 {dimension_numbers = #tpu.dot_dimension_numbers<[1], [0], [0], [1], [0, 0, 1, 1], [], []>} : vector<2x32xf32>, vector<32x96xf32>, vector<2x96xf32> -> vector<2x96xf32>
    %206 = vector.broadcast %104 : vector<1x96xf32> to vector<2x96xf32>
    %207 = arith.addf %205, %206 : vector<2x96xf32>
    %208 = vector.extract_strided_slice %204 {offsets = [0, 0], sizes = [2, 32], strides = [1, 1]} : vector<2x96xf32> to vector<2x32xf32>
    %209 = vector.extract_strided_slice %207 {offsets = [0, 0], sizes = [2, 32], strides = [1, 1]} : vector<2x96xf32> to vector<2x32xf32>
    %210 = arith.addf %208, %209 : vector<2x32xf32>
    %211 = arith.negf %210 : vector<2x32xf32>
    %212 = math.exp %211 : vector<2x32xf32>
    %cst_103 = arith.constant 1.000000e+00 : f32
    %213 = vector.broadcast %cst_103 : f32 to vector<2x32xf32>
    %214 = arith.addf %213, %212 : vector<2x32xf32>
    %215 = arith.divf %213, %214 : vector<2x32xf32>
    %216 = vector.extract_strided_slice %204 {offsets = [0, 32], sizes = [2, 32], strides = [1, 1]} : vector<2x96xf32> to vector<2x32xf32>
    %217 = vector.extract_strided_slice %207 {offsets = [0, 32], sizes = [2, 32], strides = [1, 1]} : vector<2x96xf32> to vector<2x32xf32>
    %218 = arith.addf %216, %217 : vector<2x32xf32>
    %219 = arith.negf %218 : vector<2x32xf32>
    %220 = math.exp %219 : vector<2x32xf32>
    %cst_104 = arith.constant 1.000000e+00 : f32
    %221 = vector.broadcast %cst_104 : f32 to vector<2x32xf32>
    %222 = arith.addf %221, %220 : vector<2x32xf32>
    %223 = arith.divf %221, %222 : vector<2x32xf32>
    %224 = vector.extract_strided_slice %204 {offsets = [0, 64], sizes = [2, 32], strides = [1, 1]} : vector<2x96xf32> to vector<2x32xf32>
    %225 = vector.extract_strided_slice %207 {offsets = [0, 64], sizes = [2, 32], strides = [1, 1]} : vector<2x96xf32> to vector<2x32xf32>
    %226 = arith.mulf %215, %225 : vector<2x32xf32>
    %227 = arith.addf %224, %226 : vector<2x32xf32>
    %228 = math.tanh %227 : vector<2x32xf32>
    %cst_105 = arith.constant 1.000000e+00 : f32
    %229 = vector.broadcast %cst_105 : f32 to vector<2x32xf32>
    %230 = arith.subf %229, %223 : vector<2x32xf32>
    %231 = arith.mulf %230, %228 : vector<2x32xf32>
    %232 = arith.mulf %223, %202 : vector<2x32xf32>
    %233 = arith.addf %231, %232 : vector<2x32xf32>
    %c6_106 = arith.constant 6 : index
    %c0_107 = arith.constant 0 : index
    %234 = vector.load %arg20[%c6_106, %c0_107] : memref<8x32xf32, #tpu.memory_space<vmem>>, vector<2x32xf32>
    tpu.vector_store %arg20[%c6_106, %c0_107], %233 {strides = array<i32>} : memref<8x32xf32, #tpu.memory_space<vmem>>, vector<2x32xf32>,
    %c1_108 = arith.constant 1 : index
    %c0_109 = arith.constant 0 : index
    %c0_110 = arith.constant 0 : index
    %235 = vector.load %arg9[%c1_108, %c0_109, %c0_110] : memref<3x32x96xf32, #tpu.memory_space<vmem>>, vector<1x32x96xf32>
    %236 = vector.shape_cast %235 : vector<1x32x96xf32> to vector<32x96xf32>
    %c2_111 = arith.constant 2 : index
    %c0_112 = arith.constant 0 : index
    %237 = vector.load %arg10[%c2_111, %c0_112] : memref<6x96xf32, #tpu.memory_space<vmem>>, vector<1x96xf32>
    %c3 = arith.constant 3 : index
    %c0_113 = arith.constant 0 : index
    %238 = vector.load %arg10[%c3, %c0_113] : memref<6x96xf32, #tpu.memory_space<vmem>>, vector<1x96xf32>
    %c0_114 = arith.constant 0 : index
    %c0_115 = arith.constant 0 : index
    %239 = vector.load %arg20[%c0_114, %c0_115] : memref<8x32xf32, #tpu.memory_space<vmem>>, vector<8x32xf32>
    %cst_116 = arith.constant dense<0.000000e+00> : vector<8x96xf32>
    %240 = tpu.matmul %239, %6, %cst_116 {dimension_numbers = #tpu.dot_dimension_numbers<[1], [0], [0], [1], [0, 0, 1, 1], [], []>} : vector<8x32xf32>, vector<32x96xf32>, vector<8x96xf32> -> vector<8x96xf32>
    %241 = vector.broadcast %237 : vector<1x96xf32> to vector<8x96xf32>
    %242 = arith.addf %240, %241 : vector<8x96xf32>
    %c0_117 = arith.constant 0 : index
    %c0_118 = arith.constant 0 : index
    %243 = vector.load %arg19[%c0_117, %c0_118] : memref<8x96xf32, #tpu.memory_space<vmem>>, vector<8x96xf32>
    tpu.vector_store %arg19[%c0_117, %c0_118], %242 {strides = array<i32>} : memref<8x96xf32, #tpu.memory_space<vmem>>, vector<8x96xf32>,
    %cst_119 = arith.constant 0.000000e+00 : f32
    %244 = vector.broadcast %cst_119 : f32 to vector<2x32xf32>
    %c0_120 = arith.constant 0 : index
    %c0_121 = arith.constant 0 : index
    %245 = vector.load %arg19[%c0_120, %c0_121] : memref<8x96xf32, #tpu.memory_space<vmem>>, vector<2x96xf32>
    %cst_122 = arith.constant dense<0.000000e+00> : vector<2x96xf32>
    %246 = tpu.matmul %244, %236, %cst_122 {dimension_numbers = #tpu.dot_dimension_numbers<[1], [0], [0], [1], [0, 0, 1, 1], [], []>} : vector<2x32xf32>, vector<32x96xf32>, vector<2x96xf32> -> vector<2x96xf32>
    %247 = vector.broadcast %238 : vector<1x96xf32> to vector<2x96xf32>
    %248 = arith.addf %246, %247 : vector<2x96xf32>
    %249 = vector.extract_strided_slice %245 {offsets = [0, 0], sizes = [2, 32], strides = [1, 1]} : vector<2x96xf32> to vector<2x32xf32>
    %250 = vector.extract_strided_slice %248 {offsets = [0, 0], sizes = [2, 32], strides = [1, 1]} : vector<2x96xf32> to vector<2x32xf32>
    %251 = arith.addf %249, %250 : vector<2x32xf32>
    %252 = arith.negf %251 : vector<2x32xf32>
    %253 = math.exp %252 : vector<2x32xf32>
    %cst_123 = arith.constant 1.000000e+00 : f32
    %254 = vector.broadcast %cst_123 : f32 to vector<2x32xf32>
    %255 = arith.addf %254, %253 : vector<2x32xf32>
    %256 = arith.divf %254, %255 : vector<2x32xf32>
    %257 = vector.extract_strided_slice %245 {offsets = [0, 32], sizes = [2, 32], strides = [1, 1]} : vector<2x96xf32> to vector<2x32xf32>
    %258 = vector.extract_strided_slice %248 {offsets = [0, 32], sizes = [2, 32], strides = [1, 1]} : vector<2x96xf32> to vector<2x32xf32>
    %259 = arith.addf %257, %258 : vector<2x32xf32>
    %260 = arith.negf %259 : vector<2x32xf32>
    %261 = math.exp %260 : vector<2x32xf32>
    %cst_124 = arith.constant 1.000000e+00 : f32
    %262 = vector.broadcast %cst_124 : f32 to vector<2x32xf32>
    %263 = arith.addf %262, %261 : vector<2x32xf32>
    %264 = arith.divf %262, %263 : vector<2x32xf32>
    %265 = vector.extract_strided_slice %245 {offsets = [0, 64], sizes = [2, 32], strides = [1, 1]} : vector<2x96xf32> to vector<2x32xf32>
    %266 = vector.extract_strided_slice %248 {offsets = [0, 64], sizes = [2, 32], strides = [1, 1]} : vector<2x96xf32> to vector<2x32xf32>
    %267 = arith.mulf %256, %266 : vector<2x32xf32>
    %268 = arith.addf %265, %267 : vector<2x32xf32>
    %269 = math.tanh %268 : vector<2x32xf32>
    %cst_125 = arith.constant 1.000000e+00 : f32
    %270 = vector.broadcast %cst_125 : f32 to vector<2x32xf32>
    %271 = arith.subf %270, %264 : vector<2x32xf32>
    %272 = arith.mulf %271, %269 : vector<2x32xf32>
    %273 = arith.mulf %264, %244 : vector<2x32xf32>
    %274 = arith.addf %272, %273 : vector<2x32xf32>
    %c0_126 = arith.constant 0 : index
    %c0_127 = arith.constant 0 : index
    %275 = vector.load %arg20[%c0_126, %c0_127] : memref<8x32xf32, #tpu.memory_space<vmem>>, vector<2x32xf32>
    tpu.vector_store %arg20[%c0_126, %c0_127], %274 {strides = array<i32>} : memref<8x32xf32, #tpu.memory_space<vmem>>, vector<2x32xf32>,
    %c2_128 = arith.constant 2 : index
    %c0_129 = arith.constant 0 : index
    %276 = vector.load %arg19[%c2_128, %c0_129] : memref<8x96xf32, #tpu.memory_space<vmem>>, vector<2x96xf32>
    %cst_130 = arith.constant dense<0.000000e+00> : vector<2x96xf32>
    %277 = tpu.matmul %274, %236, %cst_130 {dimension_numbers = #tpu.dot_dimension_numbers<[1], [0], [0], [1], [0, 0, 1, 1], [], []>} : vector<2x32xf32>, vector<32x96xf32>, vector<2x96xf32> -> vector<2x96xf32>
    %278 = vector.broadcast %238 : vector<1x96xf32> to vector<2x96xf32>
    %279 = arith.addf %277, %278 : vector<2x96xf32>
    %280 = vector.extract_strided_slice %276 {offsets = [0, 0], sizes = [2, 32], strides = [1, 1]} : vector<2x96xf32> to vector<2x32xf32>
    %281 = vector.extract_strided_slice %279 {offsets = [0, 0], sizes = [2, 32], strides = [1, 1]} : vector<2x96xf32> to vector<2x32xf32>
    %282 = arith.addf %280, %281 : vector<2x32xf32>
    %283 = arith.negf %282 : vector<2x32xf32>
    %284 = math.exp %283 : vector<2x32xf32>
    %cst_131 = arith.constant 1.000000e+00 : f32
    %285 = vector.broadcast %cst_131 : f32 to vector<2x32xf32>
    %286 = arith.addf %285, %284 : vector<2x32xf32>
    %287 = arith.divf %285, %286 : vector<2x32xf32>
    %288 = vector.extract_strided_slice %276 {offsets = [0, 32], sizes = [2, 32], strides = [1, 1]} : vector<2x96xf32> to vector<2x32xf32>
    %289 = vector.extract_strided_slice %279 {offsets = [0, 32], sizes = [2, 32], strides = [1, 1]} : vector<2x96xf32> to vector<2x32xf32>
    %290 = arith.addf %288, %289 : vector<2x32xf32>
    %291 = arith.negf %290 : vector<2x32xf32>
    %292 = math.exp %291 : vector<2x32xf32>
    %cst_132 = arith.constant 1.000000e+00 : f32
    %293 = vector.broadcast %cst_132 : f32 to vector<2x32xf32>
    %294 = arith.addf %293, %292 : vector<2x32xf32>
    %295 = arith.divf %293, %294 : vector<2x32xf32>
    %296 = vector.extract_strided_slice %276 {offsets = [0, 64], sizes = [2, 32], strides = [1, 1]} : vector<2x96xf32> to vector<2x32xf32>
    %297 = vector.extract_strided_slice %279 {offsets = [0, 64], sizes = [2, 32], strides = [1, 1]} : vector<2x96xf32> to vector<2x32xf32>
    %298 = arith.mulf %287, %297 : vector<2x32xf32>
    %299 = arith.addf %296, %298 : vector<2x32xf32>
    %300 = math.tanh %299 : vector<2x32xf32>
    %cst_133 = arith.constant 1.000000e+00 : f32
    %301 = vector.broadcast %cst_133 : f32 to vector<2x32xf32>
    %302 = arith.subf %301, %295 : vector<2x32xf32>
    %303 = arith.mulf %302, %300 : vector<2x32xf32>
    %304 = arith.mulf %295, %274 : vector<2x32xf32>
    %305 = arith.addf %303, %304 : vector<2x32xf32>
    %c2_134 = arith.constant 2 : index
    %c0_135 = arith.constant 0 : index
    %306 = vector.load %arg20[%c2_134, %c0_135] : memref<8x32xf32, #tpu.memory_space<vmem>>, vector<2x32xf32>
    tpu.vector_store %arg20[%c2_134, %c0_135], %305 {strides = array<i32>} : memref<8x32xf32, #tpu.memory_space<vmem>>, vector<2x32xf32>,
    %c4_136 = arith.constant 4 : index
    %c0_137 = arith.constant 0 : index
    %307 = vector.load %arg19[%c4_136, %c0_137] : memref<8x96xf32, #tpu.memory_space<vmem>>, vector<2x96xf32>
    %cst_138 = arith.constant dense<0.000000e+00> : vector<2x96xf32>
    %308 = tpu.matmul %305, %236, %cst_138 {dimension_numbers = #tpu.dot_dimension_numbers<[1], [0], [0], [1], [0, 0, 1, 1], [], []>} : vector<2x32xf32>, vector<32x96xf32>, vector<2x96xf32> -> vector<2x96xf32>
    %309 = vector.broadcast %238 : vector<1x96xf32> to vector<2x96xf32>
    %310 = arith.addf %308, %309 : vector<2x96xf32>
    %311 = vector.extract_strided_slice %307 {offsets = [0, 0], sizes = [2, 32], strides = [1, 1]} : vector<2x96xf32> to vector<2x32xf32>
    %312 = vector.extract_strided_slice %310 {offsets = [0, 0], sizes = [2, 32], strides = [1, 1]} : vector<2x96xf32> to vector<2x32xf32>
    %313 = arith.addf %311, %312 : vector<2x32xf32>
    %314 = arith.negf %313 : vector<2x32xf32>
    %315 = math.exp %314 : vector<2x32xf32>
    %cst_139 = arith.constant 1.000000e+00 : f32
    %316 = vector.broadcast %cst_139 : f32 to vector<2x32xf32>
    %317 = arith.addf %316, %315 : vector<2x32xf32>
    %318 = arith.divf %316, %317 : vector<2x32xf32>
    %319 = vector.extract_strided_slice %307 {offsets = [0, 32], sizes = [2, 32], strides = [1, 1]} : vector<2x96xf32> to vector<2x32xf32>
    %320 = vector.extract_strided_slice %310 {offsets = [0, 32], sizes = [2, 32], strides = [1, 1]} : vector<2x96xf32> to vector<2x32xf32>
    %321 = arith.addf %319, %320 : vector<2x32xf32>
    %322 = arith.negf %321 : vector<2x32xf32>
    %323 = math.exp %322 : vector<2x32xf32>
    %cst_140 = arith.constant 1.000000e+00 : f32
    %324 = vector.broadcast %cst_140 : f32 to vector<2x32xf32>
    %325 = arith.addf %324, %323 : vector<2x32xf32>
    %326 = arith.divf %324, %325 : vector<2x32xf32>
    %327 = vector.extract_strided_slice %307 {offsets = [0, 64], sizes = [2, 32], strides = [1, 1]} : vector<2x96xf32> to vector<2x32xf32>
    %328 = vector.extract_strided_slice %310 {offsets = [0, 64], sizes = [2, 32], strides = [1, 1]} : vector<2x96xf32> to vector<2x32xf32>
    %329 = arith.mulf %318, %328 : vector<2x32xf32>
    %330 = arith.addf %327, %329 : vector<2x32xf32>
    %331 = math.tanh %330 : vector<2x32xf32>
    %cst_141 = arith.constant 1.000000e+00 : f32
    %332 = vector.broadcast %cst_141 : f32 to vector<2x32xf32>
    %333 = arith.subf %332, %326 : vector<2x32xf32>
    %334 = arith.mulf %333, %331 : vector<2x32xf32>
    %335 = arith.mulf %326, %305 : vector<2x32xf32>
    %336 = arith.addf %334, %335 : vector<2x32xf32>
    %c4_142 = arith.constant 4 : index
    %c0_143 = arith.constant 0 : index
    %337 = vector.load %arg20[%c4_142, %c0_143] : memref<8x32xf32, #tpu.memory_space<vmem>>, vector<2x32xf32>
    tpu.vector_store %arg20[%c4_142, %c0_143], %336 {strides = array<i32>} : memref<8x32xf32, #tpu.memory_space<vmem>>, vector<2x32xf32>,
    %c6_144 = arith.constant 6 : index
    %c0_145 = arith.constant 0 : index
    %338 = vector.load %arg19[%c6_144, %c0_145] : memref<8x96xf32, #tpu.memory_space<vmem>>, vector<2x96xf32>
    %cst_146 = arith.constant dense<0.000000e+00> : vector<2x96xf32>
    %339 = tpu.matmul %336, %236, %cst_146 {dimension_numbers = #tpu.dot_dimension_numbers<[1], [0], [0], [1], [0, 0, 1, 1], [], []>} : vector<2x32xf32>, vector<32x96xf32>, vector<2x96xf32> -> vector<2x96xf32>
    %340 = vector.broadcast %238 : vector<1x96xf32> to vector<2x96xf32>
    %341 = arith.addf %339, %340 : vector<2x96xf32>
    %342 = vector.extract_strided_slice %338 {offsets = [0, 0], sizes = [2, 32], strides = [1, 1]} : vector<2x96xf32> to vector<2x32xf32>
    %343 = vector.extract_strided_slice %341 {offsets = [0, 0], sizes = [2, 32], strides = [1, 1]} : vector<2x96xf32> to vector<2x32xf32>
    %344 = arith.addf %342, %343 : vector<2x32xf32>
    %345 = arith.negf %344 : vector<2x32xf32>
    %346 = math.exp %345 : vector<2x32xf32>
    %cst_147 = arith.constant 1.000000e+00 : f32
    %347 = vector.broadcast %cst_147 : f32 to vector<2x32xf32>
    %348 = arith.addf %347, %346 : vector<2x32xf32>
    %349 = arith.divf %347, %348 : vector<2x32xf32>
    %350 = vector.extract_strided_slice %338 {offsets = [0, 32], sizes = [2, 32], strides = [1, 1]} : vector<2x96xf32> to vector<2x32xf32>
    %351 = vector.extract_strided_slice %341 {offsets = [0, 32], sizes = [2, 32], strides = [1, 1]} : vector<2x96xf32> to vector<2x32xf32>
    %352 = arith.addf %350, %351 : vector<2x32xf32>
    %353 = arith.negf %352 : vector<2x32xf32>
    %354 = math.exp %353 : vector<2x32xf32>
    %cst_148 = arith.constant 1.000000e+00 : f32
    %355 = vector.broadcast %cst_148 : f32 to vector<2x32xf32>
    %356 = arith.addf %355, %354 : vector<2x32xf32>
    %357 = arith.divf %355, %356 : vector<2x32xf32>
    %358 = vector.extract_strided_slice %338 {offsets = [0, 64], sizes = [2, 32], strides = [1, 1]} : vector<2x96xf32> to vector<2x32xf32>
    %359 = vector.extract_strided_slice %341 {offsets = [0, 64], sizes = [2, 32], strides = [1, 1]} : vector<2x96xf32> to vector<2x32xf32>
    %360 = arith.mulf %349, %359 : vector<2x32xf32>
    %361 = arith.addf %358, %360 : vector<2x32xf32>
    %362 = math.tanh %361 : vector<2x32xf32>
    %cst_149 = arith.constant 1.000000e+00 : f32
    %363 = vector.broadcast %cst_149 : f32 to vector<2x32xf32>
    %364 = arith.subf %363, %357 : vector<2x32xf32>
    %365 = arith.mulf %364, %362 : vector<2x32xf32>
    %366 = arith.mulf %357, %336 : vector<2x32xf32>
    %367 = arith.addf %365, %366 : vector<2x32xf32>
    %c6_150 = arith.constant 6 : index
    %c0_151 = arith.constant 0 : index
    %368 = vector.load %arg20[%c6_150, %c0_151] : memref<8x32xf32, #tpu.memory_space<vmem>>, vector<2x32xf32>
    tpu.vector_store %arg20[%c6_150, %c0_151], %367 {strides = array<i32>} : memref<8x32xf32, #tpu.memory_space<vmem>>, vector<2x32xf32>,
    %c2_152 = arith.constant 2 : index
    %c0_153 = arith.constant 0 : index
    %c0_154 = arith.constant 0 : index
    %369 = vector.load %arg9[%c2_152, %c0_153, %c0_154] : memref<3x32x96xf32, #tpu.memory_space<vmem>>, vector<1x32x96xf32>
    %370 = vector.shape_cast %369 : vector<1x32x96xf32> to vector<32x96xf32>
    %c4_155 = arith.constant 4 : index
    %c0_156 = arith.constant 0 : index
    %371 = vector.load %arg10[%c4_155, %c0_156] : memref<6x96xf32, #tpu.memory_space<vmem>>, vector<1x96xf32>
    %c5 = arith.constant 5 : index
    %c0_157 = arith.constant 0 : index
    %372 = vector.load %arg10[%c5, %c0_157] : memref<6x96xf32, #tpu.memory_space<vmem>>, vector<1x96xf32>
    %c0_158 = arith.constant 0 : index
    %c0_159 = arith.constant 0 : index
    %373 = vector.load %arg20[%c0_158, %c0_159] : memref<8x32xf32, #tpu.memory_space<vmem>>, vector<8x32xf32>
    %cst_160 = arith.constant dense<0.000000e+00> : vector<8x96xf32>
    %374 = tpu.matmul %373, %7, %cst_160 {dimension_numbers = #tpu.dot_dimension_numbers<[1], [0], [0], [1], [0, 0, 1, 1], [], []>} : vector<8x32xf32>, vector<32x96xf32>, vector<8x96xf32> -> vector<8x96xf32>
    %375 = vector.broadcast %371 : vector<1x96xf32> to vector<8x96xf32>
    %376 = arith.addf %374, %375 : vector<8x96xf32>
    %c0_161 = arith.constant 0 : index
    %c0_162 = arith.constant 0 : index
    %377 = vector.load %arg19[%c0_161, %c0_162] : memref<8x96xf32, #tpu.memory_space<vmem>>, vector<8x96xf32>
    tpu.vector_store %arg19[%c0_161, %c0_162], %376 {strides = array<i32>} : memref<8x96xf32, #tpu.memory_space<vmem>>, vector<8x96xf32>,
    %cst_163 = arith.constant 0.000000e+00 : f32
    %378 = vector.broadcast %cst_163 : f32 to vector<2x32xf32>
    %c0_164 = arith.constant 0 : index
    %c0_165 = arith.constant 0 : index
    %379 = vector.load %arg19[%c0_164, %c0_165] : memref<8x96xf32, #tpu.memory_space<vmem>>, vector<2x96xf32>
    %cst_166 = arith.constant dense<0.000000e+00> : vector<2x96xf32>
    %380 = tpu.matmul %378, %370, %cst_166 {dimension_numbers = #tpu.dot_dimension_numbers<[1], [0], [0], [1], [0, 0, 1, 1], [], []>} : vector<2x32xf32>, vector<32x96xf32>, vector<2x96xf32> -> vector<2x96xf32>
    %381 = vector.broadcast %372 : vector<1x96xf32> to vector<2x96xf32>
    %382 = arith.addf %380, %381 : vector<2x96xf32>
    %383 = vector.extract_strided_slice %379 {offsets = [0, 0], sizes = [2, 32], strides = [1, 1]} : vector<2x96xf32> to vector<2x32xf32>
    %384 = vector.extract_strided_slice %382 {offsets = [0, 0], sizes = [2, 32], strides = [1, 1]} : vector<2x96xf32> to vector<2x32xf32>
    %385 = arith.addf %383, %384 : vector<2x32xf32>
    %386 = arith.negf %385 : vector<2x32xf32>
    %387 = math.exp %386 : vector<2x32xf32>
    %cst_167 = arith.constant 1.000000e+00 : f32
    %388 = vector.broadcast %cst_167 : f32 to vector<2x32xf32>
    %389 = arith.addf %388, %387 : vector<2x32xf32>
    %390 = arith.divf %388, %389 : vector<2x32xf32>
    %391 = vector.extract_strided_slice %379 {offsets = [0, 32], sizes = [2, 32], strides = [1, 1]} : vector<2x96xf32> to vector<2x32xf32>
    %392 = vector.extract_strided_slice %382 {offsets = [0, 32], sizes = [2, 32], strides = [1, 1]} : vector<2x96xf32> to vector<2x32xf32>
    %393 = arith.addf %391, %392 : vector<2x32xf32>
    %394 = arith.negf %393 : vector<2x32xf32>
    %395 = math.exp %394 : vector<2x32xf32>
    %cst_168 = arith.constant 1.000000e+00 : f32
    %396 = vector.broadcast %cst_168 : f32 to vector<2x32xf32>
    %397 = arith.addf %396, %395 : vector<2x32xf32>
    %398 = arith.divf %396, %397 : vector<2x32xf32>
    %399 = vector.extract_strided_slice %379 {offsets = [0, 64], sizes = [2, 32], strides = [1, 1]} : vector<2x96xf32> to vector<2x32xf32>
    %400 = vector.extract_strided_slice %382 {offsets = [0, 64], sizes = [2, 32], strides = [1, 1]} : vector<2x96xf32> to vector<2x32xf32>
    %401 = arith.mulf %390, %400 : vector<2x32xf32>
    %402 = arith.addf %399, %401 : vector<2x32xf32>
    %403 = math.tanh %402 : vector<2x32xf32>
    %cst_169 = arith.constant 1.000000e+00 : f32
    %404 = vector.broadcast %cst_169 : f32 to vector<2x32xf32>
    %405 = arith.subf %404, %398 : vector<2x32xf32>
    %406 = arith.mulf %405, %403 : vector<2x32xf32>
    %407 = arith.mulf %398, %378 : vector<2x32xf32>
    %408 = arith.addf %406, %407 : vector<2x32xf32>
    %c2_170 = arith.constant 2 : index
    %c0_171 = arith.constant 0 : index
    %409 = vector.load %arg19[%c2_170, %c0_171] : memref<8x96xf32, #tpu.memory_space<vmem>>, vector<2x96xf32>
    %cst_172 = arith.constant dense<0.000000e+00> : vector<2x96xf32>
    %410 = tpu.matmul %408, %370, %cst_172 {dimension_numbers = #tpu.dot_dimension_numbers<[1], [0], [0], [1], [0, 0, 1, 1], [], []>} : vector<2x32xf32>, vector<32x96xf32>, vector<2x96xf32> -> vector<2x96xf32>
    %411 = vector.broadcast %372 : vector<1x96xf32> to vector<2x96xf32>
    %412 = arith.addf %410, %411 : vector<2x96xf32>
    %413 = vector.extract_strided_slice %409 {offsets = [0, 0], sizes = [2, 32], strides = [1, 1]} : vector<2x96xf32> to vector<2x32xf32>
    %414 = vector.extract_strided_slice %412 {offsets = [0, 0], sizes = [2, 32], strides = [1, 1]} : vector<2x96xf32> to vector<2x32xf32>
    %415 = arith.addf %413, %414 : vector<2x32xf32>
    %416 = arith.negf %415 : vector<2x32xf32>
    %417 = math.exp %416 : vector<2x32xf32>
    %cst_173 = arith.constant 1.000000e+00 : f32
    %418 = vector.broadcast %cst_173 : f32 to vector<2x32xf32>
    %419 = arith.addf %418, %417 : vector<2x32xf32>
    %420 = arith.divf %418, %419 : vector<2x32xf32>
    %421 = vector.extract_strided_slice %409 {offsets = [0, 32], sizes = [2, 32], strides = [1, 1]} : vector<2x96xf32> to vector<2x32xf32>
    %422 = vector.extract_strided_slice %412 {offsets = [0, 32], sizes = [2, 32], strides = [1, 1]} : vector<2x96xf32> to vector<2x32xf32>
    %423 = arith.addf %421, %422 : vector<2x32xf32>
    %424 = arith.negf %423 : vector<2x32xf32>
    %425 = math.exp %424 : vector<2x32xf32>
    %cst_174 = arith.constant 1.000000e+00 : f32
    %426 = vector.broadcast %cst_174 : f32 to vector<2x32xf32>
    %427 = arith.addf %426, %425 : vector<2x32xf32>
    %428 = arith.divf %426, %427 : vector<2x32xf32>
    %429 = vector.extract_strided_slice %409 {offsets = [0, 64], sizes = [2, 32], strides = [1, 1]} : vector<2x96xf32> to vector<2x32xf32>
    %430 = vector.extract_strided_slice %412 {offsets = [0, 64], sizes = [2, 32], strides = [1, 1]} : vector<2x96xf32> to vector<2x32xf32>
    %431 = arith.mulf %420, %430 : vector<2x32xf32>
    %432 = arith.addf %429, %431 : vector<2x32xf32>
    %433 = math.tanh %432 : vector<2x32xf32>
    %cst_175 = arith.constant 1.000000e+00 : f32
    %434 = vector.broadcast %cst_175 : f32 to vector<2x32xf32>
    %435 = arith.subf %434, %428 : vector<2x32xf32>
    %436 = arith.mulf %435, %433 : vector<2x32xf32>
    %437 = arith.mulf %428, %408 : vector<2x32xf32>
    %438 = arith.addf %436, %437 : vector<2x32xf32>
    %c4_176 = arith.constant 4 : index
    %c0_177 = arith.constant 0 : index
    %439 = vector.load %arg19[%c4_176, %c0_177] : memref<8x96xf32, #tpu.memory_space<vmem>>, vector<2x96xf32>
    %cst_178 = arith.constant dense<0.000000e+00> : vector<2x96xf32>
    %440 = tpu.matmul %438, %370, %cst_178 {dimension_numbers = #tpu.dot_dimension_numbers<[1], [0], [0], [1], [0, 0, 1, 1], [], []>} : vector<2x32xf32>, vector<32x96xf32>, vector<2x96xf32> -> vector<2x96xf32>
    %441 = vector.broadcast %372 : vector<1x96xf32> to vector<2x96xf32>
    %442 = arith.addf %440, %441 : vector<2x96xf32>
    %443 = vector.extract_strided_slice %439 {offsets = [0, 0], sizes = [2, 32], strides = [1, 1]} : vector<2x96xf32> to vector<2x32xf32>
    %444 = vector.extract_strided_slice %442 {offsets = [0, 0], sizes = [2, 32], strides = [1, 1]} : vector<2x96xf32> to vector<2x32xf32>
    %445 = arith.addf %443, %444 : vector<2x32xf32>
    %446 = arith.negf %445 : vector<2x32xf32>
    %447 = math.exp %446 : vector<2x32xf32>
    %cst_179 = arith.constant 1.000000e+00 : f32
    %448 = vector.broadcast %cst_179 : f32 to vector<2x32xf32>
    %449 = arith.addf %448, %447 : vector<2x32xf32>
    %450 = arith.divf %448, %449 : vector<2x32xf32>
    %451 = vector.extract_strided_slice %439 {offsets = [0, 32], sizes = [2, 32], strides = [1, 1]} : vector<2x96xf32> to vector<2x32xf32>
    %452 = vector.extract_strided_slice %442 {offsets = [0, 32], sizes = [2, 32], strides = [1, 1]} : vector<2x96xf32> to vector<2x32xf32>
    %453 = arith.addf %451, %452 : vector<2x32xf32>
    %454 = arith.negf %453 : vector<2x32xf32>
    %455 = math.exp %454 : vector<2x32xf32>
    %cst_180 = arith.constant 1.000000e+00 : f32
    %456 = vector.broadcast %cst_180 : f32 to vector<2x32xf32>
    %457 = arith.addf %456, %455 : vector<2x32xf32>
    %458 = arith.divf %456, %457 : vector<2x32xf32>
    %459 = vector.extract_strided_slice %439 {offsets = [0, 64], sizes = [2, 32], strides = [1, 1]} : vector<2x96xf32> to vector<2x32xf32>
    %460 = vector.extract_strided_slice %442 {offsets = [0, 64], sizes = [2, 32], strides = [1, 1]} : vector<2x96xf32> to vector<2x32xf32>
    %461 = arith.mulf %450, %460 : vector<2x32xf32>
    %462 = arith.addf %459, %461 : vector<2x32xf32>
    %463 = math.tanh %462 : vector<2x32xf32>
    %cst_181 = arith.constant 1.000000e+00 : f32
    %464 = vector.broadcast %cst_181 : f32 to vector<2x32xf32>
    %465 = arith.subf %464, %458 : vector<2x32xf32>
    %466 = arith.mulf %465, %463 : vector<2x32xf32>
    %467 = arith.mulf %458, %438 : vector<2x32xf32>
    %468 = arith.addf %466, %467 : vector<2x32xf32>
    %c6_182 = arith.constant 6 : index
    %c0_183 = arith.constant 0 : index
    %469 = vector.load %arg19[%c6_182, %c0_183] : memref<8x96xf32, #tpu.memory_space<vmem>>, vector<2x96xf32>
    %cst_184 = arith.constant dense<0.000000e+00> : vector<2x96xf32>
    %470 = tpu.matmul %468, %370, %cst_184 {dimension_numbers = #tpu.dot_dimension_numbers<[1], [0], [0], [1], [0, 0, 1, 1], [], []>} : vector<2x32xf32>, vector<32x96xf32>, vector<2x96xf32> -> vector<2x96xf32>
    %471 = vector.broadcast %372 : vector<1x96xf32> to vector<2x96xf32>
    %472 = arith.addf %470, %471 : vector<2x96xf32>
    %473 = vector.extract_strided_slice %469 {offsets = [0, 0], sizes = [2, 32], strides = [1, 1]} : vector<2x96xf32> to vector<2x32xf32>
    %474 = vector.extract_strided_slice %472 {offsets = [0, 0], sizes = [2, 32], strides = [1, 1]} : vector<2x96xf32> to vector<2x32xf32>
    %475 = arith.addf %473, %474 : vector<2x32xf32>
    %476 = arith.negf %475 : vector<2x32xf32>
    %477 = math.exp %476 : vector<2x32xf32>
    %cst_185 = arith.constant 1.000000e+00 : f32
    %478 = vector.broadcast %cst_185 : f32 to vector<2x32xf32>
    %479 = arith.addf %478, %477 : vector<2x32xf32>
    %480 = arith.divf %478, %479 : vector<2x32xf32>
    %481 = vector.extract_strided_slice %469 {offsets = [0, 32], sizes = [2, 32], strides = [1, 1]} : vector<2x96xf32> to vector<2x32xf32>
    %482 = vector.extract_strided_slice %472 {offsets = [0, 32], sizes = [2, 32], strides = [1, 1]} : vector<2x96xf32> to vector<2x32xf32>
    %483 = arith.addf %481, %482 : vector<2x32xf32>
    %484 = arith.negf %483 : vector<2x32xf32>
    %485 = math.exp %484 : vector<2x32xf32>
    %cst_186 = arith.constant 1.000000e+00 : f32
    %486 = vector.broadcast %cst_186 : f32 to vector<2x32xf32>
    %487 = arith.addf %486, %485 : vector<2x32xf32>
    %488 = arith.divf %486, %487 : vector<2x32xf32>
    %489 = vector.extract_strided_slice %469 {offsets = [0, 64], sizes = [2, 32], strides = [1, 1]} : vector<2x96xf32> to vector<2x32xf32>
    %490 = vector.extract_strided_slice %472 {offsets = [0, 64], sizes = [2, 32], strides = [1, 1]} : vector<2x96xf32> to vector<2x32xf32>
    %491 = arith.mulf %480, %490 : vector<2x32xf32>
    %492 = arith.addf %489, %491 : vector<2x32xf32>
    %493 = math.tanh %492 : vector<2x32xf32>
    %cst_187 = arith.constant 1.000000e+00 : f32
    %494 = vector.broadcast %cst_187 : f32 to vector<2x32xf32>
    %495 = arith.subf %494, %488 : vector<2x32xf32>
    %496 = arith.mulf %495, %493 : vector<2x32xf32>
    %497 = arith.mulf %488, %468 : vector<2x32xf32>
    %498 = arith.addf %496, %497 : vector<2x32xf32>
    %cst_188 = arith.constant dense<0.000000e+00> : vector<2x32xf32>
    %499 = tpu.matmul %498, %8, %cst_188 {dimension_numbers = #tpu.dot_dimension_numbers<[1], [0], [0], [1], [0, 0, 1, 1], [], []>} : vector<2x32xf32>, vector<32x32xf32>, vector<2x32xf32> -> vector<2x32xf32>
    %500 = vector.broadcast %9 : vector<1x32xf32> to vector<2x32xf32>
    %501 = arith.addf %499, %500 : vector<2x32xf32>
    %cst_189 = arith.constant 0.000000e+00 : f32
    %502 = vector.broadcast %cst_189 : f32 to vector<2x32xf32>
    %503 = arith.maximumf %501, %502 : vector<2x32xf32>
    %c0_190 = arith.constant 0 : index
    %c0_191 = arith.constant 0 : index
    %504 = vector.load %arg21[%c0_190, %c0_191] : memref<48x32xf32, #tpu.memory_space<vmem>>, vector<2x32xf32>
    tpu.vector_store %arg21[%c0_190, %c0_191], %503 {strides = array<i32>} : memref<48x32xf32, #tpu.memory_space<vmem>>, vector<2x32xf32>,
    %cst_192 = arith.constant dense<0.000000e+00> : vector<2x32xf32>
    %505 = tpu.matmul %503, %8, %cst_192 {dimension_numbers = #tpu.dot_dimension_numbers<[1], [0], [0], [1], [0, 0, 1, 1], [], []>} : vector<2x32xf32>, vector<32x32xf32>, vector<2x32xf32> -> vector<2x32xf32>
    %506 = vector.broadcast %9 : vector<1x32xf32> to vector<2x32xf32>
    %507 = arith.addf %505, %506 : vector<2x32xf32>
    %cst_193 = arith.constant 0.000000e+00 : f32
    %508 = vector.broadcast %cst_193 : f32 to vector<2x32xf32>
    %509 = arith.maximumf %507, %508 : vector<2x32xf32>
    %c2_194 = arith.constant 2 : index
    %c0_195 = arith.constant 0 : index
    %510 = vector.load %arg21[%c2_194, %c0_195] : memref<48x32xf32, #tpu.memory_space<vmem>>, vector<2x32xf32>
    tpu.vector_store %arg21[%c2_194, %c0_195], %509 {strides = array<i32>} : memref<48x32xf32, #tpu.memory_space<vmem>>, vector<2x32xf32>,
    %cst_196 = arith.constant dense<0.000000e+00> : vector<2x32xf32>
    %511 = tpu.matmul %509, %8, %cst_196 {dimension_numbers = #tpu.dot_dimension_numbers<[1], [0], [0], [1], [0, 0, 1, 1], [], []>} : vector<2x32xf32>, vector<32x32xf32>, vector<2x32xf32> -> vector<2x32xf32>
    %512 = vector.broadcast %9 : vector<1x32xf32> to vector<2x32xf32>
    %513 = arith.addf %511, %512 : vector<2x32xf32>
    %cst_197 = arith.constant 0.000000e+00 : f32
    %514 = vector.broadcast %cst_197 : f32 to vector<2x32xf32>
    %515 = arith.maximumf %513, %514 : vector<2x32xf32>
    %c4_198 = arith.constant 4 : index
    %c0_199 = arith.constant 0 : index
    %516 = vector.load %arg21[%c4_198, %c0_199] : memref<48x32xf32, #tpu.memory_space<vmem>>, vector<2x32xf32>
    tpu.vector_store %arg21[%c4_198, %c0_199], %515 {strides = array<i32>} : memref<48x32xf32, #tpu.memory_space<vmem>>, vector<2x32xf32>,
    %cst_200 = arith.constant dense<0.000000e+00> : vector<2x32xf32>
    %517 = tpu.matmul %515, %8, %cst_200 {dimension_numbers = #tpu.dot_dimension_numbers<[1], [0], [0], [1], [0, 0, 1, 1], [], []>} : vector<2x32xf32>, vector<32x32xf32>, vector<2x32xf32> -> vector<2x32xf32>
    %518 = vector.broadcast %9 : vector<1x32xf32> to vector<2x32xf32>
    %519 = arith.addf %517, %518 : vector<2x32xf32>
    %cst_201 = arith.constant 0.000000e+00 : f32
    %520 = vector.broadcast %cst_201 : f32 to vector<2x32xf32>
    %521 = arith.maximumf %519, %520 : vector<2x32xf32>
    %c6_202 = arith.constant 6 : index
    %c0_203 = arith.constant 0 : index
    %522 = vector.load %arg21[%c6_202, %c0_203] : memref<48x32xf32, #tpu.memory_space<vmem>>, vector<2x32xf32>
    tpu.vector_store %arg21[%c6_202, %c0_203], %521 {strides = array<i32>} : memref<48x32xf32, #tpu.memory_space<vmem>>, vector<2x32xf32>,
    %cst_204 = arith.constant dense<0.000000e+00> : vector<2x32xf32>
    %523 = tpu.matmul %521, %8, %cst_204 {dimension_numbers = #tpu.dot_dimension_numbers<[1], [0], [0], [1], [0, 0, 1, 1], [], []>} : vector<2x32xf32>, vector<32x32xf32>, vector<2x32xf32> -> vector<2x32xf32>
    %524 = vector.broadcast %9 : vector<1x32xf32> to vector<2x32xf32>
    %525 = arith.addf %523, %524 : vector<2x32xf32>
    %cst_205 = arith.constant 0.000000e+00 : f32
    %526 = vector.broadcast %cst_205 : f32 to vector<2x32xf32>
    %527 = arith.maximumf %525, %526 : vector<2x32xf32>
    %c8 = arith.constant 8 : index
    %c0_206 = arith.constant 0 : index
    %528 = vector.load %arg21[%c8, %c0_206] : memref<48x32xf32, #tpu.memory_space<vmem>>, vector<2x32xf32>
    tpu.vector_store %arg21[%c8, %c0_206], %527 {strides = array<i32>} : memref<48x32xf32, #tpu.memory_space<vmem>>, vector<2x32xf32>,
    %cst_207 = arith.constant dense<0.000000e+00> : vector<2x32xf32>
    %529 = tpu.matmul %527, %8, %cst_207 {dimension_numbers = #tpu.dot_dimension_numbers<[1], [0], [0], [1], [0, 0, 1, 1], [], []>} : vector<2x32xf32>, vector<32x32xf32>, vector<2x32xf32> -> vector<2x32xf32>
    %530 = vector.broadcast %9 : vector<1x32xf32> to vector<2x32xf32>
    %531 = arith.addf %529, %530 : vector<2x32xf32>
    %cst_208 = arith.constant 0.000000e+00 : f32
    %532 = vector.broadcast %cst_208 : f32 to vector<2x32xf32>
    %533 = arith.maximumf %531, %532 : vector<2x32xf32>
    %c10 = arith.constant 10 : index
    %c0_209 = arith.constant 0 : index
    %534 = vector.load %arg21[%c10, %c0_209] : memref<48x32xf32, #tpu.memory_space<vmem>>, vector<2x32xf32>
    tpu.vector_store %arg21[%c10, %c0_209], %533 {strides = array<i32>} : memref<48x32xf32, #tpu.memory_space<vmem>>, vector<2x32xf32>,
    %cst_210 = arith.constant dense<0.000000e+00> : vector<2x32xf32>
    %535 = tpu.matmul %533, %8, %cst_210 {dimension_numbers = #tpu.dot_dimension_numbers<[1], [0], [0], [1], [0, 0, 1, 1], [], []>} : vector<2x32xf32>, vector<32x32xf32>, vector<2x32xf32> -> vector<2x32xf32>
    %536 = vector.broadcast %9 : vector<1x32xf32> to vector<2x32xf32>
    %537 = arith.addf %535, %536 : vector<2x32xf32>
    %cst_211 = arith.constant 0.000000e+00 : f32
    %538 = vector.broadcast %cst_211 : f32 to vector<2x32xf32>
    %539 = arith.maximumf %537, %538 : vector<2x32xf32>
    %c12 = arith.constant 12 : index
    %c0_212 = arith.constant 0 : index
    %540 = vector.load %arg21[%c12, %c0_212] : memref<48x32xf32, #tpu.memory_space<vmem>>, vector<2x32xf32>
    tpu.vector_store %arg21[%c12, %c0_212], %539 {strides = array<i32>} : memref<48x32xf32, #tpu.memory_space<vmem>>, vector<2x32xf32>,
    %cst_213 = arith.constant dense<0.000000e+00> : vector<2x32xf32>
    %541 = tpu.matmul %539, %8, %cst_213 {dimension_numbers = #tpu.dot_dimension_numbers<[1], [0], [0], [1], [0, 0, 1, 1], [], []>} : vector<2x32xf32>, vector<32x32xf32>, vector<2x32xf32> -> vector<2x32xf32>
    %542 = vector.broadcast %9 : vector<1x32xf32> to vector<2x32xf32>
    %543 = arith.addf %541, %542 : vector<2x32xf32>
    %cst_214 = arith.constant 0.000000e+00 : f32
    %544 = vector.broadcast %cst_214 : f32 to vector<2x32xf32>
    %545 = arith.maximumf %543, %544 : vector<2x32xf32>
    %c14 = arith.constant 14 : index
    %c0_215 = arith.constant 0 : index
    %546 = vector.load %arg21[%c14, %c0_215] : memref<48x32xf32, #tpu.memory_space<vmem>>, vector<2x32xf32>
    tpu.vector_store %arg21[%c14, %c0_215], %545 {strides = array<i32>} : memref<48x32xf32, #tpu.memory_space<vmem>>, vector<2x32xf32>,
    %cst_216 = arith.constant dense<0.000000e+00> : vector<2x32xf32>
    %547 = tpu.matmul %545, %8, %cst_216 {dimension_numbers = #tpu.dot_dimension_numbers<[1], [0], [0], [1], [0, 0, 1, 1], [], []>} : vector<2x32xf32>, vector<32x32xf32>, vector<2x32xf32> -> vector<2x32xf32>
    %548 = vector.broadcast %9 : vector<1x32xf32> to vector<2x32xf32>
    %549 = arith.addf %547, %548 : vector<2x32xf32>
    %cst_217 = arith.constant 0.000000e+00 : f32
    %550 = vector.broadcast %cst_217 : f32 to vector<2x32xf32>
    %551 = arith.maximumf %549, %550 : vector<2x32xf32>
    %c16 = arith.constant 16 : index
    %c0_218 = arith.constant 0 : index
    %552 = vector.load %arg21[%c16, %c0_218] : memref<48x32xf32, #tpu.memory_space<vmem>>, vector<2x32xf32>
    tpu.vector_store %arg21[%c16, %c0_218], %551 {strides = array<i32>} : memref<48x32xf32, #tpu.memory_space<vmem>>, vector<2x32xf32>,
    %cst_219 = arith.constant dense<0.000000e+00> : vector<2x32xf32>
    %553 = tpu.matmul %551, %8, %cst_219 {dimension_numbers = #tpu.dot_dimension_numbers<[1], [0], [0], [1], [0, 0, 1, 1], [], []>} : vector<2x32xf32>, vector<32x32xf32>, vector<2x32xf32> -> vector<2x32xf32>
    %554 = vector.broadcast %9 : vector<1x32xf32> to vector<2x32xf32>
    %555 = arith.addf %553, %554 : vector<2x32xf32>
    %cst_220 = arith.constant 0.000000e+00 : f32
    %556 = vector.broadcast %cst_220 : f32 to vector<2x32xf32>
    %557 = arith.maximumf %555, %556 : vector<2x32xf32>
    %c18 = arith.constant 18 : index
    %c0_221 = arith.constant 0 : index
    %558 = vector.load %arg21[%c18, %c0_221] : memref<48x32xf32, #tpu.memory_space<vmem>>, vector<2x32xf32>
    tpu.vector_store %arg21[%c18, %c0_221], %557 {strides = array<i32>} : memref<48x32xf32, #tpu.memory_space<vmem>>, vector<2x32xf32>,
    %cst_222 = arith.constant dense<0.000000e+00> : vector<2x32xf32>
    %559 = tpu.matmul %557, %8, %cst_222 {dimension_numbers = #tpu.dot_dimension_numbers<[1], [0], [0], [1], [0, 0, 1, 1], [], []>} : vector<2x32xf32>, vector<32x32xf32>, vector<2x32xf32> -> vector<2x32xf32>
    %560 = vector.broadcast %9 : vector<1x32xf32> to vector<2x32xf32>
    %561 = arith.addf %559, %560 : vector<2x32xf32>
    %cst_223 = arith.constant 0.000000e+00 : f32
    %562 = vector.broadcast %cst_223 : f32 to vector<2x32xf32>
    %563 = arith.maximumf %561, %562 : vector<2x32xf32>
    %c20 = arith.constant 20 : index
    %c0_224 = arith.constant 0 : index
    %564 = vector.load %arg21[%c20, %c0_224] : memref<48x32xf32, #tpu.memory_space<vmem>>, vector<2x32xf32>
    tpu.vector_store %arg21[%c20, %c0_224], %563 {strides = array<i32>} : memref<48x32xf32, #tpu.memory_space<vmem>>, vector<2x32xf32>,
    %cst_225 = arith.constant dense<0.000000e+00> : vector<2x32xf32>
    %565 = tpu.matmul %563, %8, %cst_225 {dimension_numbers = #tpu.dot_dimension_numbers<[1], [0], [0], [1], [0, 0, 1, 1], [], []>} : vector<2x32xf32>, vector<32x32xf32>, vector<2x32xf32> -> vector<2x32xf32>
    %566 = vector.broadcast %9 : vector<1x32xf32> to vector<2x32xf32>
    %567 = arith.addf %565, %566 : vector<2x32xf32>
    %cst_226 = arith.constant 0.000000e+00 : f32
    %568 = vector.broadcast %cst_226 : f32 to vector<2x32xf32>
    %569 = arith.maximumf %567, %568 : vector<2x32xf32>
    %c22 = arith.constant 22 : index
    %c0_227 = arith.constant 0 : index
    %570 = vector.load %arg21[%c22, %c0_227] : memref<48x32xf32, #tpu.memory_space<vmem>>, vector<2x32xf32>
    tpu.vector_store %arg21[%c22, %c0_227], %569 {strides = array<i32>} : memref<48x32xf32, #tpu.memory_space<vmem>>, vector<2x32xf32>,
    %cst_228 = arith.constant dense<0.000000e+00> : vector<2x32xf32>
    %571 = tpu.matmul %569, %8, %cst_228 {dimension_numbers = #tpu.dot_dimension_numbers<[1], [0], [0], [1], [0, 0, 1, 1], [], []>} : vector<2x32xf32>, vector<32x32xf32>, vector<2x32xf32> -> vector<2x32xf32>
    %572 = vector.broadcast %9 : vector<1x32xf32> to vector<2x32xf32>
    %573 = arith.addf %571, %572 : vector<2x32xf32>
    %cst_229 = arith.constant 0.000000e+00 : f32
    %574 = vector.broadcast %cst_229 : f32 to vector<2x32xf32>
    %575 = arith.maximumf %573, %574 : vector<2x32xf32>
    %c24 = arith.constant 24 : index
    %c0_230 = arith.constant 0 : index
    %576 = vector.load %arg21[%c24, %c0_230] : memref<48x32xf32, #tpu.memory_space<vmem>>, vector<2x32xf32>
    tpu.vector_store %arg21[%c24, %c0_230], %575 {strides = array<i32>} : memref<48x32xf32, #tpu.memory_space<vmem>>, vector<2x32xf32>,
    %cst_231 = arith.constant dense<0.000000e+00> : vector<2x32xf32>
    %577 = tpu.matmul %575, %8, %cst_231 {dimension_numbers = #tpu.dot_dimension_numbers<[1], [0], [0], [1], [0, 0, 1, 1], [], []>} : vector<2x32xf32>, vector<32x32xf32>, vector<2x32xf32> -> vector<2x32xf32>
    %578 = vector.broadcast %9 : vector<1x32xf32> to vector<2x32xf32>
    %579 = arith.addf %577, %578 : vector<2x32xf32>
    %cst_232 = arith.constant 0.000000e+00 : f32
    %580 = vector.broadcast %cst_232 : f32 to vector<2x32xf32>
    %581 = arith.maximumf %579, %580 : vector<2x32xf32>
    %c26 = arith.constant 26 : index
    %c0_233 = arith.constant 0 : index
    %582 = vector.load %arg21[%c26, %c0_233] : memref<48x32xf32, #tpu.memory_space<vmem>>, vector<2x32xf32>
    tpu.vector_store %arg21[%c26, %c0_233], %581 {strides = array<i32>} : memref<48x32xf32, #tpu.memory_space<vmem>>, vector<2x32xf32>,
    %cst_234 = arith.constant dense<0.000000e+00> : vector<2x32xf32>
    %583 = tpu.matmul %581, %8, %cst_234 {dimension_numbers = #tpu.dot_dimension_numbers<[1], [0], [0], [1], [0, 0, 1, 1], [], []>} : vector<2x32xf32>, vector<32x32xf32>, vector<2x32xf32> -> vector<2x32xf32>
    %584 = vector.broadcast %9 : vector<1x32xf32> to vector<2x32xf32>
    %585 = arith.addf %583, %584 : vector<2x32xf32>
    %cst_235 = arith.constant 0.000000e+00 : f32
    %586 = vector.broadcast %cst_235 : f32 to vector<2x32xf32>
    %587 = arith.maximumf %585, %586 : vector<2x32xf32>
    %c28 = arith.constant 28 : index
    %c0_236 = arith.constant 0 : index
    %588 = vector.load %arg21[%c28, %c0_236] : memref<48x32xf32, #tpu.memory_space<vmem>>, vector<2x32xf32>
    tpu.vector_store %arg21[%c28, %c0_236], %587 {strides = array<i32>} : memref<48x32xf32, #tpu.memory_space<vmem>>, vector<2x32xf32>,
    %cst_237 = arith.constant dense<0.000000e+00> : vector<2x32xf32>
    %589 = tpu.matmul %587, %8, %cst_237 {dimension_numbers = #tpu.dot_dimension_numbers<[1], [0], [0], [1], [0, 0, 1, 1], [], []>} : vector<2x32xf32>, vector<32x32xf32>, vector<2x32xf32> -> vector<2x32xf32>
    %590 = vector.broadcast %9 : vector<1x32xf32> to vector<2x32xf32>
    %591 = arith.addf %589, %590 : vector<2x32xf32>
    %cst_238 = arith.constant 0.000000e+00 : f32
    %592 = vector.broadcast %cst_238 : f32 to vector<2x32xf32>
    %593 = arith.maximumf %591, %592 : vector<2x32xf32>
    %c30 = arith.constant 30 : index
    %c0_239 = arith.constant 0 : index
    %594 = vector.load %arg21[%c30, %c0_239] : memref<48x32xf32, #tpu.memory_space<vmem>>, vector<2x32xf32>
    tpu.vector_store %arg21[%c30, %c0_239], %593 {strides = array<i32>} : memref<48x32xf32, #tpu.memory_space<vmem>>, vector<2x32xf32>,
    %cst_240 = arith.constant dense<0.000000e+00> : vector<2x32xf32>
    %595 = tpu.matmul %593, %8, %cst_240 {dimension_numbers = #tpu.dot_dimension_numbers<[1], [0], [0], [1], [0, 0, 1, 1], [], []>} : vector<2x32xf32>, vector<32x32xf32>, vector<2x32xf32> -> vector<2x32xf32>
    %596 = vector.broadcast %9 : vector<1x32xf32> to vector<2x32xf32>
    %597 = arith.addf %595, %596 : vector<2x32xf32>
    %cst_241 = arith.constant 0.000000e+00 : f32
    %598 = vector.broadcast %cst_241 : f32 to vector<2x32xf32>
    %599 = arith.maximumf %597, %598 : vector<2x32xf32>
    %c32 = arith.constant 32 : index
    %c0_242 = arith.constant 0 : index
    %600 = vector.load %arg21[%c32, %c0_242] : memref<48x32xf32, #tpu.memory_space<vmem>>, vector<2x32xf32>
    tpu.vector_store %arg21[%c32, %c0_242], %599 {strides = array<i32>} : memref<48x32xf32, #tpu.memory_space<vmem>>, vector<2x32xf32>,
    %cst_243 = arith.constant dense<0.000000e+00> : vector<2x32xf32>
    %601 = tpu.matmul %599, %8, %cst_243 {dimension_numbers = #tpu.dot_dimension_numbers<[1], [0], [0], [1], [0, 0, 1, 1], [], []>} : vector<2x32xf32>, vector<32x32xf32>, vector<2x32xf32> -> vector<2x32xf32>
    %602 = vector.broadcast %9 : vector<1x32xf32> to vector<2x32xf32>
    %603 = arith.addf %601, %602 : vector<2x32xf32>
    %cst_244 = arith.constant 0.000000e+00 : f32
    %604 = vector.broadcast %cst_244 : f32 to vector<2x32xf32>
    %605 = arith.maximumf %603, %604 : vector<2x32xf32>
    %c34 = arith.constant 34 : index
    %c0_245 = arith.constant 0 : index
    %606 = vector.load %arg21[%c34, %c0_245] : memref<48x32xf32, #tpu.memory_space<vmem>>, vector<2x32xf32>
    tpu.vector_store %arg21[%c34, %c0_245], %605 {strides = array<i32>} : memref<48x32xf32, #tpu.memory_space<vmem>>, vector<2x32xf32>,
    %cst_246 = arith.constant dense<0.000000e+00> : vector<2x32xf32>
    %607 = tpu.matmul %605, %8, %cst_246 {dimension_numbers = #tpu.dot_dimension_numbers<[1], [0], [0], [1], [0, 0, 1, 1], [], []>} : vector<2x32xf32>, vector<32x32xf32>, vector<2x32xf32> -> vector<2x32xf32>
    %608 = vector.broadcast %9 : vector<1x32xf32> to vector<2x32xf32>
    %609 = arith.addf %607, %608 : vector<2x32xf32>
    %cst_247 = arith.constant 0.000000e+00 : f32
    %610 = vector.broadcast %cst_247 : f32 to vector<2x32xf32>
    %611 = arith.maximumf %609, %610 : vector<2x32xf32>
    %c36 = arith.constant 36 : index
    %c0_248 = arith.constant 0 : index
    %612 = vector.load %arg21[%c36, %c0_248] : memref<48x32xf32, #tpu.memory_space<vmem>>, vector<2x32xf32>
    tpu.vector_store %arg21[%c36, %c0_248], %611 {strides = array<i32>} : memref<48x32xf32, #tpu.memory_space<vmem>>, vector<2x32xf32>,
    %cst_249 = arith.constant dense<0.000000e+00> : vector<2x32xf32>
    %613 = tpu.matmul %611, %8, %cst_249 {dimension_numbers = #tpu.dot_dimension_numbers<[1], [0], [0], [1], [0, 0, 1, 1], [], []>} : vector<2x32xf32>, vector<32x32xf32>, vector<2x32xf32> -> vector<2x32xf32>
    %614 = vector.broadcast %9 : vector<1x32xf32> to vector<2x32xf32>
    %615 = arith.addf %613, %614 : vector<2x32xf32>
    %cst_250 = arith.constant 0.000000e+00 : f32
    %616 = vector.broadcast %cst_250 : f32 to vector<2x32xf32>
    %617 = arith.maximumf %615, %616 : vector<2x32xf32>
    %c38 = arith.constant 38 : index
    %c0_251 = arith.constant 0 : index
    %618 = vector.load %arg21[%c38, %c0_251] : memref<48x32xf32, #tpu.memory_space<vmem>>, vector<2x32xf32>
    tpu.vector_store %arg21[%c38, %c0_251], %617 {strides = array<i32>} : memref<48x32xf32, #tpu.memory_space<vmem>>, vector<2x32xf32>,
    %cst_252 = arith.constant dense<0.000000e+00> : vector<2x32xf32>
    %619 = tpu.matmul %617, %8, %cst_252 {dimension_numbers = #tpu.dot_dimension_numbers<[1], [0], [0], [1], [0, 0, 1, 1], [], []>} : vector<2x32xf32>, vector<32x32xf32>, vector<2x32xf32> -> vector<2x32xf32>
    %620 = vector.broadcast %9 : vector<1x32xf32> to vector<2x32xf32>
    %621 = arith.addf %619, %620 : vector<2x32xf32>
    %cst_253 = arith.constant 0.000000e+00 : f32
    %622 = vector.broadcast %cst_253 : f32 to vector<2x32xf32>
    %623 = arith.maximumf %621, %622 : vector<2x32xf32>
    %c40 = arith.constant 40 : index
    %c0_254 = arith.constant 0 : index
    %624 = vector.load %arg21[%c40, %c0_254] : memref<48x32xf32, #tpu.memory_space<vmem>>, vector<2x32xf32>
    tpu.vector_store %arg21[%c40, %c0_254], %623 {strides = array<i32>} : memref<48x32xf32, #tpu.memory_space<vmem>>, vector<2x32xf32>,
    %cst_255 = arith.constant dense<0.000000e+00> : vector<2x32xf32>
    %625 = tpu.matmul %623, %8, %cst_255 {dimension_numbers = #tpu.dot_dimension_numbers<[1], [0], [0], [1], [0, 0, 1, 1], [], []>} : vector<2x32xf32>, vector<32x32xf32>, vector<2x32xf32> -> vector<2x32xf32>
    %626 = vector.broadcast %9 : vector<1x32xf32> to vector<2x32xf32>
    %627 = arith.addf %625, %626 : vector<2x32xf32>
    %cst_256 = arith.constant 0.000000e+00 : f32
    %628 = vector.broadcast %cst_256 : f32 to vector<2x32xf32>
    %629 = arith.maximumf %627, %628 : vector<2x32xf32>
    %c42 = arith.constant 42 : index
    %c0_257 = arith.constant 0 : index
    %630 = vector.load %arg21[%c42, %c0_257] : memref<48x32xf32, #tpu.memory_space<vmem>>, vector<2x32xf32>
    tpu.vector_store %arg21[%c42, %c0_257], %629 {strides = array<i32>} : memref<48x32xf32, #tpu.memory_space<vmem>>, vector<2x32xf32>,
    %cst_258 = arith.constant dense<0.000000e+00> : vector<2x32xf32>
    %631 = tpu.matmul %629, %8, %cst_258 {dimension_numbers = #tpu.dot_dimension_numbers<[1], [0], [0], [1], [0, 0, 1, 1], [], []>} : vector<2x32xf32>, vector<32x32xf32>, vector<2x32xf32> -> vector<2x32xf32>
    %632 = vector.broadcast %9 : vector<1x32xf32> to vector<2x32xf32>
    %633 = arith.addf %631, %632 : vector<2x32xf32>
    %cst_259 = arith.constant 0.000000e+00 : f32
    %634 = vector.broadcast %cst_259 : f32 to vector<2x32xf32>
    %635 = arith.maximumf %633, %634 : vector<2x32xf32>
    %c44 = arith.constant 44 : index
    %c0_260 = arith.constant 0 : index
    %636 = vector.load %arg21[%c44, %c0_260] : memref<48x32xf32, #tpu.memory_space<vmem>>, vector<2x32xf32>
    tpu.vector_store %arg21[%c44, %c0_260], %635 {strides = array<i32>} : memref<48x32xf32, #tpu.memory_space<vmem>>, vector<2x32xf32>,
    %cst_261 = arith.constant dense<0.000000e+00> : vector<2x32xf32>
    %637 = tpu.matmul %635, %8, %cst_261 {dimension_numbers = #tpu.dot_dimension_numbers<[1], [0], [0], [1], [0, 0, 1, 1], [], []>} : vector<2x32xf32>, vector<32x32xf32>, vector<2x32xf32> -> vector<2x32xf32>
    %638 = vector.broadcast %9 : vector<1x32xf32> to vector<2x32xf32>
    %639 = arith.addf %637, %638 : vector<2x32xf32>
    %cst_262 = arith.constant 0.000000e+00 : f32
    %640 = vector.broadcast %cst_262 : f32 to vector<2x32xf32>
    %641 = arith.maximumf %639, %640 : vector<2x32xf32>
    %c46 = arith.constant 46 : index
    %c0_263 = arith.constant 0 : index
    %642 = vector.load %arg21[%c46, %c0_263] : memref<48x32xf32, #tpu.memory_space<vmem>>, vector<2x32xf32>
    tpu.vector_store %arg21[%c46, %c0_263], %641 {strides = array<i32>} : memref<48x32xf32, #tpu.memory_space<vmem>>, vector<2x32xf32>,
    %c0_264 = arith.constant 0 : index
    %c0_265 = arith.constant 0 : index
    %643 = vector.load %arg21[%c0_264, %c0_265] : memref<48x32xf32, #tpu.memory_space<vmem>>, vector<48x32xf32>
    %cst_266 = arith.constant dense<0.000000e+00> : vector<48x1xf32>
    %644 = tpu.matmul %643, %10, %cst_266 {dimension_numbers = #tpu.dot_dimension_numbers<[1], [0], [0], [1], [0, 0, 1, 1], [], []>} : vector<48x32xf32>, vector<32x1xf32>, vector<48x1xf32> -> vector<48x1xf32>
    %645 = vector.broadcast %11 : vector<1x1xf32> to vector<48x1xf32>
    %646 = arith.addf %644, %645 : vector<48x1xf32>
    %c0_267 = arith.constant 0 : index
    %c0_268 = arith.constant 0 : index
    %647 = vector.load %arg15[%c0_267, %c0_268] : memref<48x1xf32, #tpu.memory_space<vmem>>, vector<48x1xf32>
    tpu.vector_store %arg15[%c0_267, %c0_268], %646 {strides = array<i32>} : memref<48x1xf32, #tpu.memory_space<vmem>>, vector<48x1xf32>,
    return
  }
  func.func @transform_0(%arg0: i32) -> (i32, i32) {
    %c0_i32 = arith.constant 0 : i32
    %c0_i32_0 = arith.constant 0 : i32
    return %arg0, %c0_i32 : i32, i32
  }
  func.func @transform_1(%arg0: i32) -> (i32, i32) {
    %c0_i32 = arith.constant 0 : i32
    %c0_i32_0 = arith.constant 0 : i32
    %c0_i32_1 = arith.constant 0 : i32
    return %c0_i32, %c0_i32_0 : i32, i32
  }
  func.func @transform_2(%arg0: i32) -> (i32, i32) {
    %c0_i32 = arith.constant 0 : i32
    %c0_i32_0 = arith.constant 0 : i32
    %c0_i32_1 = arith.constant 0 : i32
    return %c0_i32, %c0_i32_0 : i32, i32
  }
  func.func @transform_3(%arg0: i32) -> (i32, i32) {
    %c0_i32 = arith.constant 0 : i32
    %c0_i32_0 = arith.constant 0 : i32
    %c0_i32_1 = arith.constant 0 : i32
    return %c0_i32, %c0_i32_0 : i32, i32
  }
  func.func @transform_4(%arg0: i32) -> (i32, i32) {
    %c0_i32 = arith.constant 0 : i32
    %c0_i32_0 = arith.constant 0 : i32
    %c0_i32_1 = arith.constant 0 : i32
    return %c0_i32, %c0_i32_0 : i32, i32
  }
  func.func @transform_5(%arg0: i32) -> (i32, i32) {
    %c0_i32 = arith.constant 0 : i32
    %c0_i32_0 = arith.constant 0 : i32
    %c0_i32_1 = arith.constant 0 : i32
    return %c0_i32, %c0_i32_0 : i32, i32
  }
  func.func @transform_6(%arg0: i32) -> (i32, i32) {
    %c0_i32 = arith.constant 0 : i32
    %c0_i32_0 = arith.constant 0 : i32
    %c0_i32_1 = arith.constant 0 : i32
    return %c0_i32, %c0_i32_0 : i32, i32
  }
  func.func @transform_7(%arg0: i32) -> (i32, i32) {
    %c0_i32 = arith.constant 0 : i32
    %c0_i32_0 = arith.constant 0 : i32
    %c0_i32_1 = arith.constant 0 : i32
    return %c0_i32, %c0_i32_0 : i32, i32
  }
  func.func @transform_8(%arg0: i32) -> (i32, i32, i32) {
    %c0_i32 = arith.constant 0 : i32
    %c0_i32_0 = arith.constant 0 : i32
    %c0_i32_1 = arith.constant 0 : i32
    %c0_i32_2 = arith.constant 0 : i32
    return %c0_i32, %c0_i32_0, %c0_i32_1 : i32, i32, i32
  }
  func.func @transform_9(%arg0: i32) -> (i32, i32) {
    %c0_i32 = arith.constant 0 : i32
    %c0_i32_0 = arith.constant 0 : i32
    %c0_i32_1 = arith.constant 0 : i32
    return %c0_i32, %c0_i32_0 : i32, i32
  }
  func.func @transform_10(%arg0: i32) -> (i32, i32) {
    %c0_i32 = arith.constant 0 : i32
    %c0_i32_0 = arith.constant 0 : i32
    %c0_i32_1 = arith.constant 0 : i32
    return %c0_i32, %c0_i32_0 : i32, i32
  }
  func.func @transform_11(%arg0: i32) -> (i32, i32) {
    %c0_i32 = arith.constant 0 : i32
    %c0_i32_0 = arith.constant 0 : i32
    %c0_i32_1 = arith.constant 0 : i32
    return %c0_i32, %c0_i32_0 : i32, i32
  }
  func.func @transform_12(%arg0: i32) -> (i32, i32) {
    %c0_i32 = arith.constant 0 : i32
    %c0_i32_0 = arith.constant 0 : i32
    %c0_i32_1 = arith.constant 0 : i32
    return %c0_i32, %c0_i32_0 : i32, i32
  }
  func.func @transform_13(%arg0: i32) -> (i32, i32) {
    %c0_i32 = arith.constant 0 : i32
    %c0_i32_0 = arith.constant 0 : i32
    %c0_i32_1 = arith.constant 0 : i32
    return %c0_i32, %c0_i32_0 : i32, i32
  }
  func.func @transform_14(%arg0: i32) -> (i32, i32) {
    %c0_i32 = arith.constant 0 : i32
    %c0_i32_0 = arith.constant 0 : i32
    return %arg0, %c0_i32 : i32, i32
  }
}

</mosaic_0001>

<bundles_post_ra>
// kernel: tpu_custom_call.1
= control target key start
LH: loop header
LB: loop body
LE: loop exit
PB: predicated region body
PF: predicated region fallthrough
CT: control target
= control target key end

     0   :  { %s6132_s0 = inlined_call_operand.vmem [shape: f32[32,4], index: 0, kind: input, shape index: {}]   ;;  %s6133_s1 = inlined_call_operand.hbm [shape: f32[12,32], index: 1, kind: input, shape index: {}]   ;;  %s6134_s2 = inlined_call_operand.vmem [shape: f32[1,32], index: 2, kind: input, shape index: {}]   ;;  %s6135_s3 = inlined_call_operand.vmem [shape: f32[96,64], index: 3, kind: input, shape index: {}]   ;;  %s6136_s4 = inlined_call_operand.vmem [shape: f32[1,64], index: 4, kind: input, shape index: {}]   ;;  %s6137_s5 = inlined_call_operand.vmem [shape: f32[64,96], index: 5, kind: input, shape index: {}]   ;;  %s6138_s6 = inlined_call_operand.hbm [shape: f32[32,96], index: 6, kind: input, shape index: {}]   ;;  %s6139_s7 = inlined_call_operand.vmem [shape: f32[32,96], index: 7, kind: input, shape index: {}]   ;;  %s6140_s8 = inlined_call_operand.vmem [shape: f32[3,32,96], index: 8, kind: input, shape index: {}]   ;;  %s6141_s9 = inlined_call_operand.vmem [shape: f32[6,96], index: 9, kind: input, shape index: {}]   ;;  %s6142_s10 = inlined_call_operand.hbm [shape: f32[32,32], index: 10, kind: input, shape index: {}]   ;;  %s6143_s11 = inlined_call_operand.vmem [shape: f32[1,32], index: 11, kind: input, shape index: {}]   ;;  %s6144_s12 = inlined_call_operand.vmem [shape: f32[32,1], index: 12, kind: input, shape index: {}]   ;;  %s6145_s13 = inlined_call_operand.<no memory space> [shape: f32[1,1], index: 13, kind: input, shape index: {}]   ;;  %s6146_s14 = inlined_call_operand.vmem [shape: f32[48,1], index: 14, kind: output, shape index: {}]  }
   0x1   :  { %v19_v0 = vstv %s6145_s13 }
   0x2   :  { %20 = vst [vmem:[#allocation8] sm:$0x1] %v19_v0 }
   0x3   :  { %21 = vsyncpa [#allocation10], 0 }
   0x4   :  { %22 = vsyncpa [#allocation12], 0  ;;  %s5274_s15 = smov [#allocation11]   ;;  %s5275_s17 = smov [#allocation9]  }
   0x5   :  { %s50_s16 = sshll.u32 %s5274_s15, 4  ;;  %s30_s18 = sshll.u32 %s5275_s17, 4  ;;  %s51_s16 = int_to_ptr.vmem [resolvable:$true] %s50_s16  ;;  %s5365_s18 = int_to_ptr.vmem [resolvable:$true] %s30_s18 }
   0x6   :  { %s5204_s21 = scalar_lea.hbm %s6138_s6, 512 }
   0x7   :  { %p5205_p0 = scmp.ne.s32.totalorder %s6138_s6, %s5204_s21  ;;  %p5208_p1 = scmp.lt.u32.totalorder %s5204_s21, %s6138_s6 }
   0x9   :  { %p5210_p2 = pnand %p5208_p1, %p5205_p0 }
   0xb   :  { %5213 = shalt.err (!%p5210_p2)
}
   0xc   :  { %s5214_s25 = scalar_lea.vmem %s51_s16, 512  ;;  %p5219_p4 = scmp.lt.s32.totalorder %s51_s16, %s51_s16 }
   0xd   :  { %p5215_p3 = scmp.ne.s32.totalorder %s51_s16, %s5214_s25  ;;  %p5220_p5 = scmp.lt.s32.totalorder %s5214_s25, %s5214_s25 }
   0xf   :  { %p5221_p6 = por %p5220_p5, %p5219_p4 }
  0x11   :  { %p5222_p7 = pnand %p5221_p6, %p5215_p3 }
  0x13   :  { %5225 = shalt.err (!%p5222_p7)
}
  0x14   :  { %s5276_s26 = smov 128   ;;  %s5277_s27 = smov 8  }
  0x15   :  { %56 = dma.hbm_to_vmem [thread:$0]  %s6138_s6, 512, %s51_s16, [#allocation12], %s5276_s26, %s5276_s26, %s5277_s27  }
  0x16   :  { %s5226_s17 = scalar_lea.hbm %s6133_s1, 256 }
  0x17   :  { %p5227_p8 = scmp.ne.s32.totalorder %s6133_s1, %s5226_s17  ;;  %p5230_p9 = scmp.lt.u32.totalorder %s5226_s17, %s6133_s1 }
  0x19   :  { %p5232_p10 = pnand %p5230_p9, %p5227_p8 }
  0x1b   :  { %5235 = shalt.err (!%p5232_p10)
}
  0x1c   :  { %s5236_s23 = scalar_lea.vmem %s5365_s18, 256  ;;  %p5241_p12 = scmp.lt.s32.totalorder %s5365_s18, %s5365_s18 }
  0x1d   :  { %p5237_p11 = scmp.ne.s32.totalorder %s5365_s18, %s5236_s23  ;;  %p5242_p13 = scmp.lt.s32.totalorder %s5236_s23, %s5236_s23 }
  0x1f   :  { %p5243_p0 = por %p5242_p13, %p5241_p12 }
  0x21   :  { %p5244_p1 = pnand %p5243_p0, %p5237_p11 }
  0x23   :  { %5247 = shalt.err (!%p5244_p1)
}
  0x24   :  { %36 = dma.hbm_to_vmem [thread:$0]  %s6133_s1, 256, %s5365_s18, [#allocation10], %s5276_s26, %s5276_s26, %s5277_s27  }
  0x25   :  { %s5278_s24 = smov [#allocation13]   ;;  %s5248_s29 = scalar_lea.hbm %s6142_s10, 512 }
  0x26   :  { %s68_s13 = sshll.u32 %s5278_s24, 4  ;;  %p5249_p2 = scmp.ne.s32.totalorder %s6142_s10, %s5248_s29  ;;  %s69_s13 = int_to_ptr.vmem [resolvable:$true] %s68_s13 }
  0x27   :  { %p5252_p3 = scmp.lt.u32.totalorder %s5248_s29, %s6142_s10 }
  0x29   :  { %p5254_p4 = pnand %p5252_p3, %p5249_p2 }
  0x2b   :  { %5257 = shalt.err (!%p5254_p4)
}
  0x2c   :  { %s5258_s20 = scalar_lea.vmem %s69_s13, 512  ;;  %p5263_p6 = scmp.lt.s32.totalorder %s69_s13, %s69_s13 }
  0x2d   :  { %p5259_p5 = scmp.ne.s32.totalorder %s69_s13, %s5258_s20  ;;  %p5264_p7 = scmp.lt.s32.totalorder %s5258_s20, %s5258_s20 }
  0x2f   :  { %p5265_p8 = por %p5264_p7, %p5263_p6 }
  0x31   :  { %p5266_p9 = pnand %p5265_p8, %p5259_p5 }
  0x33   :  { %5269 = shalt.err (!%p5266_p9)
}
  0x34   :  { %74 = dma.hbm_to_vmem [thread:$0]  %s6142_s10, 512, %s69_s13, [#allocation12], %s5276_s26, %s5276_s26, %s5277_s27  }
  0x35   :  { %5270 = dma.done.wait [#allocation10], 256  }
  0x36   :  { %5271 = vsyncadd [#allocation10], 4294967040 }
  0x37   :  { %5272 = dma.done.wait [#allocation12], 1024  }
  0x38   :  { %5273 = vsyncadd [#allocation12], 4294966272  ;;  %v136_v1 = vlaneseq  ;;  %v93_v6 = vld [vmem:[%s6132_s0 + $0x18] sm:$0xff]  ;;  %v90_v7 = vld [vmem:[%s6132_s0] sm:$0xff]  ;;  %vm328_vm1 = vcmask 1043456   ;;  %s5279_s16 = smov 4  }
  0x39   :  { %v91_v8 = vld [vmem:[%s6132_s0 + $0x8] sm:$0xff]  ;;  %277 = vrot.lane.b32.xlu1 %v93_v6, %s5279_s16  ;;  %v228_v9 = vrot.slane %v93_v6, 7  ;;  %271 = vrot.lane.b32.xlu0 %v90_v7, %s5279_s16  ;;  %v225_v10 = vrot.slane %v90_v7, 7  ;;  %v246_v11 = vrot.slane %v90_v7, 1  ;;  %v92_v12 = vld [vmem:[%s6132_s0 + $0x10] sm:$0xff]  ;;  %v249_v17 = vrot.slane %v93_v6, 1 }
  0x3a   :  { %v5417_v2 = vshrl.u32 %v136_v1, 7  ;;  %v226_v13 = vrot.slane %v91_v8, 7  ;;  %v247_v14 = vrot.slane %v91_v8, 1  ;;  %v227_v15 = vrot.slane %v92_v12, 7  ;;  %v94_v21 = vld [vmem:[#allocation9] sm:$0xff]  ;;  %v98_v55 = vld [vmem:[%s6135_s3 + $0x8] sm:$0xff] }
  0x3b   :  { %v248_v16 = vrot.slane %v92_v12, 1  ;;  %v95_v22 = vld [vmem:[#allocation9 + $0x8] sm:$0xf]  ;;  %vm5280_vm4 = vmmov 1   ;;  %vm299_vm8 = vcmask 31744   ;;  %vm304_vm9 = vcmask 64512  }
  0x3c   :  { %v5420_v3 = vadd.s32 8, %v5417_v2  ;;  %v140_v5 = vadd.s32 24, %v5417_v2  ;;  %vm229_vm0 = vcmp.lt.s32.totalorder %v5417_v2, 1  ;;  %vm250_vm2 = vcmp.lt.s32.totalorder %v5417_v2, 7  ;;  %vm4842_vm5 = vmpackc.low %vm328_vm1, %vm5280_vm4  ;;  %v97_v54 = vld [vmem:[%s6135_s3] sm:$0xff]  ;;  %v99_v56 = vld [vmem:[%s6135_s3 + $0x10] sm:$0xff] }
  0x3d   :  { %v233_v20 = vsel %vm229_vm0, %v228_v9, %v225_v10  ;;  %v253_v23 = vsel %vm250_vm2, %v246_v11, %v247_v14  ;;  %v252_v24 = vsel %vm250_vm2, %v247_v14, %v248_v16  ;;  %273 = vrot.lane.b32.xlu0 %v91_v8, %s5279_s16  ;;  %v230_v25 = vsel %vm229_vm0, %v227_v15, %v228_v9  ;;  %v100_v58 = vld [vmem:[%s6135_s3 + $0x18] sm:$0xff]  ;;  %v101_v60 = vld [vmem:[%s6135_s3 + $0x20] sm:$0xff]  ;;  %v102_v61 = vld [vmem:[%s6135_s3 + $0x28] sm:$0xff]  ;;  %s5282_s29 = smov 64   ;;  %s5286_s18 = smov 96  }
  0x3e   :  { %v152_v4 = vand.u32 15, %v5420_v3  ;;  %v166_v19 = vand.u32 15, %v140_v5  ;;  %287 = vrot.lane.b32.xlu1 %v253_v23, %s5277_s27  ;;  %v232_v26 = vsel %vm229_vm0, %v225_v10, %v226_v13  ;;  %v4841_v28 = vpack.c.bf16 %v95_v22, %v94_v21  ;;  %v103_v63 = vld [vmem:[%s6135_s3 + $0x30] sm:$0xff]  ;;  %v104_v0 = vld [vmem:[%s6135_s3 + $0x38] sm:$0xff]  ;;  %v106_v5 = vld [vmem:[%s6135_s3 + $0x48] sm:$0xff] }
  0x3f   :  { %v231_v29 = vsel %vm229_vm0, %v226_v13, %v227_v15  ;;  %v254_v30 = vsel %vm250_vm2, %v249_v17, %v246_v11  ;;  %v251_v31 = vsel %vm250_vm2, %v248_v16, %v249_v17  ;;  %v145_v33 = vand.u32 15, %v5417_v2  ;;  %v4042_v7 = vld [vmem:[%s6134_s2] ss:$0 sm:$0xff] }
  0x40   :  { %vm5440_vm3 = vcmp.eq.s32.totalorder %v152_v4, 15  ;;  %vm196_vm6 = vcmp.eq.s32.totalorder %v166_v19, 15  ;;  %4843 = vmatprep.subr.msk.bf16.mxu1 %vm4842_vm5, %v4841_v28  ;;  %v139_v34 = vadd.s32 16, %v5417_v2  ;;  %vm315_vm10 = vcmask 97280   ;;  %v105_v4 = vld [vmem:[%s6135_s3 + $0x40] sm:$0xff] }
  0x41   :  { %v264_v27 = vsel %vm5440_vm3, 0.0, %v252_v24  ;;  %275 = vrot.lane.b32.xlu0 %v92_v12, %s5279_s16  ;;  %v266_v32 = vsel %vm196_vm6, 0.0, %v254_v30  ;;  %4846 = vmatpush3.bf16.msk.msra.mxu1 %vm4842_vm5, %v4841_v28  ;;  %vm189_vm7 = vcmp.eq.s32.totalorder %v145_v33, 0  ;;  %v4847_v57 = vpack.c.bf16 %v98_v55, %v97_v54 }
  0x42   :  { %289 = vrot.lane.b32.xlu1 %v264_v27, %s5277_s27  ;;  %v242_v37 = vsel %vm189_vm7, 0.0, %v233_v20  ;;  %v159_v38 = vand.u32 15, %v139_v34  ;;  %v4851_v59 = vpack.c.bf16 %v100_v58, %v99_v56  ;;  %v4855_v62 = vpack.c.bf16 %v102_v61, %v101_v60 }
  0x43   :  { %4848 = vmatprep.subr.bf16.mxu1 %v4847_v57  ;;  %v4859_v1 = vpack.c.bf16 %v104_v0, %v103_v63  ;;  %v4863_v6 = vpack.c.bf16 %v106_v5, %v105_v4  ;;  %vm433_vm12 = vcmask 261120   ;;  %vm488_vm3 = vcmask 785408   ;;  %v111_v63 = vld [vmem:[%s6137_s5 + $0x8] sm:$0xff]  ;;  %v112_v4 = vld [vmem:[%s6137_s5 + $0x10] sm:$0xff]  ;;  %v113_v5 = vld [vmem:[%s6137_s5 + $0x18] sm:$0xff] }
  0x44   :  { %vm191_vm11 = vcmp.eq.s32.totalorder %v159_v38, 0  ;;  %vm5284_vm4 = vmmov 0   ;;  %vm581_vm5 = vcmask 517120   ;;  %vm4029_vm6 = vcmask 7168  }
  0x45   :  { %291 = vrot.lane.b32.xlu0 %v251_v31, %s5277_s27  ;;  %v244_v46 = vsel %vm191_vm11, 0.0, %v231_v29 }
  0x46   :  { %293 = vrot.lane.b32.xlu1 %v266_v32, %s5277_s27 }
  0xab   :  { %v278_v35 = vpop.permute.xlu1 %277  ;;  %v272_v36 = vpop.permute.xlu0 %271 }
  0xac   :  { %v300_v39 = vsel %vm299_vm8, %v242_v37, %v272_v36  ;;  %v303_v48 = vsel %vm299_vm8, %v230_v25, %v278_v35  ;;  %v107_v25 = vld [vmem:[%s6135_s3 + $0x50] sm:$0xff]  ;;  %v208_v35 = vand.u32 7, %v5420_v3  ;;  %v201_v36 = vand.u32 7, %v5417_v2  ;;  %v4051_v2 = vld [vmem:[%s6141_s9] ss:$0 sm:$0xff] }
  0xae   :  { %vm5536_vm13 = vcmp.eq.s32.totalorder %v208_v35, 7  ;;  %vm5540_vm14 = vcmp.eq.s32.totalorder %v201_v36, 7  ;;  %vm5544_vm15 = vcmp.eq.s32.totalorder %v208_v35, 0  ;;  %vm5548_vm1 = vcmp.eq.s32.totalorder %v201_v36, 0 }
  0xaf   :  { %v274_v40 = vpop.permute.xlu0 %273 }
  0xb0   :  { %v288_v41 = vpop.permute.xlu1 %287  ;;  %v301_v43 = vsel %vm299_vm8, %v232_v26, %v274_v40  ;;  %v108_v26 = vld [vmem:[%s6135_s3 + $0x58] sm:$0xff]  ;;  %s5281_s3 = smov 32  }
  0xb1   :  { %v305_v42 = vsel %vm304_vm9, %v300_v39, %v288_v41  ;;  %v4867_v28 = vpack.c.bf16 %v108_v26, %v107_v25  ;;  %v5660_v41 = vld [vmem:[%s6141_s9 + $0x1] ss:$0 sm:$0xff] }
  0xb2   :  { %4354 = vmatprep.mubr.msk.f32.mxu1 %vm315_vm10, %v305_v42 }
  0xb3   :  { %v276_v44 = vpop.permute.xlu0 %275 }
  0xb4   :  { %v290_v45 = vpop.permute.xlu1 %289  ;;  %v302_v49 = vsel %vm299_vm8, %v244_v46, %v276_v44 }
  0xb5   :  { %v306_v47 = vsel %vm304_vm9, %v301_v43, %v290_v45 }
  0xb6   :  { %4355 = vmatmul.mubr.msk.f32.vlgmr.msra.gmra.mrb[0].mxu1 %vm315_vm10, %v306_v47 }
  0xb7   :  { %v292_v50 = vpop.permute.xlu0 %291  ;;  %4850 = vmatpush3.bf16.msra.mxu1 %v4847_v57 }
  0xb8   :  { %v294_v51 = vpop.permute.xlu1 %293  ;;  %v307_v52 = vsel %vm304_vm9, %v302_v49, %v292_v50  ;;  %4852 = vmatprep.subr.bf16.mxu1 %v4851_v59 }
  0xb9   :  { %v308_v53 = vsel %vm304_vm9, %v303_v48, %v294_v51  ;;  %4357 = vmatprep.mubr.msk.f32.mxu1 %vm315_vm10, %v307_v52 }
  0xba   :  { %4358 = vmatmul.mubr.msk.f32.gmra.mrb[2].mxu1 %vm315_vm10, %v308_v53 }
  0xbb   :  { %4854 = vmatpush3.bf16.msra.mxu1 %v4851_v59 }
  0xbc   :  { %4856 = vmatprep.subr.bf16.mxu1 %v4855_v62 }
  0xbf   :  { %4858 = vmatpush3.bf16.msra.mxu1 %v4855_v62  ;;  %v110_v62 = vld [vmem:[%s6137_s5] sm:$0xff] }
  0xc0   :  { %4860 = vmatprep.subr.bf16.mxu1 %v4859_v1  ;;  %v4872_v0 = vpack.c.bf16 %v111_v63, %v110_v62 }
  0xc3   :  { %4862 = vmatpush3.bf16.msra.mxu1 %v4859_v1  ;;  %v5283_v1 = vmov 0.0|0.0  }
  0xc4   :  { %4864 = vmatprep.subr.bf16.mxu1 %v4863_v6  ;;  %4871 = vmatprep.subr.bf16.mxu0 %v5283_v1 }
  0xc5   :  { %4873 = vmatpush3.bf16.msra.mxu0 %v4872_v0 }
  0xc6   :  { %4874 = vmatprep.subr.bf16.mxu0 %v5283_v1 }
  0xc7   :  { %4866 = vmatpush3.bf16.msra.mxu1 %v4863_v6  ;;  %v4875_v6 = vpack.c.bf16 %v113_v5, %v112_v4 }
  0xc8   :  { %4868 = vmatprep.subr.bf16.mxu1 %v4867_v28 }
  0xc9   :  { %4876 = vmatpush3.bf16.msra.mxu0 %v4875_v6 }
  0xca   :  { %4877 = vmatprep.subr.bf16.mxu0 %v5283_v1 }
  0xcb   :  { %4870 = vmatpush3.bf16.msra.mxu1 %v4867_v28 }
  0xcc   :  { %4889 = vmatprep.subr.bf16.mxu1 %v5283_v1 }
 0x189   :  { %v4356_v8 = vpop.f32.mrb[0].mxu1 }
 0x18a   :  { %v404_v9 = vadd.f32 %v4356_v8, %v4042_v7  ;;  %v398_v10 = vpop.f32.mrb[1].mxu1  ;;  %v115_v8 = vld [vmem:[%s6137_s5 + $0x28] sm:$0xff] }
 0x18b   :  { %v399_v11 = vadd.f32 %v4042_v7, %v398_v10 }
 0x18c   :  { %v418_v12 = vmax.f32 %v404_v9, 0.0  ;;  %v5285_v9 = vmov 0.0  }
 0x18d   :  { %v417_v13 = vmax.f32 %v399_v11, 0.0  ;;  %v4359_v15 = vpop.f32.mrb[2].mxu1  ;;  %4403 = vmatprep.mubr.msk.f32.mxu0 %vm5284_vm4, %v5285_v9  ;;  %v116_v11 = vld [vmem:[%s6137_s5 + $0x30] sm:$0xff] }
 0x18e   :  { %v422_v14 = vrot.slane %v418_v12, 1  ;;  %v414_v17 = vadd.f32 %v4359_v15, %v4042_v7  ;;  %v408_v18 = vpop.f32.mrb[3].mxu1  ;;  %v593_v15 = vld [vmem:[%s6140_s8 + $0x8] sm:$0xff] }
 0x18f   :  { %v421_v16 = vrot.slane %v417_v13, 1  ;;  %v409_v19 = vadd.f32 %v4042_v7, %v408_v18  ;;  %v114_v7 = vld [vmem:[%s6137_s5 + $0x20] sm:$0xff]  ;;  %v595_v18 = vld [vmem:[%s6140_s8 + $0x18] sm:$0xff] }
 0x190   :  { %v420_v21 = vmax.f32 %v414_v17, 0.0  ;;  %v4878_v10 = vpack.c.bf16 %v115_v8, %v114_v7  ;;  %v594_v17 = vld [vmem:[%s6140_s8 + $0x10] sm:$0xff] }
 0x191   :  { %v427_v20 = vsel %vm250_vm2, %v421_v16, %v422_v14  ;;  %v419_v23 = vmax.f32 %v409_v19, 0.0  ;;  %v5626_v19 = vpack.c.bf16 %v595_v18, %v594_v17 }
 0x192   :  { %v429_v22 = vmax.f32 %v417_v13, %v427_v20  ;;  %v424_v24 = vrot.slane %v420_v21, 1  ;;  %4879 = vmatpush3.bf16.msra.mxu0 %v4878_v10  ;;  %v4048_v20 = vld [vmem:[%s6136_s4] ss:$0 sm:$0xff] }
 0x193   :  { %v423_v27 = vrot.slane %v419_v23, 1  ;;  %4880 = vmatprep.subr.bf16.mxu0 %v5283_v1 }
 0x194   :  { %434 = vst.msk [vmem:[#allocation2] sm:$0xff] %vm433_vm12, %v429_v22  ;;  %v428_v29 = vsel %vm250_vm2, %v424_v24, %v421_v16 }
 0x195   :  { %v432_v30 = vmax.f32 %v420_v21, %v428_v29  ;;  %v425_v31 = vsel %vm250_vm2, %v423_v27, %v424_v24  ;;  %v426_v32 = vsel %vm250_vm2, %v422_v14, %v423_v27  ;;  %v592_v14 = vld [vmem:[%s6140_s8] sm:$0xff] }
 0x196   :  { %v430_v33 = vmax.f32 %v418_v12, %v426_v32  ;;  %v431_v34 = vmax.f32 %v419_v23, %v425_v31  ;;  %v117_v12 = vld [vmem:[%s6137_s5 + $0x38] sm:$0xff]  ;;  %v5616_v16 = vpack.c.bf16 %v593_v15, %v592_v14 }
 0x197   :  { %437 = vst.msk [vmem:[#allocation2 + $0x18] sm:$0xff] %vm433_vm12, %v432_v30  ;;  %v4881_v13 = vpack.c.bf16 %v117_v12, %v116_v11 }
 0x198   :  { %435 = vst.msk [vmem:[#allocation2 + $0x8] sm:$0xff] %vm433_vm12, %v430_v33  ;;  %436 = vst.msk [vmem:[#allocation2 + $0x10] sm:$0xff] %vm433_vm12, %v431_v34 }
 0x199   :  { %4882 = vmatpush3.bf16.msra.mxu0 %v4881_v13 }
 0x19a   :  { %4883 = vmatprep.subr.bf16.mxu0 %v5283_v1 }
 0x19f   :  { %v440_v39 = vld [vmem:[#allocation2 + $0x10] ss:$2 sm:$0xff]  ;;  %v438_v40 = vld [vmem:[#allocation2] ss:$2 sm:$0xff] }
 0x1a0   :  { %465 = vrot.lane.b32.xlu1 %v440_v39, %s5281_s3  ;;  %v442_v3 = vrot.slane %v440_v39, 7  ;;  %v452_v43 = vrot.slane %v440_v39, 1  ;;  %463 = vrot.lane.b32.xlu0 %v438_v40, %s5281_s3  ;;  %v441_v44 = vrot.slane %v438_v40, 7  ;;  %v451_v45 = vrot.slane %v438_v40, 1 }
 0x1a2   :  { %v454_v46 = vsel %vm250_vm2, %v452_v43, %v451_v45  ;;  %v453_v47 = vsel %vm250_vm2, %v451_v45, %v452_v43  ;;  %v443_v48 = vsel %vm229_vm0, %v441_v44, %v442_v3  ;;  %v444_v49 = vsel %vm229_vm0, %v442_v3, %v441_v44 }
 0x1a3   :  { %v460_v50 = vsel %vm5536_vm13, 0.0, %v454_v46  ;;  %v459_v51 = vsel %vm5540_vm14, 0.0, %v453_v47  ;;  %v450_v52 = vsel %vm5544_vm15, 0.0, %v443_v48  ;;  %v449_v53 = vsel %vm5548_vm1, 0.0, %v444_v49 }
 0x1a4   :  { %473 = vrot.lane.b32.xlu1 %v460_v50, %s5282_s29  ;;  %471 = vrot.lane.b32.xlu0 %v459_v51, %s5282_s29  ;;  %vm479_vm0 = vcmask 523264  }
 0x212   :  { %v466_v54 = vpop.permute.xlu1 %465  ;;  %v464_v55 = vpop.permute.xlu0 %463 }
 0x213   :  { %v478_v56 = vsel %vm433_vm12, %v450_v52, %v466_v54  ;;  %v477_v57 = vsel %vm433_vm12, %v449_v53, %v464_v55 }
 0x216   :  { %v474_v58 = vpop.permute.xlu1 %473  ;;  %v472_v59 = vpop.permute.xlu0 %471 }
 0x217   :  { %v481_v60 = vsel %vm479_vm0, %v478_v56, %v474_v58  ;;  %v480_v61 = vsel %vm479_vm0, %v477_v57, %v472_v59 }
 0x218   :  { %4384 = vmatprep.mubr.msk.f32.mxu1 %vm488_vm3, %v480_v61 }
 0x219   :  { %4385 = vmatmul.mubr.msk.f32.vlgmr.msra.gmra.mrb[4].mxu1 %vm488_vm3, %v481_v60 }
 0x21a   :  { %4425 = vmatprep.mubr.msk.f32.mxu1 %vm5284_vm4, %v5285_v9  ;;  %4891 = vmatpush3.bf16.msra.mxu1 %v5616_v16 }
 0x21b   :  { %4892 = vmatprep.subr.bf16.mxu1 %v5283_v1 }
 0x21e   :  { %4894 = vmatpush3.bf16.msra.mxu1 %v5626_v19 }
 0x21f   :  { %4901 = vmatprep.subr.bf16.mxu1 %v5283_v1 }
 0x2ec   :  { %v4386_v21 = vpop.f32.mrb[4].mxu1 }
 0x2ed   :  { %v567_v22 = vadd.f32 %v4386_v21, %v4048_v20  ;;  %v561_v23 = vpop.f32.mrb[5].mxu1 }
 0x2ee   :  { %v562_v24 = vadd.f32 %v4048_v20, %v561_v23 }
 0x2ef   :  { %v571_v25 = vmax.f32 %v567_v22, 0.0 }
 0x2f0   :  { %v570_v26 = vmax.f32 %v562_v24, 0.0 }
 0x2f1   :  { %v573_v27 = vrot.slane %v571_v25, 1 }
 0x2f2   :  { %v572_v28 = vrot.slane %v570_v26, 1 }
 0x2f4   :  { %v574_v29 = vsel %vm250_vm2, %v572_v28, %v573_v27  ;;  %v575_v30 = vsel %vm250_vm2, %v573_v27, %v572_v28  ;;  %vm785_vm2 = vcmask 254976  }
 0x2f5   :  { %v576_v31 = vmax.f32 %v570_v26, %v574_v29  ;;  %v577_v32 = vmax.f32 %v571_v25, %v575_v30 }
 0x2f7   :  { %578 = vst.msk [vmem:[#allocation3] sm:$0xff] %vm479_vm0, %v576_v31  ;;  %579 = vst.msk [vmem:[#allocation3 + $0x8] sm:$0xff] %vm479_vm0, %v577_v32 }
 0x2fe   :  { %v580_v33 = vld [vmem:[#allocation3] ss:$8 sm:$0x3]  ;;  %v584_v34 = vld [vmem:[#allocation3 + $0x2] ss:$8 sm:$0x3] }
 0x2ff   :  { %582 = vst.msk [vmem:[#allocation4] sm:$0x3] %vm581_vm5, %v580_v33  ;;  %585 = vst.msk [vmem:[#allocation4 + $0x2] sm:$0x3] %vm581_vm5, %v584_v34 }
 0x300   :  { %v587_v35 = vld [vmem:[#allocation3 + $0x4] ss:$8 sm:$0x3]  ;;  %v590_v36 = vld [vmem:[#allocation3 + $0x6] ss:$8 sm:$0x3] }
 0x301   :  { %588 = vst.msk [vmem:[#allocation4 + $0x4] sm:$0x3] %vm581_vm5, %v587_v35  ;;  %591 = vst.msk [vmem:[#allocation4 + $0x6] sm:$0x3] %vm581_vm5, %v590_v36 }
 0x308   :  { %v598_v37 = vld [vmem:[#allocation4] sm:$0xff] }
 0x309   :  { %4404 = vmatmul.mubr.msk.f32.vlgmr.msra.gmra.mrb[0].mxu0 %vm479_vm0, %v598_v37 }
 0x30a   :  { %4885 = vmatpush3.bf16.msra.mxu0 %v5616_v16  ;;  %4414 = vmatprep.mubr.msk.f32.mxu0 %vm5284_vm4, %v5285_v9 }
 0x30b   :  { %4886 = vmatprep.subr.bf16.mxu0 %v5283_v1 }
 0x30e   :  { %4888 = vmatpush3.bf16.msra.mxu0 %v5626_v19 }
 0x30f   :  { %4895 = vmatprep.subr.bf16.mxu0 %v5283_v1 }
 0x311   :  { %4415 = vmatmul.mubr.f32.vlgmr.msra.gmra.mrb[2].mxu0 %v5285_v9 }
 0x312   :  { %4897 = vmatpush3.bf16.msra.mxu0 %v5616_v16  ;;  %4436 = vmatprep.mubr.msk.f32.mxu0 %vm5284_vm4, %v5285_v9 }
 0x313   :  { %4898 = vmatprep.subr.bf16.mxu0 %v5283_v1 }
 0x316   :  { %4900 = vmatpush3.bf16.msra.mxu0 %v5626_v19 }
 0x317   :  { %4907 = vmatprep.subr.bf16.mxu0 %v5283_v1 }
 0x3dc   :  { %v672_v38 = vpop.f32.mrb[0].mxu0 }
 0x3dd   :  { %v673_v39 = vadd.f32 %v4051_v2, %v672_v38  ;;  %v4405_v40 = vpop.f32.mrb[1].mxu0 }
 0x3df   :  { %676 = vst.msk [vmem:[#allocation5] sm:$0xff] %vm488_vm3, %v673_v39 }
 0x3e4   :  { %v751_v42 = vpop.f32.mrb[2].mxu0 }
 0x3e5   :  { %v752_v3 = vadd.f32 %v5660_v41, %v751_v42  ;;  %v4416_v43 = vpop.f32.mrb[3].mxu0 }
 0x3e6   :  { %v677_v44 = vld [vmem:[#allocation5] sm:$0x3]  ;;  %v787_v0 = vld [vmem:[#allocation5 + $0x2] sm:$0x3]  ;;  %v891_v24 = vld [vmem:[#allocation5 + $0x4] sm:$0x3] }
 0x3e7   :  { %763 = vrot.lane.b32.xlu0 %v752_v3, %s5282_s29  ;;  %v755_v45 = vadd.f32 %v752_v3, %v677_v44  ;;  %v995_v43 = vld [vmem:[#allocation5 + $0x6] sm:$0x3] }
 0x3e9   :  { %v4054_v46 = vmul.f32 -1.442695, %v755_v45 }
 0x3eb   :  { %5132 = vpow2.f32 %v4054_v46 }
 0x3f5   :  { %v5133_v47 = vpop.eup %5132 }
 0x3f6   :  { %v759_v48 = vadd.f32 1.0, %v5133_v47 }
 0x3f8   :  { %5134 = vrcp.f32 %v759_v48 }
 0x402   :  { %v5135_v49 = vpop.eup %5134 }
 0x403   :  { %v773_v55 = vsub.f32 1.0, %v5135_v49  ;;  %v779_v57 = vmul.f32 0.0, %v5135_v49 }
 0x459   :  { %v764_v50 = vpop.permute.xlu0 %763 }
 0x45a   :  { %v766_v51 = vmul.f32 %v5135_v49, %v764_v50 }
 0x45c   :  { %768 = vrot.lane.b32.xlu1 %v766_v51, %s5282_s29 }
 0x4ce   :  { %v769_v52 = vpop.permute.xlu1 %768 }
 0x4cf   :  { %v771_v53 = vadd.f32 %v769_v52, %v677_v44 }
 0x4d1   :  { %5136 = vtanh.f32 %v771_v53  ;;  %v4062_v53 = vld [vmem:[%s6140_s8 + $0x28] sm:$0xff] }
 0x4db   :  { %v5137_v54 = vpop.eup %5136 }
 0x4dc   :  { %775 = vrot.lane.b32.xlu0 %v5137_v54, %s5286_s18  ;;  %v4063_v54 = vld [vmem:[%s6140_s8 + $0x30] sm:$0xff] }
 0x54e   :  { %v776_v56 = vpop.permute.xlu0 %775 }
 0x54f   :  { %v778_v58 = vmul.f32 %v776_v56, %v773_v55  ;;  %v4064_v56 = vld [vmem:[%s6140_s8 + $0x38] sm:$0xff] }
 0x551   :  { %v780_v59 = vadd.f32 %v779_v57, %v778_v58  ;;  %v5711_v57 = vpack.c.bf16 %v4064_v56, %v4063_v54 }
 0x553   :  { %782 = vrot.lane.b32.xlu1 %v780_v59, %s5286_s18 }
 0x5c5   :  { %v783_v60 = vpop.permute.xlu1 %782 }
 0x5c6   :  { %786 = vst.msk [vmem:[#allocation6] sm:$0x3] %vm785_vm2, %v783_v60  ;;  %4426 = vmatmul.mubr.msk.f32.vlgmr.msra.gmra.mrb[6].mxu1 %vm433_vm12, %v783_v60  ;;  %v119_v60 = vld [vmem:[#allocation11 + $0x8] sm:$0xff] }
 0x5c7   :  { %4903 = vmatpush3.bf16.msra.mxu1 %v5616_v16  ;;  %4447 = vmatprep.mubr.msk.f32.mxu1 %vm5284_vm4, %v5285_v9 }
 0x5c8   :  { %4904 = vmatprep.subr.bf16.mxu1 %v5283_v1 }
 0x5cb   :  { %4906 = vmatpush3.bf16.msra.mxu1 %v5626_v19 }
 0x5cc   :  { %4913 = vmatprep.subr.bf16.mxu1 %v5283_v1 }
 0x699   :  { %v856_v61 = vpop.f32.mrb[6].mxu1 }
 0x69a   :  { %v857_v62 = vadd.f32 %v5660_v41, %v856_v61  ;;  %v4427_v63 = vpop.f32.mrb[7].mxu1 }
 0x69b   :  { %v121_v63 = vld [vmem:[#allocation11 + $0x18] sm:$0xff] }
 0x69c   :  { %868 = vrot.lane.b32.xlu0 %v857_v62, %s5282_s29  ;;  %v860_v4 = vadd.f32 %v857_v62, %v787_v0  ;;  %v120_v62 = vld [vmem:[#allocation11 + $0x10] sm:$0xff] }
 0x69e   :  { %v4056_v5 = vmul.f32 -1.442695, %v860_v4 }
 0x6a0   :  { %5138 = vpow2.f32 %v4056_v5 }
 0x6aa   :  { %v5139_v6 = vpop.eup %5138 }
 0x6ab   :  { %v864_v7 = vadd.f32 1.0, %v5139_v6 }
 0x6ad   :  { %5140 = vrcp.f32 %v864_v7 }
 0x6b7   :  { %v5141_v8 = vpop.eup %5140 }
 0x6b8   :  { %v878_v15 = vsub.f32 1.0, %v5141_v8  ;;  %v884_v17 = vmul.f32 %v5141_v8, %v780_v59  ;;  %v118_v59 = vld [vmem:[#allocation11] sm:$0xff] }
 0x6b9   :  { %v4908_v61 = vpack.c.bf16 %v119_v60, %v118_v59 }
 0x70e   :  { %v869_v10 = vpop.permute.xlu0 %868 }
 0x70f   :  { %v871_v11 = vmul.f32 %v5141_v8, %v869_v10  ;;  %v5730_v10 = vld [vmem:[%s6141_s9 + $0x3] ss:$0 sm:$0xff] }
 0x711   :  { %873 = vrot.lane.b32.xlu1 %v871_v11, %s5282_s29 }
 0x783   :  { %v874_v12 = vpop.permute.xlu1 %873 }
 0x784   :  { %v876_v13 = vadd.f32 %v874_v12, %v787_v0  ;;  %v4911_v0 = vpack.c.bf16 %v121_v63, %v120_v62 }
 0x786   :  { %5142 = vtanh.f32 %v876_v13 }
 0x790   :  { %v5143_v14 = vpop.eup %5142 }
 0x791   :  { %880 = vrot.lane.b32.xlu0 %v5143_v14, %s5286_s18 }
 0x803   :  { %v881_v16 = vpop.permute.xlu0 %880 }
 0x804   :  { %v883_v18 = vmul.f32 %v881_v16, %v878_v15  ;;  %v4065_v16 = vld [vmem:[%s6141_s9 + $0x2] ss:$0 sm:$0xff] }
 0x806   :  { %v885_v19 = vadd.f32 %v884_v17, %v883_v18 }
 0x808   :  { %887 = vrot.lane.b32.xlu1 %v885_v19, %s5286_s18 }
 0x87a   :  { %v888_v20 = vpop.permute.xlu1 %887 }
 0x87b   :  { %890 = vst.msk [vmem:[#allocation6 + $0x2] sm:$0x3] %vm785_vm2, %v888_v20  ;;  %4437 = vmatmul.mubr.msk.f32.vlgmr.msra.gmra.mrb[4].mxu0 %vm433_vm12, %v888_v20 }
 0x87c   :  { %4458 = vmatprep.mubr.msk.f32.mxu0 %vm5284_vm4, %v5285_v9  ;;  %4909 = vmatpush3.bf16.msra.mxu0 %v4908_v61 }
 0x87d   :  { %4910 = vmatprep.subr.bf16.mxu0 %v5283_v1 }
 0x880   :  { %4912 = vmatpush3.bf16.msra.mxu0 %v4911_v0 }
 0x881   :  { %4919 = vmatprep.subr.bf16.mxu0 %v5283_v1 }
 0x94e   :  { %v960_v21 = vpop.f32.mrb[4].mxu0 }
 0x94f   :  { %v961_v22 = vadd.f32 %v5660_v41, %v960_v21  ;;  %v4438_v23 = vpop.f32.mrb[5].mxu0 }
 0x951   :  { %972 = vrot.lane.b32.xlu0 %v961_v22, %s5282_s29  ;;  %v964_v25 = vadd.f32 %v961_v22, %v891_v24 }
 0x953   :  { %v4058_v26 = vmul.f32 -1.442695, %v964_v25 }
 0x955   :  { %5144 = vpow2.f32 %v4058_v26 }
 0x95f   :  { %v5145_v27 = vpop.eup %5144 }
 0x960   :  { %v968_v28 = vadd.f32 1.0, %v5145_v27 }
 0x962   :  { %5146 = vrcp.f32 %v968_v28 }
 0x96c   :  { %v5147_v29 = vpop.eup %5146 }
 0x96d   :  { %v982_v35 = vsub.f32 1.0, %v5147_v29  ;;  %v988_v37 = vmul.f32 %v5147_v29, %v885_v19 }
 0x9c3   :  { %v973_v30 = vpop.permute.xlu0 %972 }
 0x9c4   :  { %v975_v31 = vmul.f32 %v5147_v29, %v973_v30 }
 0x9c6   :  { %977 = vrot.lane.b32.xlu1 %v975_v31, %s5282_s29 }
 0xa38   :  { %v978_v32 = vpop.permute.xlu1 %977 }
 0xa39   :  { %v980_v33 = vadd.f32 %v978_v32, %v891_v24 }
 0xa3b   :  { %5148 = vtanh.f32 %v980_v33 }
 0xa45   :  { %v5149_v34 = vpop.eup %5148 }
 0xa46   :  { %984 = vrot.lane.b32.xlu0 %v5149_v34, %s5286_s18 }
 0xab8   :  { %v985_v36 = vpop.permute.xlu0 %984 }
 0xab9   :  { %v987_v2 = vmul.f32 %v985_v36, %v982_v35 }
 0xabb   :  { %v989_v38 = vadd.f32 %v988_v37, %v987_v2 }
 0xabd   :  { %991 = vrot.lane.b32.xlu1 %v989_v38, %s5286_s18 }
 0xb2f   :  { %v992_v39 = vpop.permute.xlu1 %991 }
 0xb30   :  { %994 = vst.msk [vmem:[#allocation6 + $0x4] sm:$0x3] %vm785_vm2, %v992_v39  ;;  %4448 = vmatmul.mubr.msk.f32.vlgmr.msra.gmra.mrb[8].mxu1 %vm433_vm12, %v992_v39 }
 0xb31   :  { %4469 = vmatprep.mubr.msk.f32.mxu1 %vm5284_vm4, %v5285_v9 }
 0xc03   :  { %v1064_v40 = vpop.f32.mrb[8].mxu1 }
 0xc04   :  { %v1065_v42 = vadd.f32 %v5660_v41, %v1064_v40  ;;  %v4449_v3 = vpop.f32.mrb[9].mxu1  ;;  %v4061_v41 = vld [vmem:[%s6140_s8 + $0x20] sm:$0xff] }
 0xc05   :  { %v5705_v55 = vpack.c.bf16 %v4062_v53, %v4061_v41 }
 0xc06   :  { %1076 = vrot.lane.b32.xlu0 %v1065_v42, %s5282_s29  ;;  %v1068_v44 = vadd.f32 %v1065_v42, %v995_v43 }
 0xc07   :  { %4915 = vmatpush3.bf16.msra.mxu1 %v5705_v55 }
 0xc08   :  { %v4060_v45 = vmul.f32 -1.442695, %v1068_v44  ;;  %4916 = vmatprep.subr.bf16.mxu1 %v5283_v1 }
 0xc0a   :  { %5150 = vpow2.f32 %v4060_v45 }
 0xc0b   :  { %4918 = vmatpush3.bf16.msra.mxu1 %v5711_v57 }
 0xc0c   :  { %4925 = vmatprep.subr.bf16.mxu1 %v5283_v1 }
 0xc0e   :  { %4470 = vmatmul.mubr.f32.vlgmr.msra.gmra.mrb[10].mxu1 %v5285_v9 }
 0xc0f   :  { %4927 = vmatpush3.bf16.msra.mxu1 %v5705_v55  ;;  %4491 = vmatprep.mubr.msk.f32.mxu1 %vm5284_vm4, %v5285_v9 }
 0xc10   :  { %4928 = vmatprep.subr.bf16.mxu1 %v5283_v1 }
 0xc13   :  { %4930 = vmatpush3.bf16.msra.mxu1 %v5711_v57 }
 0xc14   :  { %v5151_v46 = vpop.eup %5150  ;;  %4937 = vmatprep.subr.bf16.mxu1 %v5283_v1 }
 0xc15   :  { %v1072_v47 = vadd.f32 1.0, %v5151_v46 }
 0xc17   :  { %5152 = vrcp.f32 %v1072_v47 }
 0xc21   :  { %v5153_v48 = vpop.eup %5152 }
 0xc22   :  { %v1086_v4 = vsub.f32 1.0, %v5153_v48  ;;  %v1092_v6 = vmul.f32 %v5153_v48, %v989_v38 }
 0xc78   :  { %v1077_v49 = vpop.permute.xlu0 %1076 }
 0xc79   :  { %v1079_v50 = vmul.f32 %v5153_v48, %v1077_v49 }
 0xc7b   :  { %1081 = vrot.lane.b32.xlu1 %v1079_v50, %s5282_s29 }
 0xce1   :  { %v1256_v11 = vpop.f32.mrb[10].mxu1 }
 0xce2   :  { %v1257_v12 = vadd.f32 %v5730_v10, %v1256_v11  ;;  %v4471_v13 = vpop.f32.mrb[11].mxu1 }
 0xced   :  { %v1082_v51 = vpop.permute.xlu1 %1081 }
 0xcee   :  { %v1084_v52 = vadd.f32 %v1082_v51, %v995_v43 }
 0xcf0   :  { %5154 = vtanh.f32 %v1084_v52 }
 0xcfa   :  { %v5155_v58 = vpop.eup %5154 }
 0xcfb   :  { %1088 = vrot.lane.b32.xlu0 %v5155_v58, %s5286_s18 }
 0xcff   :  { %1268 = vrot.lane.b32.xlu0 %v1257_v12, %s5282_s29 }
 0xd6d   :  { %v1089_v5 = vpop.permute.xlu0 %1088 }
 0xd6e   :  { %v1091_v7 = vmul.f32 %v1089_v5, %v1086_v4 }
 0xd70   :  { %v1093_v8 = vadd.f32 %v1092_v6, %v1091_v7 }
 0xd71   :  { %v1269_v25 = vpop.permute.xlu0 %1268 }
 0xd72   :  { %1095 = vrot.lane.b32.xlu1 %v1093_v8, %s5286_s18 }
 0xde4   :  { %v1096_v14 = vpop.permute.xlu1 %1095 }
 0xde5   :  { %1098 = vst.msk [vmem:[#allocation6 + $0x6] sm:$0x3] %vm785_vm2, %v1096_v14 }
 0xdec   :  { %v1106_v15 = vld [vmem:[#allocation6] sm:$0xff] }
 0xded   :  { %4459 = vmatmul.mubr.msk.f32.vlgmr.msra.gmra.mrb[6].mxu0 %vm433_vm12, %v1106_v15 }
 0xdee   :  { %4921 = vmatpush3.bf16.msra.mxu0 %v5705_v55  ;;  %4480 = vmatprep.mubr.msk.f32.mxu0 %vm5284_vm4, %v5285_v9 }
 0xdef   :  { %4922 = vmatprep.subr.bf16.mxu0 %v5283_v1 }
 0xdf2   :  { %4924 = vmatpush3.bf16.msra.mxu0 %v5711_v57 }
 0xdf3   :  { %4931 = vmatprep.subr.bf16.mxu0 %v5283_v1 }
 0xec0   :  { %v1180_v17 = vpop.f32.mrb[6].mxu0 }
 0xec1   :  { %v1181_v18 = vadd.f32 %v4065_v16, %v1180_v17  ;;  %v4460_v19 = vpop.f32.mrb[7].mxu0 }
 0xec3   :  { %1184 = vst.msk [vmem:[#allocation5] sm:$0xff] %vm488_vm3, %v1181_v18 }
 0xeca   :  { %v1185_v20 = vld [vmem:[#allocation5] sm:$0x3]  ;;  %v1291_v39 = vld [vmem:[#allocation5 + $0x2] sm:$0x3]  ;;  %v1395_v58 = vld [vmem:[#allocation5 + $0x4] sm:$0x3] }
 0xecb   :  { %v1260_v21 = vadd.f32 %v1257_v12, %v1185_v20  ;;  %v1499_v19 = vld [vmem:[#allocation5 + $0x6] sm:$0x3] }
 0xecd   :  { %v4068_v22 = vmul.f32 -1.442695, %v1260_v21 }
 0xecf   :  { %5156 = vpow2.f32 %v4068_v22 }
 0xed9   :  { %v5157_v23 = vpop.eup %5156 }
 0xeda   :  { %v1264_v24 = vadd.f32 1.0, %v5157_v23 }
 0xedc   :  { %5158 = vrcp.f32 %v1264_v24 }
 0xee6   :  { %v5159_v26 = vpop.eup %5158 }
 0xee7   :  { %v1271_v27 = vmul.f32 %v5159_v26, %v1269_v25  ;;  %v1278_v31 = vsub.f32 1.0, %v5159_v26  ;;  %v1284_v33 = vmul.f32 0.0, %v5159_v26 }
 0xee9   :  { %1273 = vrot.lane.b32.xlu1 %v1271_v27, %s5282_s29 }
 0xf5b   :  { %v1274_v28 = vpop.permute.xlu1 %1273 }
 0xf5c   :  { %v1276_v29 = vadd.f32 %v1274_v28, %v1185_v20 }
 0xf5e   :  { %5160 = vtanh.f32 %v1276_v29  ;;  %v4076_v29 = vld [vmem:[%s6140_s8 + $0x48] sm:$0xff] }
 0xf68   :  { %v5161_v30 = vpop.eup %5160 }
 0xf69   :  { %1280 = vrot.lane.b32.xlu0 %v5161_v30, %s5286_s18  ;;  %v4077_v30 = vld [vmem:[%s6140_s8 + $0x50] sm:$0xff] }
 0xfdb   :  { %v1281_v32 = vpop.permute.xlu0 %1280 }
 0xfdc   :  { %v1283_v34 = vmul.f32 %v1281_v32, %v1278_v31  ;;  %v4078_v32 = vld [vmem:[%s6140_s8 + $0x58] sm:$0xff] }
 0xfde   :  { %v1285_v35 = vadd.f32 %v1284_v33, %v1283_v34  ;;  %v5793_v33 = vpack.c.bf16 %v4078_v32, %v4077_v30 }
 0xfe0   :  { %1287 = vrot.lane.b32.xlu1 %v1285_v35, %s5286_s18 }
0x1052   :  { %v1288_v36 = vpop.permute.xlu1 %1287 }
0x1053   :  { %1290 = vst.msk [vmem:[#allocation6] sm:$0x3] %vm785_vm2, %v1288_v36  ;;  %4481 = vmatmul.mubr.msk.f32.vlgmr.msra.gmra.mrb[8].mxu0 %vm433_vm12, %v1288_v36  ;;  %v123_v36 = vld [vmem:[%s6139_s7 + $0x8] sm:$0xff] }
0x1054   :  { %4933 = vmatpush3.bf16.msra.mxu0 %v5705_v55  ;;  %4502 = vmatprep.mubr.msk.f32.mxu0 %vm5284_vm4, %v5285_v9 }
0x1055   :  { %4934 = vmatprep.subr.bf16.mxu0 %v5283_v1 }
0x1058   :  { %4936 = vmatpush3.bf16.msra.mxu0 %v5711_v57 }
0x1059   :  { %4943 = vmatprep.subr.bf16.mxu0 %v5283_v1 }
0x1126   :  { %v1360_v37 = vpop.f32.mrb[8].mxu0 }
0x1127   :  { %v1361_v2 = vadd.f32 %v5730_v10, %v1360_v37  ;;  %v4482_v38 = vpop.f32.mrb[9].mxu0 }
0x1128   :  { %v125_v38 = vld [vmem:[%s6139_s7 + $0x18] sm:$0xff] }
0x1129   :  { %1372 = vrot.lane.b32.xlu0 %v1361_v2, %s5282_s29  ;;  %v1364_v40 = vadd.f32 %v1361_v2, %v1291_v39  ;;  %v124_v2 = vld [vmem:[%s6139_s7 + $0x10] sm:$0xff] }
0x112b   :  { %v4070_v42 = vmul.f32 -1.442695, %v1364_v40 }
0x112d   :  { %5162 = vpow2.f32 %v4070_v42 }
0x1137   :  { %v5163_v3 = vpop.eup %5162 }
0x1138   :  { %v1368_v43 = vadd.f32 1.0, %v5163_v3 }
0x113a   :  { %5164 = vrcp.f32 %v1368_v43 }
0x1144   :  { %v5165_v44 = vpop.eup %5164 }
0x1145   :  { %v1382_v50 = vsub.f32 1.0, %v5165_v44  ;;  %v1388_v52 = vmul.f32 %v5165_v44, %v1285_v35  ;;  %v122_v35 = vld [vmem:[%s6139_s7] sm:$0xff] }
0x1146   :  { %v4938_v37 = vpack.c.bf16 %v123_v36, %v122_v35 }
0x119b   :  { %v1373_v45 = vpop.permute.xlu0 %1372 }
0x119c   :  { %v1375_v46 = vmul.f32 %v5165_v44, %v1373_v45  ;;  %v5824_v45 = vld [vmem:[%s6141_s9 + $0x5] ss:$0 sm:$0xff] }
0x119e   :  { %1377 = vrot.lane.b32.xlu1 %v1375_v46, %s5282_s29 }
0x1210   :  { %v1378_v47 = vpop.permute.xlu1 %1377 }
0x1211   :  { %v1380_v48 = vadd.f32 %v1378_v47, %v1291_v39  ;;  %v4941_v39 = vpack.c.bf16 %v125_v38, %v124_v2 }
0x1213   :  { %5166 = vtanh.f32 %v1380_v48 }
0x121d   :  { %v5167_v49 = vpop.eup %5166 }
0x121e   :  { %1384 = vrot.lane.b32.xlu0 %v5167_v49, %s5286_s18 }
0x1290   :  { %v1385_v51 = vpop.permute.xlu0 %1384 }
0x1291   :  { %v1387_v41 = vmul.f32 %v1385_v51, %v1382_v50  ;;  %v4079_v51 = vld [vmem:[%s6141_s9 + $0x4] ss:$0 sm:$0xff] }
0x1293   :  { %v1389_v53 = vadd.f32 %v1388_v52, %v1387_v41 }
0x1295   :  { %1391 = vrot.lane.b32.xlu1 %v1389_v53, %s5286_s18 }
0x1307   :  { %v1392_v54 = vpop.permute.xlu1 %1391 }
0x1308   :  { %1394 = vst.msk [vmem:[#allocation6 + $0x2] sm:$0x3] %vm785_vm2, %v1392_v54  ;;  %4492 = vmatmul.mubr.msk.f32.vlgmr.msra.gmra.mrb[12].mxu1 %vm433_vm12, %v1392_v54 }
0x1309   :  { %4513 = vmatprep.mubr.msk.f32.mxu1 %vm5284_vm4, %v5285_v9  ;;  %4939 = vmatpush3.bf16.msra.mxu1 %v4938_v37 }
0x130a   :  { %4940 = vmatprep.subr.bf16.mxu1 %v5283_v1 }
0x130d   :  { %4942 = vmatpush3.bf16.msra.mxu1 %v4941_v39 }
0x130e   :  { %4949 = vmatprep.subr.bf16.mxu1 %v5283_v1 }
0x13db   :  { %v1464_v55 = vpop.f32.mrb[12].mxu1 }
0x13dc   :  { %v1465_v56 = vadd.f32 %v5730_v10, %v1464_v55  ;;  %v4493_v57 = vpop.f32.mrb[13].mxu1 }
0x13de   :  { %1476 = vrot.lane.b32.xlu0 %v1465_v56, %s5282_s29  ;;  %v1468_v59 = vadd.f32 %v1465_v56, %v1395_v58 }
0x13e0   :  { %v4072_v60 = vmul.f32 -1.442695, %v1468_v59 }
0x13e2   :  { %5168 = vpow2.f32 %v4072_v60 }
0x13ec   :  { %v5169_v61 = vpop.eup %5168 }
0x13ed   :  { %v1472_v62 = vadd.f32 1.0, %v5169_v61 }
0x13ef   :  { %5170 = vrcp.f32 %v1472_v62 }
0x13f9   :  { %v5171_v63 = vpop.eup %5170 }
0x13fa   :  { %v1486_v8 = vsub.f32 1.0, %v5171_v63  ;;  %v1492_v12 = vmul.f32 %v5171_v63, %v1389_v53 }
0x1450   :  { %v1477_v0 = vpop.permute.xlu0 %1476 }
0x1451   :  { %v1479_v4 = vmul.f32 %v5171_v63, %v1477_v0 }
0x1453   :  { %1481 = vrot.lane.b32.xlu1 %v1479_v4, %s5282_s29 }
0x14c5   :  { %v1482_v5 = vpop.permute.xlu1 %1481 }
0x14c6   :  { %v1484_v6 = vadd.f32 %v1482_v5, %v1395_v58 }
0x14c8   :  { %5172 = vtanh.f32 %v1484_v6 }
0x14d2   :  { %v5173_v7 = vpop.eup %5172 }
0x14d3   :  { %1488 = vrot.lane.b32.xlu0 %v5173_v7, %s5286_s18 }
0x1545   :  { %v1489_v11 = vpop.permute.xlu0 %1488 }
0x1546   :  { %v1491_v13 = vmul.f32 %v1489_v11, %v1486_v8 }
0x1548   :  { %v1493_v14 = vadd.f32 %v1492_v12, %v1491_v13 }
0x154a   :  { %1495 = vrot.lane.b32.xlu1 %v1493_v14, %s5286_s18 }
0x15bc   :  { %v1496_v15 = vpop.permute.xlu1 %1495 }
0x15bd   :  { %1498 = vst.msk [vmem:[#allocation6 + $0x4] sm:$0x3] %vm785_vm2, %v1496_v15  ;;  %4503 = vmatmul.mubr.msk.f32.vlgmr.msra.gmra.mrb[10].mxu0 %vm433_vm12, %v1496_v15 }
0x15be   :  { %4524 = vmatprep.mubr.msk.f32.mxu0 %vm5284_vm4, %v5285_v9 }
0x1690   :  { %v1568_v16 = vpop.f32.mrb[10].mxu0 }
0x1691   :  { %v1569_v17 = vadd.f32 %v5730_v10, %v1568_v16  ;;  %v4504_v18 = vpop.f32.mrb[11].mxu0  ;;  %v4075_v10 = vld [vmem:[%s6140_s8 + $0x40] sm:$0xff] }
0x1692   :  { %v5787_v31 = vpack.c.bf16 %v4076_v29, %v4075_v10 }
0x1693   :  { %1580 = vrot.lane.b32.xlu0 %v1569_v17, %s5282_s29  ;;  %v1572_v20 = vadd.f32 %v1569_v17, %v1499_v19 }
0x1694   :  { %4945 = vmatpush3.bf16.msra.mxu0 %v5787_v31 }
0x1695   :  { %v4074_v21 = vmul.f32 -1.442695, %v1572_v20  ;;  %4946 = vmatprep.subr.bf16.mxu0 %v5283_v1 }
0x1697   :  { %5174 = vpow2.f32 %v4074_v21 }
0x1698   :  { %4948 = vmatpush3.bf16.msra.mxu0 %v5793_v33 }
0x1699   :  { %4955 = vmatprep.subr.bf16.mxu0 %v5283_v1 }
0x169b   :  { %4525 = vmatmul.mubr.f32.vlgmr.msra.gmra.mrb[12].mxu0 %v5285_v9 }
0x169c   :  { %4957 = vmatpush3.bf16.msra.mxu0 %v5787_v31  ;;  %4546 = vmatprep.mubr.msk.f32.mxu0 %vm5284_vm4, %v5285_v9 }
0x169d   :  { %4958 = vmatprep.subr.bf16.mxu0 %v5283_v1 }
0x16a0   :  { %4960 = vmatpush3.bf16.msra.mxu0 %v5793_v33 }
0x16a1   :  { %v5175_v22 = vpop.eup %5174  ;;  %4967 = vmatprep.subr.bf16.mxu0 %v5283_v1 }
0x16a2   :  { %v1576_v23 = vadd.f32 1.0, %v5175_v22 }
0x16a4   :  { %5176 = vrcp.f32 %v1576_v23 }
0x16ae   :  { %v5177_v24 = vpop.eup %5176 }
0x16af   :  { %v1590_v40 = vsub.f32 1.0, %v5177_v24  ;;  %v1596_v3 = vmul.f32 %v5177_v24, %v1493_v14 }
0x1705   :  { %v1581_v25 = vpop.permute.xlu0 %1580 }
0x1706   :  { %v1583_v26 = vmul.f32 %v5177_v24, %v1581_v25 }
0x1708   :  { %1585 = vrot.lane.b32.xlu1 %v1583_v26, %s5282_s29 }
0x176e   :  { %v1760_v46 = vpop.f32.mrb[12].mxu0 }
0x176f   :  { %v1761_v47 = vadd.f32 %v5824_v45, %v1760_v46  ;;  %v4526_v48 = vpop.f32.mrb[13].mxu0 }
0x177a   :  { %v1586_v27 = vpop.permute.xlu1 %1585 }
0x177b   :  { %v1588_v28 = vadd.f32 %v1586_v27, %v1499_v19 }
0x177d   :  { %5178 = vtanh.f32 %v1588_v28 }
0x1787   :  { %v5179_v34 = vpop.eup %5178 }
0x1788   :  { %1592 = vrot.lane.b32.xlu0 %v5179_v34, %s5286_s18 }
0x178c   :  { %1772 = vrot.lane.b32.xlu0 %v1761_v47, %s5282_s29 }
0x17fa   :  { %v1593_v42 = vpop.permute.xlu0 %1592 }
0x17fb   :  { %v1595_v43 = vmul.f32 %v1593_v42, %v1590_v40 }
0x17fd   :  { %v1597_v44 = vadd.f32 %v1596_v3, %v1595_v43 }
0x17fe   :  { %v1773_v59 = vpop.permute.xlu0 %1772 }
0x17ff   :  { %1599 = vrot.lane.b32.xlu1 %v1597_v44, %s5286_s18 }
0x1871   :  { %v1600_v49 = vpop.permute.xlu1 %1599 }
0x1872   :  { %1602 = vst.msk [vmem:[#allocation6 + $0x6] sm:$0x3] %vm785_vm2, %v1600_v49 }
0x1879   :  { %v1610_v50 = vld [vmem:[#allocation6] sm:$0xff] }
0x187a   :  { %4514 = vmatmul.mubr.msk.f32.vlgmr.msra.gmra.mrb[14].mxu1 %vm433_vm12, %v1610_v50 }
0x187b   :  { %4951 = vmatpush3.bf16.msra.mxu1 %v5787_v31  ;;  %4535 = vmatprep.mubr.msk.f32.mxu1 %vm5284_vm4, %v5285_v9 }
0x187c   :  { %4952 = vmatprep.subr.bf16.mxu1 %v5283_v1 }
0x187f   :  { %4954 = vmatpush3.bf16.msra.mxu1 %v5793_v33 }
0x1880   :  { %4961 = vmatprep.subr.bf16.mxu1 %v5283_v1 }
0x194d   :  { %v1684_v52 = vpop.f32.mrb[14].mxu1 }
0x194e   :  { %v1685_v41 = vadd.f32 %v4079_v51, %v1684_v52  ;;  %v4515_v53 = vpop.f32.mrb[15].mxu1 }
0x1950   :  { %1688 = vst.msk [vmem:[#allocation5] sm:$0xff] %vm488_vm3, %v1685_v41 }
0x1957   :  { %v1689_v54 = vld [vmem:[#allocation5] sm:$0x3]  ;;  %v1790_v15 = vld [vmem:[#allocation5 + $0x2] sm:$0x3]  ;;  %v1892_v34 = vld [vmem:[#allocation5 + $0x4] sm:$0x3] }
0x1958   :  { %v1764_v55 = vadd.f32 %v1761_v47, %v1689_v54  ;;  %v1994_v53 = vld [vmem:[#allocation5 + $0x6] sm:$0x3] }
0x195a   :  { %v4082_v56 = vmul.f32 -1.442695, %v1764_v55 }
0x195c   :  { %5180 = vpow2.f32 %v4082_v56 }
0x1966   :  { %v5181_v57 = vpop.eup %5180 }
0x1967   :  { %v1768_v58 = vadd.f32 1.0, %v5181_v57 }
0x1969   :  { %5182 = vrcp.f32 %v1768_v58 }
0x1973   :  { %v5183_v60 = vpop.eup %5182 }
0x1974   :  { %v1775_v61 = vmul.f32 %v5183_v60, %v1773_v59  ;;  %v1782_v4 = vsub.f32 1.0, %v5183_v60  ;;  %v1788_v6 = vmul.f32 0.0, %v5183_v60 }
0x1976   :  { %1777 = vrot.lane.b32.xlu1 %v1775_v61, %s5282_s29 }
0x19e8   :  { %v1778_v62 = vpop.permute.xlu1 %1777 }
0x19e9   :  { %v1780_v63 = vadd.f32 %v1778_v62, %v1689_v54 }
0x19eb   :  { %5184 = vtanh.f32 %v1780_v63  ;;  %v126_v63 = vld [vmem:[#allocation13] sm:$0xff] }
0x19f5   :  { %v5185_v0 = vpop.eup %5184 }
0x19f6   :  { %1784 = vrot.lane.b32.xlu0 %v5185_v0, %s5286_s18  ;;  %v128_v0 = vld [vmem:[#allocation13 + $0x10] sm:$0xff] }
0x1a68   :  { %v1785_v5 = vpop.permute.xlu0 %1784 }
0x1a69   :  { %v1787_v7 = vmul.f32 %v1785_v5, %v1782_v4  ;;  %v129_v5 = vld [vmem:[#allocation13 + $0x18] sm:$0xff] }
0x1a6b   :  { %v1789_v8 = vadd.f32 %v1788_v6, %v1787_v7  ;;  %v5872_v6 = vpack.c.bf16 %v129_v5, %v128_v0 }
0x1a6d   :  { %1792 = vrot.lane.b32.xlu1 %v1789_v8, %s5286_s18 }
0x1adf   :  { %v1793_v11 = vpop.permute.xlu1 %1792 }
0x1ae0   :  { %4536 = vmatmul.mubr.msk.f32.vlgmr.msra.gmra.mrb[16].mxu1 %vm433_vm12, %v1793_v11 }
0x1ae1   :  { %4963 = vmatpush3.bf16.msra.mxu1 %v5787_v31  ;;  %4557 = vmatprep.mubr.msk.f32.mxu1 %vm5284_vm4, %v5285_v9 }
0x1ae2   :  { %4964 = vmatprep.subr.bf16.mxu1 %v5283_v1 }
0x1ae5   :  { %4966 = vmatpush3.bf16.msra.mxu1 %v5793_v33 }
0x1ae6   :  { %4973 = vmatprep.subr.bf16.mxu1 %v5283_v1 }
0x1bb3   :  { %v1862_v12 = vpop.f32.mrb[16].mxu1 }
0x1bb4   :  { %v1863_v13 = vadd.f32 %v5824_v45, %v1862_v12  ;;  %v4537_v14 = vpop.f32.mrb[17].mxu1 }
0x1bb6   :  { %1874 = vrot.lane.b32.xlu0 %v1863_v13, %s5282_s29  ;;  %v1866_v16 = vadd.f32 %v1863_v13, %v1790_v15 }
0x1bb8   :  { %v4084_v17 = vmul.f32 -1.442695, %v1866_v16  ;;  %v5893_v16 = vld [vmem:[%s6143_s11] ss:$0 sm:$0xff] }
0x1bba   :  { %5186 = vpow2.f32 %v4084_v17 }
0x1bc4   :  { %v5187_v18 = vpop.eup %5186 }
0x1bc5   :  { %v1870_v19 = vadd.f32 1.0, %v5187_v18 }
0x1bc7   :  { %5188 = vrcp.f32 %v1870_v19 }
0x1bd1   :  { %v5189_v20 = vpop.eup %5188 }
0x1bd2   :  { %v1884_v26 = vsub.f32 1.0, %v5189_v20  ;;  %v1890_v28 = vmul.f32 %v5189_v20, %v1789_v8 }
0x1c28   :  { %v1875_v21 = vpop.permute.xlu0 %1874 }
0x1c29   :  { %v1877_v22 = vmul.f32 %v5189_v20, %v1875_v21 }
0x1c2b   :  { %1879 = vrot.lane.b32.xlu1 %v1877_v22, %s5282_s29 }
0x1c9d   :  { %v1880_v23 = vpop.permute.xlu1 %1879 }
0x1c9e   :  { %v1882_v24 = vadd.f32 %v1880_v23, %v1790_v15 }
0x1ca0   :  { %5190 = vtanh.f32 %v1882_v24 }
0x1caa   :  { %v5191_v25 = vpop.eup %5190 }
0x1cab   :  { %1886 = vrot.lane.b32.xlu0 %v5191_v25, %s5286_s18 }
0x1d1d   :  { %v1887_v27 = vpop.permute.xlu0 %1886 }
0x1d1e   :  { %v1889_v10 = vmul.f32 %v1887_v27, %v1884_v26 }
0x1d20   :  { %v1891_v29 = vadd.f32 %v1890_v28, %v1889_v10 }
0x1d22   :  { %1894 = vrot.lane.b32.xlu1 %v1891_v29, %s5286_s18 }
0x1d94   :  { %v1895_v30 = vpop.permute.xlu1 %1894 }
0x1d95   :  { %4547 = vmatmul.mubr.msk.f32.vlgmr.msra.gmra.mrb[14].mxu0 %vm433_vm12, %v1895_v30 }
0x1d96   :  { %4568 = vmatprep.mubr.msk.f32.mxu0 %vm5284_vm4, %v5285_v9 }
0x1e68   :  { %v1964_v31 = vpop.f32.mrb[14].mxu0 }
0x1e69   :  { %v1965_v32 = vadd.f32 %v5824_v45, %v1964_v31  ;;  %v4548_v33 = vpop.f32.mrb[15].mxu0 }
0x1e6b   :  { %1976 = vrot.lane.b32.xlu0 %v1965_v32, %s5282_s29  ;;  %v1968_v35 = vadd.f32 %v1965_v32, %v1892_v34 }
0x1e6d   :  { %v4086_v36 = vmul.f32 -1.442695, %v1968_v35 }
0x1e6f   :  { %5192 = vpow2.f32 %v4086_v36 }
0x1e79   :  { %v5193_v37 = vpop.eup %5192 }
0x1e7a   :  { %v1972_v2 = vadd.f32 1.0, %v5193_v37 }
0x1e7c   :  { %5194 = vrcp.f32 %v1972_v2 }
0x1e86   :  { %v5195_v38 = vpop.eup %5194 }
0x1e87   :  { %v1986_v44 = vsub.f32 1.0, %v5195_v38  ;;  %v1992_v47 = vmul.f32 %v5195_v38, %v1891_v29 }
0x1edd   :  { %v1977_v39 = vpop.permute.xlu0 %1976 }
0x1ede   :  { %v1979_v40 = vmul.f32 %v5195_v38, %v1977_v39 }
0x1ee0   :  { %1981 = vrot.lane.b32.xlu1 %v1979_v40, %s5282_s29 }
0x1f52   :  { %v1982_v42 = vpop.permute.xlu1 %1981 }
0x1f53   :  { %v1984_v3 = vadd.f32 %v1982_v42, %v1892_v34 }
0x1f55   :  { %5196 = vtanh.f32 %v1984_v3 }
0x1f5f   :  { %v5197_v43 = vpop.eup %5196 }
0x1f60   :  { %1988 = vrot.lane.b32.xlu0 %v5197_v43, %s5286_s18 }
0x1fd2   :  { %v1989_v46 = vpop.permute.xlu0 %1988 }
0x1fd3   :  { %v1991_v48 = vmul.f32 %v1989_v46, %v1986_v44 }
0x1fd5   :  { %v1993_v49 = vadd.f32 %v1992_v47, %v1991_v48 }
0x1fd7   :  { %1996 = vrot.lane.b32.xlu1 %v1993_v49, %s5286_s18 }
0x2049   :  { %v1997_v50 = vpop.permute.xlu1 %1996 }
0x204a   :  { %4558 = vmatmul.mubr.msk.f32.vlgmr.msra.gmra.mrb[18].mxu1 %vm433_vm12, %v1997_v50 }
0x204b   :  { %4579 = vmatprep.mubr.msk.f32.mxu1 %vm5284_vm4, %v5285_v9 }
0x211d   :  { %v2066_v51 = vpop.f32.mrb[18].mxu1 }
0x211e   :  { %v2067_v52 = vadd.f32 %v5824_v45, %v2066_v51  ;;  %v4559_v41 = vpop.f32.mrb[19].mxu1  ;;  %v127_v45 = vld [vmem:[#allocation13 + $0x8] sm:$0xff] }
0x211f   :  { %v5869_v4 = vpack.c.bf16 %v127_v45, %v126_v63 }
0x2120   :  { %2078 = vrot.lane.b32.xlu0 %v2067_v52, %s5282_s29  ;;  %v2070_v54 = vadd.f32 %v2067_v52, %v1994_v53 }
0x2121   :  { %4969 = vmatpush3.bf16.msra.mxu0 %v5869_v4  ;;  %4975 = vmatpush3.bf16.msra.mxu1 %v5869_v4 }
0x2122   :  { %v4088_v55 = vmul.f32 -1.442695, %v2070_v54  ;;  %4970 = vmatprep.subr.bf16.mxu0 %v5283_v1  ;;  %4976 = vmatprep.subr.bf16.mxu1 %v5283_v1 }
0x2124   :  { %5198 = vpow2.f32 %v4088_v55 }
0x2125   :  { %4972 = vmatpush3.bf16.msra.mxu0 %v5872_v6  ;;  %4978 = vmatpush3.bf16.msra.mxu1 %v5872_v6 }
0x2126   :  { %4979 = vmatprep.subr.bf16.mxu0 %v5283_v1  ;;  %4985 = vmatprep.subr.bf16.mxu1 %v5283_v1 }
0x212e   :  { %v5199_v56 = vpop.eup %5198 }
0x212f   :  { %v2074_v57 = vadd.f32 1.0, %v5199_v56 }
0x2131   :  { %5200 = vrcp.f32 %v2074_v57 }
0x213b   :  { %v5201_v58 = vpop.eup %5200 }
0x213c   :  { %v2088_v8 = vsub.f32 1.0, %v5201_v58  ;;  %v2094_v12 = vmul.f32 %v5201_v58, %v1993_v49 }
0x2192   :  { %v2079_v59 = vpop.permute.xlu0 %2078 }
0x2193   :  { %v2081_v60 = vmul.f32 %v5201_v58, %v2079_v59 }
0x2195   :  { %2083 = vrot.lane.b32.xlu1 %v2081_v60, %s5282_s29 }
0x2207   :  { %v2084_v61 = vpop.permute.xlu1 %2083 }
0x2208   :  { %v2086_v62 = vadd.f32 %v2084_v61, %v1994_v53 }
0x220a   :  { %5202 = vtanh.f32 %v2086_v62 }
0x2214   :  { %v5203_v7 = vpop.eup %5202 }
0x2215   :  { %2090 = vrot.lane.b32.xlu0 %v5203_v7, %s5286_s18 }
0x2287   :  { %v2091_v11 = vpop.permute.xlu0 %2090 }
0x2288   :  { %v2093_v13 = vmul.f32 %v2091_v11, %v2088_v8 }
0x228a   :  { %v2095_v14 = vadd.f32 %v2094_v12, %v2093_v13 }
0x228c   :  { %2103 = vrot.lane.b32.xlu1 %v2095_v14, %s5286_s18 }
0x22fe   :  { %v2104_v15 = vpop.permute.xlu1 %2103 }
0x22ff   :  { %4569 = vmatmul.mubr.msk.f32.vlgmr.msra.gmra.mrb[16].mxu0 %vm433_vm12, %v2104_v15 }
0x2300   :  { %4981 = vmatpush3.bf16.msra.mxu0 %v5869_v4  ;;  %4590 = vmatprep.mubr.msk.f32.mxu0 %vm5284_vm4, %v5285_v9 }
0x2301   :  { %4982 = vmatprep.subr.bf16.mxu0 %v5283_v1 }
0x2304   :  { %4984 = vmatpush3.bf16.msra.mxu0 %v5872_v6 }
0x2305   :  { %4991 = vmatprep.subr.bf16.mxu0 %v5283_v1 }
0x23d2   :  { %v2173_v17 = vpop.f32.mrb[16].mxu0 }
0x23d3   :  { %v2174_v18 = vadd.f32 %v5893_v16, %v2173_v17  ;;  %v4570_v19 = vpop.f32.mrb[17].mxu0 }
0x23d5   :  { %v2177_v20 = vmax.f32 %v2174_v18, 0.0 }
0x23d7   :  { %2178 = vst.msk [vmem:[#allocation7] sm:$0x3] %vm785_vm2, %v2177_v20  ;;  %4580 = vmatmul.mubr.msk.f32.vlgmr.msra.gmra.mrb[20].mxu1 %vm433_vm12, %v2177_v20 }
0x23d8   :  { %4987 = vmatpush3.bf16.msra.mxu1 %v5869_v4  ;;  %4601 = vmatprep.mubr.msk.f32.mxu1 %vm5284_vm4, %v5285_v9 }
0x23d9   :  { %4988 = vmatprep.subr.bf16.mxu1 %v5283_v1 }
0x23dc   :  { %4990 = vmatpush3.bf16.msra.mxu1 %v5872_v6 }
0x23dd   :  { %4997 = vmatprep.subr.bf16.mxu1 %v5283_v1 }
0x24aa   :  { %v2248_v21 = vpop.f32.mrb[20].mxu1 }
0x24ab   :  { %v2249_v22 = vadd.f32 %v5893_v16, %v2248_v21  ;;  %v4581_v23 = vpop.f32.mrb[21].mxu1 }
0x24ad   :  { %v2252_v24 = vmax.f32 %v2249_v22, 0.0 }
0x24af   :  { %2253 = vst.msk [vmem:[#allocation7 + $0x2] sm:$0x3] %vm785_vm2, %v2252_v24  ;;  %4591 = vmatmul.mubr.msk.f32.vlgmr.msra.gmra.mrb[18].mxu0 %vm433_vm12, %v2252_v24 }
0x24b0   :  { %4993 = vmatpush3.bf16.msra.mxu0 %v5869_v4  ;;  %4612 = vmatprep.mubr.msk.f32.mxu0 %vm5284_vm4, %v5285_v9 }
0x24b1   :  { %4994 = vmatprep.subr.bf16.mxu0 %v5283_v1 }
0x24b4   :  { %4996 = vmatpush3.bf16.msra.mxu0 %v5872_v6 }
0x24b5   :  { %5003 = vmatprep.subr.bf16.mxu0 %v5283_v1 }
0x2582   :  { %v2323_v25 = vpop.f32.mrb[18].mxu0 }
0x2583   :  { %v2324_v26 = vadd.f32 %v5893_v16, %v2323_v25  ;;  %v4592_v27 = vpop.f32.mrb[19].mxu0 }
0x2585   :  { %v2327_v28 = vmax.f32 %v2324_v26, 0.0 }
0x2587   :  { %2328 = vst.msk [vmem:[#allocation7 + $0x4] sm:$0x3] %vm785_vm2, %v2327_v28  ;;  %4602 = vmatmul.mubr.msk.f32.vlgmr.msra.gmra.mrb[22].mxu1 %vm433_vm12, %v2327_v28 }
0x2588   :  { %4999 = vmatpush3.bf16.msra.mxu1 %v5869_v4  ;;  %4623 = vmatprep.mubr.msk.f32.mxu1 %vm5284_vm4, %v5285_v9 }
0x2589   :  { %5000 = vmatprep.subr.bf16.mxu1 %v5283_v1 }
0x258c   :  { %5002 = vmatpush3.bf16.msra.mxu1 %v5872_v6 }
0x258d   :  { %5009 = vmatprep.subr.bf16.mxu1 %v5283_v1 }
0x265a   :  { %v2398_v10 = vpop.f32.mrb[22].mxu1 }
0x265b   :  { %v2399_v29 = vadd.f32 %v5893_v16, %v2398_v10  ;;  %v4603_v30 = vpop.f32.mrb[23].mxu1 }
0x265d   :  { %v2402_v31 = vmax.f32 %v2399_v29, 0.0 }
0x265f   :  { %2403 = vst.msk [vmem:[#allocation7 + $0x6] sm:$0x3] %vm785_vm2, %v2402_v31  ;;  %4613 = vmatmul.mubr.msk.f32.vlgmr.msra.gmra.mrb[20].mxu0 %vm433_vm12, %v2402_v31 }
0x2660   :  { %5005 = vmatpush3.bf16.msra.mxu0 %v5869_v4  ;;  %4634 = vmatprep.mubr.msk.f32.mxu0 %vm5284_vm4, %v5285_v9 }
0x2661   :  { %5006 = vmatprep.subr.bf16.mxu0 %v5283_v1 }
0x2664   :  { %5008 = vmatpush3.bf16.msra.mxu0 %v5872_v6 }
0x2665   :  { %5015 = vmatprep.subr.bf16.mxu0 %v5283_v1 }
0x2732   :  { %v2473_v32 = vpop.f32.mrb[20].mxu0 }
0x2733   :  { %v2474_v33 = vadd.f32 %v5893_v16, %v2473_v32  ;;  %v4614_v34 = vpop.f32.mrb[21].mxu0 }
0x2735   :  { %v2477_v35 = vmax.f32 %v2474_v33, 0.0 }
0x2737   :  { %2478 = vst.msk [vmem:[#allocation7 + $0x8] sm:$0x3] %vm785_vm2, %v2477_v35  ;;  %4624 = vmatmul.mubr.msk.f32.vlgmr.msra.gmra.mrb[24].mxu1 %vm433_vm12, %v2477_v35 }
0x2738   :  { %5011 = vmatpush3.bf16.msra.mxu1 %v5869_v4  ;;  %4645 = vmatprep.mubr.msk.f32.mxu1 %vm5284_vm4, %v5285_v9 }
0x2739   :  { %5012 = vmatprep.subr.bf16.mxu1 %v5283_v1 }
0x273c   :  { %5014 = vmatpush3.bf16.msra.mxu1 %v5872_v6 }
0x273d   :  { %5021 = vmatprep.subr.bf16.mxu1 %v5283_v1 }
0x280a   :  { %v2548_v36 = vpop.f32.mrb[24].mxu1 }
0x280b   :  { %v2549_v37 = vadd.f32 %v5893_v16, %v2548_v36  ;;  %v4625_v2 = vpop.f32.mrb[25].mxu1 }
0x280d   :  { %v2552_v38 = vmax.f32 %v2549_v37, 0.0 }
0x280f   :  { %2553 = vst.msk [vmem:[#allocation7 + $0xa] sm:$0x3] %vm785_vm2, %v2552_v38  ;;  %4635 = vmatmul.mubr.msk.f32.vlgmr.msra.gmra.mrb[22].mxu0 %vm433_vm12, %v2552_v38 }
0x2810   :  { %5017 = vmatpush3.bf16.msra.mxu0 %v5869_v4  ;;  %4656 = vmatprep.mubr.msk.f32.mxu0 %vm5284_vm4, %v5285_v9 }
0x2811   :  { %5018 = vmatprep.subr.bf16.mxu0 %v5283_v1 }
0x2814   :  { %5020 = vmatpush3.bf16.msra.mxu0 %v5872_v6 }
0x2815   :  { %5027 = vmatprep.subr.bf16.mxu0 %v5283_v1 }
0x28e2   :  { %v2623_v39 = vpop.f32.mrb[22].mxu0 }
0x28e3   :  { %v2624_v40 = vadd.f32 %v5893_v16, %v2623_v39  ;;  %v4636_v42 = vpop.f32.mrb[23].mxu0 }
0x28e4   :  { %v132_v42 = vld [vmem:[%s6144_s12 + $0x8] sm:$0xff] }
0x28e5   :  { %v2627_v3 = vmax.f32 %v2624_v40, 0.0  ;;  %v131_v40 = vld [vmem:[%s6144_s12] sm:$0xff] }
0x28e7   :  { %2628 = vst.msk [vmem:[#allocation7 + $0xc] sm:$0x3] %vm785_vm2, %v2627_v3  ;;  %4646 = vmatmul.mubr.msk.f32.vlgmr.msra.gmra.mrb[26].mxu1 %vm433_vm12, %v2627_v3  ;;  %v5111_v3 = vpack.c.bf16 %v132_v42, %v131_v40 }
0x28e8   :  { %5023 = vmatpush3.bf16.msra.mxu1 %v5869_v4  ;;  %4667 = vmatprep.mubr.msk.f32.mxu1 %vm5284_vm4, %v5285_v9 }
0x28e9   :  { %5024 = vmatprep.subr.bf16.mxu1 %v5283_v1 }
0x28ec   :  { %5026 = vmatpush3.bf16.msra.mxu1 %v5872_v6 }
0x28ed   :  { %5033 = vmatprep.subr.bf16.mxu1 %v5283_v1 }
0x29ba   :  { %v2698_v43 = vpop.f32.mrb[26].mxu1 }
0x29bb   :  { %v2699_v44 = vadd.f32 %v5893_v16, %v2698_v43  ;;  %v4647_v46 = vpop.f32.mrb[27].mxu1 }
0x29bd   :  { %v2702_v47 = vmax.f32 %v2699_v44, 0.0 }
0x29bf   :  { %2703 = vst.msk [vmem:[#allocation7 + $0xe] sm:$0x3] %vm785_vm2, %v2702_v47  ;;  %4657 = vmatmul.mubr.msk.f32.vlgmr.msra.gmra.mrb[24].mxu0 %vm433_vm12, %v2702_v47  ;;  %v3904_v47 = vld [vmem:[#allocation7] sm:$0xff] }
0x29c0   :  { %5029 = vmatpush3.bf16.msra.mxu0 %v5869_v4  ;;  %4678 = vmatprep.mubr.msk.f32.mxu0 %vm5284_vm4, %v5285_v9 }
0x29c1   :  { %5030 = vmatprep.subr.bf16.mxu0 %v5283_v1 }
0x29c4   :  { %5032 = vmatpush3.bf16.msra.mxu0 %v5872_v6 }
0x29c5   :  { %5039 = vmatprep.subr.bf16.mxu0 %v5283_v1 }
0x2a92   :  { %v2773_v48 = vpop.f32.mrb[24].mxu0 }
0x2a93   :  { %v2774_v49 = vadd.f32 %v5893_v16, %v2773_v48  ;;  %v4658_v50 = vpop.f32.mrb[25].mxu0  ;;  %v3905_v48 = vld [vmem:[#allocation7 + $0x8] sm:$0xff] }
0x2a95   :  { %v2777_v51 = vmax.f32 %v2774_v49, 0.0 }
0x2a97   :  { %2778 = vst.msk [vmem:[#allocation7 + $0x10] sm:$0x3] %vm785_vm2, %v2777_v51  ;;  %4668 = vmatmul.mubr.msk.f32.vlgmr.msra.gmra.mrb[28].mxu1 %vm433_vm12, %v2777_v51 }
0x2a98   :  { %5035 = vmatpush3.bf16.msra.mxu1 %v5869_v4  ;;  %4689 = vmatprep.mubr.msk.f32.mxu1 %vm5284_vm4, %v5285_v9 }
0x2a99   :  { %5036 = vmatprep.subr.bf16.mxu1 %v5283_v1 }
0x2a9c   :  { %5038 = vmatpush3.bf16.msra.mxu1 %v5872_v6 }
0x2a9d   :  { %5045 = vmatprep.subr.bf16.mxu1 %v5283_v1 }
0x2b6a   :  { %v2848_v52 = vpop.f32.mrb[28].mxu1 }
0x2b6b   :  { %v2849_v41 = vadd.f32 %v5893_v16, %v2848_v52  ;;  %v4669_v53 = vpop.f32.mrb[29].mxu1 }
0x2b6d   :  { %v2852_v54 = vmax.f32 %v2849_v41, 0.0 }
0x2b6f   :  { %2853 = vst.msk [vmem:[#allocation7 + $0x12] sm:$0x3] %vm785_vm2, %v2852_v54  ;;  %4679 = vmatmul.mubr.msk.f32.vlgmr.msra.gmra.mrb[26].mxu0 %vm433_vm12, %v2852_v54 }
0x2b70   :  { %5041 = vmatpush3.bf16.msra.mxu0 %v5869_v4  ;;  %4700 = vmatprep.mubr.msk.f32.mxu0 %vm5284_vm4, %v5285_v9 }
0x2b71   :  { %5042 = vmatprep.subr.bf16.mxu0 %v5283_v1 }
0x2b74   :  { %5044 = vmatpush3.bf16.msra.mxu0 %v5872_v6 }
0x2b75   :  { %5051 = vmatprep.subr.bf16.mxu0 %v5283_v1 }
0x2c42   :  { %v2923_v55 = vpop.f32.mrb[26].mxu0 }
0x2c43   :  { %v2924_v56 = vadd.f32 %v5893_v16, %v2923_v55  ;;  %v4680_v57 = vpop.f32.mrb[27].mxu0  ;;  %v4114_v55 = vld [vmem:[#allocation8] ss:$0 sm:$0xff] }
0x2c45   :  { %v2927_v58 = vmax.f32 %v2924_v56, 0.0 }
0x2c47   :  { %2928 = vst.msk [vmem:[#allocation7 + $0x14] sm:$0x3] %vm785_vm2, %v2927_v58  ;;  %4690 = vmatmul.mubr.msk.f32.vlgmr.msra.gmra.mrb[30].mxu1 %vm433_vm12, %v2927_v58 }
0x2c48   :  { %5047 = vmatpush3.bf16.msra.mxu1 %v5869_v4  ;;  %4711 = vmatprep.mubr.msk.f32.mxu1 %vm5284_vm4, %v5285_v9 }
0x2c49   :  { %5048 = vmatprep.subr.bf16.mxu1 %v5283_v1 }
0x2c4c   :  { %5050 = vmatpush3.bf16.msra.mxu1 %v5872_v6 }
0x2c4d   :  { %5057 = vmatprep.subr.bf16.mxu1 %v5283_v1 }
0x2d1a   :  { %v2998_v59 = vpop.f32.mrb[30].mxu1 }
0x2d1b   :  { %v2999_v60 = vadd.f32 %v5893_v16, %v2998_v59  ;;  %v4691_v61 = vpop.f32.mrb[31].mxu1 }
0x2d1d   :  { %v3002_v62 = vmax.f32 %v2999_v60, 0.0 }
0x2d1f   :  { %3003 = vst.msk [vmem:[#allocation7 + $0x16] sm:$0x3] %vm785_vm2, %v3002_v62  ;;  %4701 = vmatmul.mubr.msk.f32.vlgmr.msra.gmra.mrb[28].mxu0 %vm433_vm12, %v3002_v62 }
0x2d20   :  { %5053 = vmatpush3.bf16.msra.mxu0 %v5869_v4  ;;  %4722 = vmatprep.mubr.msk.f32.mxu0 %vm5284_vm4, %v5285_v9 }
0x2d21   :  { %5054 = vmatprep.subr.bf16.mxu0 %v5283_v1 }
0x2d24   :  { %5056 = vmatpush3.bf16.msra.mxu0 %v5872_v6 }
0x2d25   :  { %5063 = vmatprep.subr.bf16.mxu0 %v5283_v1 }
0x2d26   :  { %v3906_v49 = vld [vmem:[#allocation7 + $0x10] sm:$0xff] }
0x2df2   :  { %v3073_v63 = vpop.f32.mrb[28].mxu0 }
0x2df3   :  { %v3074_v45 = vadd.f32 %v5893_v16, %v3073_v63  ;;  %v4702_v0 = vpop.f32.mrb[29].mxu0 }
0x2df5   :  { %v3077_v5 = vmax.f32 %v3074_v45, 0.0 }
0x2df7   :  { %3078 = vst.msk [vmem:[#allocation7 + $0x18] sm:$0x3] %vm785_vm2, %v3077_v5  ;;  %4712 = vmatmul.mubr.msk.f32.vlgmr.msra.gmra.mrb[32].mxu1 %vm433_vm12, %v3077_v5 }
0x2df8   :  { %5059 = vmatpush3.bf16.msra.mxu1 %v5869_v4  ;;  %4733 = vmatprep.mubr.msk.f32.mxu1 %vm5284_vm4, %v5285_v9 }
0x2df9   :  { %5060 = vmatprep.subr.bf16.mxu1 %v5283_v1 }
0x2dfc   :  { %5062 = vmatpush3.bf16.msra.mxu1 %v5872_v6 }
0x2dfd   :  { %5069 = vmatprep.subr.bf16.mxu1 %v5283_v1 }
0x2eca   :  { %v3148_v7 = vpop.f32.mrb[32].mxu1 }
0x2ecb   :  { %v3149_v8 = vadd.f32 %v5893_v16, %v3148_v7  ;;  %v4713_v11 = vpop.f32.mrb[33].mxu1 }
0x2ecd   :  { %v3152_v12 = vmax.f32 %v3149_v8, 0.0 }
0x2ecf   :  { %3153 = vst.msk [vmem:[#allocation7 + $0x1a] sm:$0x3] %vm785_vm2, %v3152_v12  ;;  %4723 = vmatmul.mubr.msk.f32.vlgmr.msra.gmra.mrb[30].mxu0 %vm433_vm12, %v3152_v12 }
0x2ed0   :  { %5065 = vmatpush3.bf16.msra.mxu0 %v5869_v4  ;;  %4744 = vmatprep.mubr.msk.f32.mxu0 %vm5284_vm4, %v5285_v9 }
0x2ed1   :  { %5066 = vmatprep.subr.bf16.mxu0 %v5283_v1 }
0x2ed4   :  { %5068 = vmatpush3.bf16.msra.mxu0 %v5872_v6 }
0x2ed5   :  { %5075 = vmatprep.subr.bf16.mxu0 %v5283_v1 }
0x2fa2   :  { %v3223_v13 = vpop.f32.mrb[30].mxu0 }
0x2fa3   :  { %v3224_v14 = vadd.f32 %v5893_v16, %v3223_v13  ;;  %v4724_v15 = vpop.f32.mrb[31].mxu0 }
0x2fa5   :  { %v3227_v17 = vmax.f32 %v3224_v14, 0.0 }
0x2fa7   :  { %3228 = vst.msk [vmem:[#allocation7 + $0x1c] sm:$0x3] %vm785_vm2, %v3227_v17  ;;  %4734 = vmatmul.mubr.msk.f32.vlgmr.msra.gmra.mrb[34].mxu1 %vm433_vm12, %v3227_v17 }
0x2fa8   :  { %5071 = vmatpush3.bf16.msra.mxu1 %v5869_v4  ;;  %4755 = vmatprep.mubr.msk.f32.mxu1 %vm5284_vm4, %v5285_v9 }
0x2fa9   :  { %5072 = vmatprep.subr.bf16.mxu1 %v5283_v1 }
0x2fac   :  { %5074 = vmatpush3.bf16.msra.mxu1 %v5872_v6 }
0x2fad   :  { %5081 = vmatprep.subr.bf16.mxu1 %v5283_v1 }
0x307a   :  { %v3298_v18 = vpop.f32.mrb[34].mxu1 }
0x307b   :  { %v3299_v19 = vadd.f32 %v5893_v16, %v3298_v18  ;;  %v4735_v20 = vpop.f32.mrb[35].mxu1 }
0x307d   :  { %v3302_v21 = vmax.f32 %v3299_v19, 0.0 }
0x307f   :  { %3303 = vst.msk [vmem:[#allocation7 + $0x1e] sm:$0x3] %vm785_vm2, %v3302_v21  ;;  %4745 = vmatmul.mubr.msk.f32.vlgmr.msra.gmra.mrb[32].mxu0 %vm433_vm12, %v3302_v21 }
0x3080   :  { %5077 = vmatpush3.bf16.msra.mxu0 %v5869_v4  ;;  %4766 = vmatprep.mubr.msk.f32.mxu0 %vm5284_vm4, %v5285_v9 }
0x3081   :  { %5078 = vmatprep.subr.bf16.mxu0 %v5283_v1 }
0x3084   :  { %5080 = vmatpush3.bf16.msra.mxu0 %v5872_v6 }
0x3085   :  { %5087 = vmatprep.subr.bf16.mxu0 %v5283_v1 }
0x3086   :  { %v3907_v50 = vld [vmem:[#allocation7 + $0x18] sm:$0xff] }
0x3152   :  { %v3373_v22 = vpop.f32.mrb[32].mxu0 }
0x3153   :  { %v3374_v23 = vadd.f32 %v5893_v16, %v3373_v22  ;;  %v4746_v24 = vpop.f32.mrb[33].mxu0 }
0x3155   :  { %v3377_v25 = vmax.f32 %v3374_v23, 0.0 }
0x3157   :  { %3378 = vst.msk [vmem:[#allocation7 + $0x20] sm:$0x3] %vm785_vm2, %v3377_v25  ;;  %4756 = vmatmul.mubr.msk.f32.vlgmr.msra.gmra.mrb[36].mxu1 %vm433_vm12, %v3377_v25 }
0x3158   :  { %5083 = vmatpush3.bf16.msra.mxu1 %v5869_v4  ;;  %4777 = vmatprep.mubr.msk.f32.mxu1 %vm5284_vm4, %v5285_v9 }
0x3159   :  { %5084 = vmatprep.subr.bf16.mxu1 %v5283_v1 }
0x315c   :  { %5086 = vmatpush3.bf16.msra.mxu1 %v5872_v6 }
0x315d   :  { %5093 = vmatprep.subr.bf16.mxu1 %v5283_v1 }
0x322a   :  { %v3448_v26 = vpop.f32.mrb[36].mxu1 }
0x322b   :  { %v3449_v27 = vadd.f32 %v5893_v16, %v3448_v26  ;;  %v4757_v28 = vpop.f32.mrb[37].mxu1 }
0x322d   :  { %v3452_v10 = vmax.f32 %v3449_v27, 0.0 }
0x322f   :  { %3453 = vst.msk [vmem:[#allocation7 + $0x22] sm:$0x3] %vm785_vm2, %v3452_v10  ;;  %4767 = vmatmul.mubr.msk.f32.vlgmr.msra.gmra.mrb[34].mxu0 %vm433_vm12, %v3452_v10 }
0x3230   :  { %5089 = vmatpush3.bf16.msra.mxu0 %v5869_v4  ;;  %4788 = vmatprep.mubr.msk.f32.mxu0 %vm5284_vm4, %v5285_v9 }
0x3231   :  { %5090 = vmatprep.subr.bf16.mxu0 %v5283_v1 }
0x3234   :  { %5092 = vmatpush3.bf16.msra.mxu0 %v5872_v6 }
0x3235   :  { %5099 = vmatprep.subr.bf16.mxu0 %v5283_v1 }
0x3302   :  { %v3523_v29 = vpop.f32.mrb[34].mxu0 }
0x3303   :  { %v3524_v30 = vadd.f32 %v5893_v16, %v3523_v29  ;;  %v4768_v31 = vpop.f32.mrb[35].mxu0 }
0x3305   :  { %v3527_v32 = vmax.f32 %v3524_v30, 0.0 }
0x3307   :  { %3528 = vst.msk [vmem:[#allocation7 + $0x24] sm:$0x3] %vm785_vm2, %v3527_v32  ;;  %4778 = vmatmul.mubr.msk.f32.vlgmr.msra.gmra.mrb[38].mxu1 %vm433_vm12, %v3527_v32 }
0x3308   :  { %5095 = vmatpush3.bf16.msra.mxu1 %v5869_v4  ;;  %4799 = vmatprep.mubr.msk.f32.mxu1 %vm5284_vm4, %v5285_v9 }
0x3309   :  { %5096 = vmatprep.subr.bf16.mxu1 %v5283_v1 }
0x330c   :  { %5098 = vmatpush3.bf16.msra.mxu1 %v5872_v6 }
0x330d   :  { %5105 = vmatprep.subr.bf16.mxu1 %v5283_v1 }
0x33da   :  { %v3598_v33 = vpop.f32.mrb[38].mxu1 }
0x33db   :  { %v3599_v34 = vadd.f32 %v5893_v16, %v3598_v33  ;;  %v4779_v35 = vpop.f32.mrb[39].mxu1 }
0x33dd   :  { %v3602_v36 = vmax.f32 %v3599_v34, 0.0 }
0x33df   :  { %3603 = vst.msk [vmem:[#allocation7 + $0x26] sm:$0x3] %vm785_vm2, %v3602_v36  ;;  %4789 = vmatmul.mubr.msk.f32.vlgmr.msra.gmra.mrb[36].mxu0 %vm433_vm12, %v3602_v36 }
0x33e0   :  { %5101 = vmatpush3.bf16.msra.mxu0 %v5869_v4  ;;  %4810 = vmatprep.mubr.msk.f32.mxu0 %vm5284_vm4, %v5285_v9 }
0x33e1   :  { %5102 = vmatprep.subr.bf16.mxu0 %v5283_v1 }
0x33e4   :  { %5104 = vmatpush3.bf16.msra.mxu0 %v5872_v6 }
0x33e5   :  { %5112 = vmatprep.subr.bf16.mxu0 %v5111_v3 }
0x33e6   :  { %v3908_v51 = vld [vmem:[#allocation7 + $0x20] sm:$0xff] }
0x34b2   :  { %v3673_v37 = vpop.f32.mrb[36].mxu0 }
0x34b3   :  { %v3674_v2 = vadd.f32 %v5893_v16, %v3673_v37  ;;  %v4790_v38 = vpop.f32.mrb[37].mxu0 }
0x34b5   :  { %v3677_v39 = vmax.f32 %v3674_v2, 0.0 }
0x34b7   :  { %3678 = vst.msk [vmem:[#allocation7 + $0x28] sm:$0x3] %vm785_vm2, %v3677_v39  ;;  %4800 = vmatmul.mubr.msk.f32.vlgmr.msra.gmra.mrb[40].mxu1 %vm433_vm12, %v3677_v39 }
0x34b8   :  { %5107 = vmatpush3.bf16.msra.mxu1 %v5869_v4  ;;  %4821 = vmatprep.mubr.msk.f32.mxu1 %vm5284_vm4, %v5285_v9  ;;  %v133_v4 = vld [vmem:[%s6144_s12 + $0x10] sm:$0xff] }
0x34b9   :  { %5108 = vmatprep.subr.bf16.mxu1 %v5283_v1  ;;  %v134_v1 = vld [vmem:[%s6144_s12 + $0x18] sm:$0xff] }
0x34ba   :  { %v5115_v46 = vpack.c.bf16 %v134_v1, %v133_v4 }
0x34bc   :  { %5110 = vmatpush3.bf16.msra.mxu1 %v5872_v6 }
0x358a   :  { %v3748_v43 = vpop.f32.mrb[40].mxu1 }
0x358b   :  { %v3749_v9 = vadd.f32 %v5893_v16, %v3748_v43  ;;  %v4801_v6 = vpop.f32.mrb[41].mxu1 }
0x358d   :  { %v3752_v44 = vmax.f32 %v3749_v9, 0.0 }
0x358f   :  { %3753 = vst.msk [vmem:[#allocation7 + $0x2a] sm:$0x3] %vm785_vm2, %v3752_v44  ;;  %4811 = vmatmul.mubr.msk.f32.vlgmr.msra.gmra.mrb[38].mxu0 %vm433_vm12, %v3752_v44 }
0x3590   :  { %5114 = vmatpush3.bf16.msra.mxu0 %v5111_v3  ;;  %4832 = vmatprep.mubr.msk.f32.mxu0 %vm433_vm12, %v3904_v47 }
0x3591   :  { %5116 = vmatprep.subr.bf16.mxu0 %v5115_v46 }
0x3594   :  { %5118 = vmatpush3.bf16.msra.mxu0 %v5115_v46 }
0x3597   :  { %4833 = vmatmul.mubr.msk.f32.vlgmr.msra.gmra.mrb[40].mxu0 %vm433_vm12, %v3905_v48 }
0x3598   :  { %4835 = vmatprep.mubr.msk.f32.mxu0 %vm433_vm12, %v3906_v49 }
0x359b   :  { %4836 = vmatmul.mubr.msk.f32.gmra.mrb[42].mxu0 %vm433_vm12, %v3907_v50 }
0x359c   :  { %4838 = vmatprep.mubr.msk.f32.mxu0 %vm433_vm12, %v3908_v51 }
0x3662   :  { %v3823_v52 = vpop.f32.mrb[38].mxu0 }
0x3663   :  { %v3824_v41 = vadd.f32 %v5893_v16, %v3823_v52  ;;  %v4812_v53 = vpop.f32.mrb[39].mxu0 }
0x3665   :  { %v3827_v54 = vmax.f32 %v3824_v41, 0.0 }
0x3667   :  { %3828 = vst.msk [vmem:[#allocation7 + $0x2c] sm:$0x3] %vm785_vm2, %v3827_v54  ;;  %4822 = vmatmul.mubr.msk.f32.vlgmr.msra.gmra.mrb[42].mxu1 %vm433_vm12, %v3827_v54 }
0x366a   :  { %v4834_v56 = vpop.f32.mrb[40].mxu0 }
0x366b   :  { %v4006_v57 = vadd.f32 %v4834_v56, %v4114_v55  ;;  %v4000_v58 = vpop.f32.mrb[41].mxu0 }
0x366c   :  { %v4001_v59 = vadd.f32 %v4114_v55, %v4000_v58 }
0x366d   :  { %4031 = vst.msk [vmem:[%s6146_s14 + $0x8] sm:$0xff] %vm4029_vm6, %v4006_v57 }
0x366e   :  { %4030 = vst.msk [vmem:[%s6146_s14] sm:$0xff] %vm4029_vm6, %v4001_v59  ;;  %v4837_v60 = vpop.f32.mrb[42].mxu0 }
0x366f   :  { %v4016_v61 = vadd.f32 %v4837_v60, %v4114_v55  ;;  %v4010_v62 = vpop.f32.mrb[43].mxu0 }
0x3670   :  { %v4011_v63 = vadd.f32 %v4114_v55, %v4010_v62 }
0x3671   :  { %4033 = vst.msk [vmem:[%s6146_s14 + $0x18] sm:$0xff] %vm4029_vm6, %v4016_v61 }
0x3672   :  { %4032 = vst.msk [vmem:[%s6146_s14 + $0x10] sm:$0xff] %vm4029_vm6, %v4011_v63 }
0x373a   :  { %v3898_v45 = vpop.f32.mrb[42].mxu1 }
0x373b   :  { %v3899_v0 = vadd.f32 %v5893_v16, %v3898_v45  ;;  %v4823_v5 = vpop.f32.mrb[43].mxu1 }
0x373d   :  { %v3902_v7 = vmax.f32 %v3899_v0, 0.0 }
0x373f   :  { %3903 = vst.msk [vmem:[#allocation7 + $0x2e] sm:$0x3] %vm785_vm2, %v3902_v7 }
0x3746   :  { %v3909_v8 = vld [vmem:[#allocation7 + $0x28] sm:$0xff] }
0x3747   :  { %4839 = vmatmul.mubr.msk.f32.gmra.mrb[44].mxu0 %vm433_vm12, %v3909_v8 }
0x381a   :  { %v4840_v11 = vpop.f32.mrb[44].mxu0 }
0x381b   :  { %v4026_v12 = vadd.f32 %v4840_v11, %v4114_v55  ;;  %v4020_v13 = vpop.f32.mrb[45].mxu0 }
0x381c   :  { %v4021_v14 = vadd.f32 %v4114_v55, %v4020_v13 }
0x381d   :  { %4035 = vst.msk [vmem:[%s6146_s14 + $0x28] sm:$0xff] %vm4029_vm6, %v4026_v12 }
0x381e   :  { %4034 = vst.msk [vmem:[%s6146_s14 + $0x20] sm:$0xff] %vm4029_vm6, %v4021_v14 }
0x381f   :  { %4040 = vsyncpa [#allocation10], 1 }
0x3820   :  { %4041 = vsyncpa [#allocation12], 1 }

</bundles_post_ra>
